<compile_context>
chip_gen: v7x
topology: tpu7x:2x2x1
jax: 0.10.0
libtpu: 0.0.40
codegen_flags: <defaults>
</compile_context>

<pallas_src>
import functools

import jax
import jax.numpy as jnp
import numpy as np
from jax.experimental import pallas as pl
from jax.experimental.pallas import tpu as pltpu


def _fused_sigmanet_kernel(lr_ref, li_hbm_ref, x_ref, w1_ref, b1_ref,
                           w2_ref, b2_ref, out_ref,
                           li_vmem, h_scr, dma_sem, *, kp1, f1, f2, p_out):
    """Fused 2-layer SigMaNet forward (i_complex=True, follow_math=False).

    lr_ref     : (N, N) bf16 real magnetic Laplacian (VMEM, prologue DMA)
    li_hbm_ref : (N, N) bf16 imag magnetic Laplacian (HBM, manual overlapped DMA)
    x_ref      : (N, 2*f1) f32 merged node features [X_real | X_imag]
    w1_ref     : (K+1, f1, f2) f32 layer-1 Chebyshev weights
    b1_ref     : (1, f2) f32
    w2_ref     : (K+1, f2, p_out) f32 layer-2 weights (lane-padded to p_out)
    b2_ref     : (1, p_out) f32 (zero-padded)
    out_ref    : (N, 2*p_out) f32 packed output: real in [:p_out], imag after
    li_vmem    : (N, N) bf16 VMEM landing buffer for L_i
    h_scr      : (N, 2*f2) f32 merged hidden-state scratch (layer1 -> layer2)
    dma_sem    : DMA semaphore for the L_i copy
    """
    # Kick off the L_i HBM->VMEM DMA immediately; we only wait for it right
    # before its first matmul, so the layer-1 hop-0 work and the L_r hop-1
    # matmul hide most of the transfer.
    li_copy = None
    if kp1 > 1:
        li_copy = pltpu.make_async_copy(li_hbm_ref, li_vmem, dma_sem)
        li_copy.start()

    def cheb_layer(X, f, w_ref_, b_ref_, wait_for_li):
        """One SigMaNetConv layer on merged features X = [X_r | X_i] (N, 2f).

        Real-L recursion T_k(L_r; X): cols [:f] = rr stream, cols [f:] = ir.
        Imag-L recursion T_k(L_i; X): cols [:f] = ri stream, cols [f:] = ii.
          out_real = bias + sum_k (rr_k - ii_k) @ W_k
          out_imag = bias + sum_k (ir_k + ri_k) @ W_k
        Projections are accumulated per hop (no D-concat materialization).
        """
        b = b_ref_[...]
        # Hop 0: identity for both parts (i_complex=True), no L needed.
        acc_r = jnp.dot(X[:, :f] - X[:, f:], w_ref_[0],
                        preferred_element_type=jnp.float32) + b
        acc_i = jnp.dot(X[:, f:] + X[:, :f], w_ref_[0],
                        preferred_element_type=jnp.float32) + b
        if kp1 > 1:
            Xb = X.astype(jnp.bfloat16)
            Tr1 = jnp.dot(lr_ref[...], Xb, preferred_element_type=jnp.float32)
            if wait_for_li:
                li_copy.wait()          # L_i arrival hidden behind the Tr1 dot
            Ti1 = jnp.dot(li_vmem[...], Xb, preferred_element_type=jnp.float32)
            acc_r += jnp.dot(Tr1[:, :f] - Ti1[:, f:], w_ref_[1],
                             preferred_element_type=jnp.float32)
            acc_i += jnp.dot(Tr1[:, f:] + Ti1[:, :f], w_ref_[1],
                             preferred_element_type=jnp.float32)
            Tpr, Tpi = X, X             # T_{k-2} (f32)
            Tcr, Tci = Tr1, Ti1         # T_{k-1} (f32)
            for k in range(2, kp1):
                Tr2 = 2.0 * jnp.dot(lr_ref[...], Tcr.astype(jnp.bfloat16),
                                    preferred_element_type=jnp.float32) - Tpr
                Ti2 = 2.0 * jnp.dot(li_vmem[...], Tci.astype(jnp.bfloat16),
                                    preferred_element_type=jnp.float32) - Tpi
                acc_r += jnp.dot(Tr2[:, :f] - Ti2[:, f:], w_ref_[k],
                                 preferred_element_type=jnp.float32)
                acc_i += jnp.dot(Tr2[:, f:] + Ti2[:, :f], w_ref_[k],
                                 preferred_element_type=jnp.float32)
                Tpr, Tcr = Tcr, Tr2
                Tpi, Tci = Tci, Ti2
        # complex_relu_layer: mask = 1.0*(real >= 0), applied to both parts.
        mask = (acc_r >= 0).astype(acc_r.dtype)
        return mask * acc_r, mask * acc_i

    # Layer 1: f1 -> f2 (hidden), complex ReLU.
    h_r, h_i = cheb_layer(x_ref[...], f1, w1_ref, b1_ref, wait_for_li=True)
    # Stage merged [h_r | h_i] through VMEM scratch (no jnp.concatenate).
    h_scr[:, :f2] = h_r
    h_scr[:, f2:] = h_i
    # Layer 2: f2 -> label_dim (per-part lane-padded to p_out), complex ReLU.
    o_r, o_i = cheb_layer(h_scr[...], f2, w2_ref, b2_ref, wait_for_li=False)
    # Pack both parts into one lane-dense slab and store full width.
    out_ref[...] = jnp.concatenate([o_r, o_i], axis=1)


def sigmanet_fused_conv_stack(l_real, l_imag, x_real, x_imag, w1, b1, w2, b2):
    """Run the fused 2-layer SigMaNet conv stack via a single pallas_call."""
    n, f_in = x_real.shape
    kp1, _, hidden = w1.shape
    label_dim = w2.shape[2]
    p_out = 64 * ((label_dim + 63) // 64)   # per-part lane padding (2*p_out % 128 == 0)

    # Operand prep (glue, stays in JAX): merge streams, pad weights, and cast
    # the O(N^2) Laplacians to bf16 (halves HBM traffic + VMEM footprint).
    x = jnp.concatenate([x_real, x_imag], axis=1).astype(jnp.float32)
    lr = l_real.astype(jnp.bfloat16)
    li = l_imag.astype(jnp.bfloat16)
    w1f = w1.astype(jnp.float32)
    b1f = b1.astype(jnp.float32).reshape(1, hidden)
    w2p = jnp.pad(w2.astype(jnp.float32),
                  ((0, 0), (0, 0), (0, p_out - label_dim)))
    b2p = jnp.pad(b2.astype(jnp.float32),
                  (0, p_out - label_dim)).reshape(1, p_out)
    operands = (lr, li, x, w1f, b1f, w2p, b2p)

    # Generation-aware VMEM budget: physical capacity from get_tpu_info with
    # an 85% cap (~108 MiB on v5e/v6e, ~54 MiB on v7x); the estimate includes
    # the in-kernel f32 temporaries and scratch buffers, not just operands.
    try:
        info = pltpu.get_tpu_info()
        vmem_cap = int(getattr(info, "vmem_capacity_bytes", 64 * 2 ** 20))
    except Exception:
        vmem_cap = 64 * 2 ** 20
    cap = min(int(0.85 * vmem_cap), 112 * 2 ** 20)

    operand_bytes = sum(int(a.size) * a.dtype.itemsize for a in operands)
    li_scratch_bytes = n * n * 2                       # bf16 L_i landing buffer
    out_bytes = n * 2 * p_out * 4                      # packed f32 output slab
    # Chebyshev recursion state (<= ~8 live (N,2f) f32 arrays per layer incl.
    # bf16 casts), projection accumulators, merged hidden-state scratch.
    temp_bytes = 4 * n * (8 * 2 * f_in + 8 * 2 * hidden
                          + 4 * p_out + 6 * hidden)
    needed = operand_bytes + li_scratch_bytes + out_bytes + temp_bytes
    vmem_limit = int(min(cap, max(int(1.5 * needed), 32 * 2 ** 20)))

    kernel = functools.partial(_fused_sigmanet_kernel,
                               kp1=kp1, f1=f_in, f2=hidden, p_out=p_out)
    vmem_spec = lambda: pl.BlockSpec(memory_space=pltpu.MemorySpace.VMEM)

    out = pl.pallas_call(
        kernel,
        out_shape=jax.ShapeDtypeStruct((n, 2 * p_out), jnp.float32),
        in_specs=[vmem_spec(),                          # L_r (prologue DMA)
                  pl.BlockSpec(memory_space=pl.ANY),    # L_i (manual overlapped DMA)
                  vmem_spec(), vmem_spec(), vmem_spec(),
                  vmem_spec(), vmem_spec()],
        out_specs=vmem_spec(),
        scratch_shapes=[pltpu.VMEM((n, n), jnp.bfloat16),          # L_i buffer
                        pltpu.VMEM((n, 2 * hidden), jnp.float32),  # hidden state
                        pltpu.SemaphoreType.DMA],
        compiler_params=pltpu.CompilerParams(vmem_limit_bytes=vmem_limit),
    )(*operands)
    # Slice the lane-padded packed slab back to the true label dimension.
    return out[:, :label_dim], out[:, p_out:p_out + label_dim]


def build_dense_laplacian(edge_index, norm_real, norm_imag, n):
    """Densify the sparse magnetic Laplacian implied by propagate().

    PyG MessagePassing with flow='target_to_source', aggr='add':
        out[edge_index[0, e]] += norm[e] * x[edge_index[1, e]]
    i.e. L[src, dst] = sum of norms over duplicate edges.
    """
    src = edge_index[0]
    dst = edge_index[1]
    l_real = jnp.zeros((n, n), jnp.float32).at[src, dst].add(norm_real)
    l_imag = jnp.zeros((n, n), jnp.float32).at[src, dst].add(norm_imag)
    return l_real, l_imag


def glorot(key, shape):
    """PyG glorot: uniform(-s, s) with s = sqrt(6 / (fan_in + fan_out))."""
    s = jnp.sqrt(6.0 / (shape[-2] + shape[-1]))
    return jax.random.uniform(key, shape, jnp.float32, minval=-s, maxval=s)


@jax.jit
def sigmanet_link_prediction_forward(x_real, x_imag, query_edges,
                                     l_real, l_imag, params):
    """Full model forward (layer=2, unwind=False, activation=True)."""
    (w1, b1), (w2, b2) = params
    real, imag = sigmanet_fused_conv_stack(l_real, l_imag, x_real, x_imag,
                                           w1, b1, w2, b2)
    # unwind=False branch: gather the two endpoints of each query edge, sum,
    # and combine into a complex result (gather is glue, stays in JAX).
    real_q = real[query_edges[:, 0]] + real[query_edges[:, 1]]
    imag_q = imag[query_edges[:, 0]] + imag[query_edges[:, 1]]
    return real_q + 1j * imag_q


def sigmanet_reference(l_real, l_imag, x_real, x_imag, params):
    """Pure f32 JAX reference following the PyTorch module exactly
    (i_complex=True, follow_math=False, gcn=False, activation=True)."""
    xr, xi = x_real, x_imag
    for (w, b) in params:
        kp1 = w.shape[0]
        T0_rr, T0_ii, T0_ir, T0_ri = xr, xi, xi, xr     # identity hop
        out_rr = T0_rr @ w[0]; out_ii = T0_ii @ w[0]
        out_ir = T0_ir @ w[0]; out_ri = T0_ri @ w[0]
        if kp1 > 1:
            T1_rr = l_real @ xr; T1_ii = l_imag @ xi
            T1_ir = l_real @ xi; T1_ri = l_imag @ xr
            out_rr += T1_rr @ w[1]; out_ii += T1_ii @ w[1]
            out_ir += T1_ir @ w[1]; out_ri += T1_ri @ w[1]
            for k in range(2, kp1):
                T2_rr = 2.0 * (l_real @ T1_rr) - T0_rr
                T2_ii = 2.0 * (l_imag @ T1_ii) - T0_ii
                T2_ir = 2.0 * (l_real @ T1_ir) - T0_ir
                T2_ri = 2.0 * (l_imag @ T1_ri) - T0_ri
                out_rr += T2_rr @ w[k]; out_ii += T2_ii @ w[k]
                out_ir += T2_ir @ w[k]; out_ri += T2_ri @ w[k]
                T0_rr, T1_rr = T1_rr, T2_rr
                T0_ii, T1_ii = T1_ii, T2_ii
                T0_ir, T1_ir = T1_ir, T2_ir
                T0_ri, T1_ri = T1_ri, T2_ri
        out_real = out_rr - out_ii + b
        out_imag = out_ir + out_ri + b
        mask = (out_real >= 0).astype(out_real.dtype)
        xr, xi = mask * out_real, mask * out_imag
    return xr, xi


if __name__ == "__main__":
    key = jax.random.PRNGKey(0)
    (k_xr, k_xi, k_ei, k_nr, k_ni, k_q, k_w1, k_w2) = jax.random.split(key, 8)

    # Small synthetic problem consistent with the module's forward.
    N = 128         # number of nodes
    F_IN = 4        # num_features
    HIDDEN = 8      # hidden channels
    LABEL_DIM = 2   # output classes
    K = 2           # Chebyshev order -> weights have K+1 = 3 hops
    E = 512         # number of directed edges
    Q = 8           # number of query edges

    x_real = jax.random.normal(k_xr, (N, F_IN), jnp.float32)
    x_imag = jax.random.normal(k_xi, (N, F_IN), jnp.float32)
    edge_index = jax.random.randint(k_ei, (2, E), 0, N, dtype=jnp.int32)
    norm_real = 0.1 * jax.random.normal(k_nr, (E,), jnp.float32)
    norm_imag = 0.1 * jax.random.normal(k_ni, (E,), jnp.float32)
    query_edges = jax.random.randint(k_q, (Q, 2), 0, N, dtype=jnp.int32)

    # Deterministic parameter init (glorot weights, zero biases), matching
    # SigMaNetConv.reset_parameters().  Layer 0: F_IN -> HIDDEN; last layer is
    # replaced (unwind=False) with HIDDEN -> LABEL_DIM.
    w1 = glorot(k_w1, (K + 1, F_IN, HIDDEN))
    b1 = jnp.zeros((HIDDEN,), jnp.float32)
    w2 = glorot(k_w2, (K + 1, HIDDEN, LABEL_DIM))
    b2 = jnp.zeros((LABEL_DIM,), jnp.float32)
    params = [(w1, b1), (w2, b2)]

    l_real, l_imag = build_dense_laplacian(edge_index, norm_real, norm_imag, N)

    out = sigmanet_link_prediction_forward(x_real, x_imag, query_edges,
                                           l_real, l_imag, params)
    out = jax.block_until_ready(out)
    assert out.shape == (Q, LABEL_DIM) and out.dtype == jnp.complex64

    # Tolerance check against a pure-f32 JAX reference (bf16 L in the kernel).
    ref_r, ref_i = sigmanet_reference(l_real, l_imag, x_real, x_imag, params)
    ref_r = ref_r[query_edges[:, 0]] + ref_r[query_edges[:, 1]]
    ref_i = ref_i[query_edges[:, 0]] + ref_i[query_edges[:, 1]]
    ref = np.asarray(ref_r + 1j * ref_i)
    assert np.allclose(np.asarray(out), ref, rtol=2e-1, atol=5e-1), (
        "kernel output deviates from f32 reference beyond bf16 tolerance")

    print("KERNEL_OK")
</pallas_src>

<mosaic_0001>
module attributes {stable_mosaic.version = 11 : i64} {
  func.func @_fused_sigmanet_kernel(%arg0: memref<128x128xbf16, #tpu.memory_space<vmem>>, %arg1: memref<128x128xbf16, #tpu.memory_space<any>>, %arg2: memref<128x8xf32, #tpu.memory_space<vmem>>, %arg3: memref<3x4x8xf32, #tpu.memory_space<vmem>>, %arg4: memref<1x8xf32, #tpu.memory_space<vmem>>, %arg5: memref<3x8x64xf32, #tpu.memory_space<vmem>>, %arg6: memref<1x64xf32, #tpu.memory_space<vmem>>, %arg7: memref<128x128xf32, #tpu.memory_space<vmem>>, %arg8: memref<128x128xbf16, #tpu.memory_space<vmem>>, %arg9: memref<128x16xf32, #tpu.memory_space<vmem>>, %arg10: memref<!tpu.dma_semaphore, #tpu.memory_space<semaphore_mem>>) attributes {dimension_semantics = [], scalar_prefetch = 0 : i64, scratch_operands = 3 : i64, tpu.core_type = #tpu.core_type<tc>} {
    tpu.enqueue_dma source(%arg1 : memref<128x128xbf16, #tpu.memory_space<any>>) target(%arg8 : memref<128x128xbf16, #tpu.memory_space<vmem>>) target_semaphore(%arg10 : memref<!tpu.dma_semaphore, #tpu.memory_space<semaphore_mem>>)
    %c0 = arith.constant 0 : index
    %c0_0 = arith.constant 0 : index
    %0 = vector.load %arg2[%c0, %c0_0] : memref<128x8xf32, #tpu.memory_space<vmem>>, vector<128x8xf32>
    %c0_1 = arith.constant 0 : index
    %c0_2 = arith.constant 0 : index
    %1 = vector.load %arg4[%c0_1, %c0_2] : memref<1x8xf32, #tpu.memory_space<vmem>>, vector<1x8xf32>
    %2 = vector.extract_strided_slice %0 {offsets = [0, 0], sizes = [128, 4], strides = [1, 1]} : vector<128x8xf32> to vector<128x4xf32>
    %3 = vector.extract_strided_slice %0 {offsets = [0, 4], sizes = [128, 4], strides = [1, 1]} : vector<128x8xf32> to vector<128x4xf32>
    %4 = arith.subf %2, %3 : vector<128x4xf32>
    %c0_3 = arith.constant 0 : index
    %c0_4 = arith.constant 0 : index
    %c0_5 = arith.constant 0 : index
    %5 = vector.load %arg3[%c0_3, %c0_4, %c0_5] : memref<3x4x8xf32, #tpu.memory_space<vmem>>, vector<1x4x8xf32>
    %6 = vector.shape_cast %5 : vector<1x4x8xf32> to vector<4x8xf32>
    %cst = arith.constant dense<0.000000e+00> : vector<128x8xf32>
    %7 = tpu.matmul %4, %6, %cst {dimension_numbers = #tpu.dot_dimension_numbers<[1], [0], [0], [1], [0, 0, 1, 1], [], []>} : vector<128x4xf32>, vector<4x8xf32>, vector<128x8xf32> -> vector<128x8xf32>
    %8 = vector.broadcast %1 : vector<1x8xf32> to vector<128x8xf32>
    %9 = arith.addf %7, %8 : vector<128x8xf32>
    %10 = vector.extract_strided_slice %0 {offsets = [0, 4], sizes = [128, 4], strides = [1, 1]} : vector<128x8xf32> to vector<128x4xf32>
    %11 = vector.extract_strided_slice %0 {offsets = [0, 0], sizes = [128, 4], strides = [1, 1]} : vector<128x8xf32> to vector<128x4xf32>
    %12 = arith.addf %10, %11 : vector<128x4xf32>
    %c0_6 = arith.constant 0 : index
    %c0_7 = arith.constant 0 : index
    %c0_8 = arith.constant 0 : index
    %13 = vector.load %arg3[%c0_6, %c0_7, %c0_8] : memref<3x4x8xf32, #tpu.memory_space<vmem>>, vector<1x4x8xf32>
    %14 = vector.shape_cast %13 : vector<1x4x8xf32> to vector<4x8xf32>
    %cst_9 = arith.constant dense<0.000000e+00> : vector<128x8xf32>
    %15 = tpu.matmul %12, %14, %cst_9 {dimension_numbers = #tpu.dot_dimension_numbers<[1], [0], [0], [1], [0, 0, 1, 1], [], []>} : vector<128x4xf32>, vector<4x8xf32>, vector<128x8xf32> -> vector<128x8xf32>
    %16 = vector.broadcast %1 : vector<1x8xf32> to vector<128x8xf32>
    %17 = arith.addf %15, %16 : vector<128x8xf32>
    %18 = arith.truncf %0 : vector<128x8xf32> to vector<128x8xbf16>
    %c0_10 = arith.constant 0 : index
    %c0_11 = arith.constant 0 : index
    %19 = vector.load %arg0[%c0_10, %c0_11] : memref<128x128xbf16, #tpu.memory_space<vmem>>, vector<128x128xbf16>
    %cst_12 = arith.constant dense<0.000000e+00> : vector<128x8xf32>
    %20 = tpu.matmul %19, %18, %cst_12 {dimension_numbers = #tpu.dot_dimension_numbers<[1], [0], [0], [1], [0, 0, 1, 1], [], []>} : vector<128x128xbf16>, vector<128x8xbf16>, vector<128x8xf32> -> vector<128x8xf32>
    tpu.wait_dma2 semaphore(%arg10 : memref<!tpu.dma_semaphore, #tpu.memory_space<semaphore_mem>>) src(%arg1 : memref<128x128xbf16, #tpu.memory_space<any>>) dst(%arg8 : memref<128x128xbf16, #tpu.memory_space<vmem>>)
    %c0_13 = arith.constant 0 : index
    %c0_14 = arith.constant 0 : index
    %21 = vector.load %arg8[%c0_13, %c0_14] : memref<128x128xbf16, #tpu.memory_space<vmem>>, vector<128x128xbf16>
    %cst_15 = arith.constant dense<0.000000e+00> : vector<128x8xf32>
    %22 = tpu.matmul %21, %18, %cst_15 {dimension_numbers = #tpu.dot_dimension_numbers<[1], [0], [0], [1], [0, 0, 1, 1], [], []>} : vector<128x128xbf16>, vector<128x8xbf16>, vector<128x8xf32> -> vector<128x8xf32>
    %23 = vector.extract_strided_slice %20 {offsets = [0, 0], sizes = [128, 4], strides = [1, 1]} : vector<128x8xf32> to vector<128x4xf32>
    %24 = vector.extract_strided_slice %22 {offsets = [0, 4], sizes = [128, 4], strides = [1, 1]} : vector<128x8xf32> to vector<128x4xf32>
    %25 = arith.subf %23, %24 : vector<128x4xf32>
    %c1 = arith.constant 1 : index
    %c0_16 = arith.constant 0 : index
    %c0_17 = arith.constant 0 : index
    %26 = vector.load %arg3[%c1, %c0_16, %c0_17] : memref<3x4x8xf32, #tpu.memory_space<vmem>>, vector<1x4x8xf32>
    %27 = vector.shape_cast %26 : vector<1x4x8xf32> to vector<4x8xf32>
    %cst_18 = arith.constant dense<0.000000e+00> : vector<128x8xf32>
    %28 = tpu.matmul %25, %27, %cst_18 {dimension_numbers = #tpu.dot_dimension_numbers<[1], [0], [0], [1], [0, 0, 1, 1], [], []>} : vector<128x4xf32>, vector<4x8xf32>, vector<128x8xf32> -> vector<128x8xf32>
    %29 = arith.addf %9, %28 : vector<128x8xf32>
    %30 = vector.extract_strided_slice %20 {offsets = [0, 4], sizes = [128, 4], strides = [1, 1]} : vector<128x8xf32> to vector<128x4xf32>
    %31 = vector.extract_strided_slice %22 {offsets = [0, 0], sizes = [128, 4], strides = [1, 1]} : vector<128x8xf32> to vector<128x4xf32>
    %32 = arith.addf %30, %31 : vector<128x4xf32>
    %c1_19 = arith.constant 1 : index
    %c0_20 = arith.constant 0 : index
    %c0_21 = arith.constant 0 : index
    %33 = vector.load %arg3[%c1_19, %c0_20, %c0_21] : memref<3x4x8xf32, #tpu.memory_space<vmem>>, vector<1x4x8xf32>
    %34 = vector.shape_cast %33 : vector<1x4x8xf32> to vector<4x8xf32>
    %cst_22 = arith.constant dense<0.000000e+00> : vector<128x8xf32>
    %35 = tpu.matmul %32, %34, %cst_22 {dimension_numbers = #tpu.dot_dimension_numbers<[1], [0], [0], [1], [0, 0, 1, 1], [], []>} : vector<128x4xf32>, vector<4x8xf32>, vector<128x8xf32> -> vector<128x8xf32>
    %36 = arith.addf %17, %35 : vector<128x8xf32>
    %c0_23 = arith.constant 0 : index
    %c0_24 = arith.constant 0 : index
    %37 = vector.load %arg0[%c0_23, %c0_24] : memref<128x128xbf16, #tpu.memory_space<vmem>>, vector<128x128xbf16>
    %38 = arith.truncf %20 : vector<128x8xf32> to vector<128x8xbf16>
    %cst_25 = arith.constant dense<0.000000e+00> : vector<128x8xf32>
    %39 = tpu.matmul %37, %38, %cst_25 {dimension_numbers = #tpu.dot_dimension_numbers<[1], [0], [0], [1], [0, 0, 1, 1], [], []>} : vector<128x128xbf16>, vector<128x8xbf16>, vector<128x8xf32> -> vector<128x8xf32>
    %cst_26 = arith.constant 2.000000e+00 : f32
    %40 = vector.broadcast %cst_26 : f32 to vector<128x8xf32>
    %41 = arith.mulf %40, %39 : vector<128x8xf32>
    %42 = arith.subf %41, %0 : vector<128x8xf32>
    %c0_27 = arith.constant 0 : index
    %c0_28 = arith.constant 0 : index
    %43 = vector.load %arg8[%c0_27, %c0_28] : memref<128x128xbf16, #tpu.memory_space<vmem>>, vector<128x128xbf16>
    %44 = arith.truncf %22 : vector<128x8xf32> to vector<128x8xbf16>
    %cst_29 = arith.constant dense<0.000000e+00> : vector<128x8xf32>
    %45 = tpu.matmul %43, %44, %cst_29 {dimension_numbers = #tpu.dot_dimension_numbers<[1], [0], [0], [1], [0, 0, 1, 1], [], []>} : vector<128x128xbf16>, vector<128x8xbf16>, vector<128x8xf32> -> vector<128x8xf32>
    %cst_30 = arith.constant 2.000000e+00 : f32
    %46 = vector.broadcast %cst_30 : f32 to vector<128x8xf32>
    %47 = arith.mulf %46, %45 : vector<128x8xf32>
    %48 = arith.subf %47, %0 : vector<128x8xf32>
    %49 = vector.extract_strided_slice %42 {offsets = [0, 0], sizes = [128, 4], strides = [1, 1]} : vector<128x8xf32> to vector<128x4xf32>
    %50 = vector.extract_strided_slice %48 {offsets = [0, 4], sizes = [128, 4], strides = [1, 1]} : vector<128x8xf32> to vector<128x4xf32>
    %51 = arith.subf %49, %50 : vector<128x4xf32>
    %c2 = arith.constant 2 : index
    %c0_31 = arith.constant 0 : index
    %c0_32 = arith.constant 0 : index
    %52 = vector.load %arg3[%c2, %c0_31, %c0_32] : memref<3x4x8xf32, #tpu.memory_space<vmem>>, vector<1x4x8xf32>
    %53 = vector.shape_cast %52 : vector<1x4x8xf32> to vector<4x8xf32>
    %cst_33 = arith.constant dense<0.000000e+00> : vector<128x8xf32>
    %54 = tpu.matmul %51, %53, %cst_33 {dimension_numbers = #tpu.dot_dimension_numbers<[1], [0], [0], [1], [0, 0, 1, 1], [], []>} : vector<128x4xf32>, vector<4x8xf32>, vector<128x8xf32> -> vector<128x8xf32>
    %55 = arith.addf %29, %54 : vector<128x8xf32>
    %56 = vector.extract_strided_slice %42 {offsets = [0, 4], sizes = [128, 4], strides = [1, 1]} : vector<128x8xf32> to vector<128x4xf32>
    %57 = vector.extract_strided_slice %48 {offsets = [0, 0], sizes = [128, 4], strides = [1, 1]} : vector<128x8xf32> to vector<128x4xf32>
    %58 = arith.addf %56, %57 : vector<128x4xf32>
    %c2_34 = arith.constant 2 : index
    %c0_35 = arith.constant 0 : index
    %c0_36 = arith.constant 0 : index
    %59 = vector.load %arg3[%c2_34, %c0_35, %c0_36] : memref<3x4x8xf32, #tpu.memory_space<vmem>>, vector<1x4x8xf32>
    %60 = vector.shape_cast %59 : vector<1x4x8xf32> to vector<4x8xf32>
    %cst_37 = arith.constant dense<0.000000e+00> : vector<128x8xf32>
    %61 = tpu.matmul %58, %60, %cst_37 {dimension_numbers = #tpu.dot_dimension_numbers<[1], [0], [0], [1], [0, 0, 1, 1], [], []>} : vector<128x4xf32>, vector<4x8xf32>, vector<128x8xf32> -> vector<128x8xf32>
    %62 = arith.addf %36, %61 : vector<128x8xf32>
    %cst_38 = arith.constant 0.000000e+00 : f32
    %63 = vector.broadcast %cst_38 : f32 to vector<128x8xf32>
    %64 = arith.cmpf oge, %55, %63 : vector<128x8xf32>
    %65 = arith.extui %64 : vector<128x8xi1> to vector<128x8xi32>
    %66 = arith.sitofp %65 : vector<128x8xi32> to vector<128x8xf32>
    %67 = arith.mulf %66, %55 : vector<128x8xf32>
    %68 = arith.mulf %66, %62 : vector<128x8xf32>
    %c0_39 = arith.constant 0 : index
    %c0_40 = arith.constant 0 : index
    %69 = vector.load %arg9[%c0_39, %c0_40] : memref<128x16xf32, #tpu.memory_space<vmem>>, vector<128x8xf32>
    tpu.vector_store %arg9[%c0_39, %c0_40], %67 {strides = array<i32>} : memref<128x16xf32, #tpu.memory_space<vmem>>, vector<128x8xf32>,
    %c0_41 = arith.constant 0 : index
    %c8 = arith.constant 8 : index
    %70 = vector.load %arg9[%c0_41, %c8] : memref<128x16xf32, #tpu.memory_space<vmem>>, vector<128x8xf32>
    tpu.vector_store %arg9[%c0_41, %c8], %68 {strides = array<i32>} : memref<128x16xf32, #tpu.memory_space<vmem>>, vector<128x8xf32>,
    %c0_42 = arith.constant 0 : index
    %c0_43 = arith.constant 0 : index
    %71 = vector.load %arg9[%c0_42, %c0_43] : memref<128x16xf32, #tpu.memory_space<vmem>>, vector<128x16xf32>
    %c0_44 = arith.constant 0 : index
    %c0_45 = arith.constant 0 : index
    %72 = vector.load %arg6[%c0_44, %c0_45] : memref<1x64xf32, #tpu.memory_space<vmem>>, vector<1x64xf32>
    %73 = vector.extract_strided_slice %71 {offsets = [0, 0], sizes = [128, 8], strides = [1, 1]} : vector<128x16xf32> to vector<128x8xf32>
    %74 = vector.extract_strided_slice %71 {offsets = [0, 8], sizes = [128, 8], strides = [1, 1]} : vector<128x16xf32> to vector<128x8xf32>
    %75 = arith.subf %73, %74 : vector<128x8xf32>
    %c0_46 = arith.constant 0 : index
    %c0_47 = arith.constant 0 : index
    %c0_48 = arith.constant 0 : index
    %76 = vector.load %arg5[%c0_46, %c0_47, %c0_48] : memref<3x8x64xf32, #tpu.memory_space<vmem>>, vector<1x8x64xf32>
    %77 = vector.shape_cast %76 : vector<1x8x64xf32> to vector<8x64xf32>
    %cst_49 = arith.constant dense<0.000000e+00> : vector<128x64xf32>
    %78 = tpu.matmul %75, %77, %cst_49 {dimension_numbers = #tpu.dot_dimension_numbers<[1], [0], [0], [1], [0, 0, 1, 1], [], []>} : vector<128x8xf32>, vector<8x64xf32>, vector<128x64xf32> -> vector<128x64xf32>
    %79 = vector.broadcast %72 : vector<1x64xf32> to vector<128x64xf32>
    %80 = arith.addf %78, %79 : vector<128x64xf32>
    %81 = vector.extract_strided_slice %71 {offsets = [0, 8], sizes = [128, 8], strides = [1, 1]} : vector<128x16xf32> to vector<128x8xf32>
    %82 = vector.extract_strided_slice %71 {offsets = [0, 0], sizes = [128, 8], strides = [1, 1]} : vector<128x16xf32> to vector<128x8xf32>
    %83 = arith.addf %81, %82 : vector<128x8xf32>
    %c0_50 = arith.constant 0 : index
    %c0_51 = arith.constant 0 : index
    %c0_52 = arith.constant 0 : index
    %84 = vector.load %arg5[%c0_50, %c0_51, %c0_52] : memref<3x8x64xf32, #tpu.memory_space<vmem>>, vector<1x8x64xf32>
    %85 = vector.shape_cast %84 : vector<1x8x64xf32> to vector<8x64xf32>
    %cst_53 = arith.constant dense<0.000000e+00> : vector<128x64xf32>
    %86 = tpu.matmul %83, %85, %cst_53 {dimension_numbers = #tpu.dot_dimension_numbers<[1], [0], [0], [1], [0, 0, 1, 1], [], []>} : vector<128x8xf32>, vector<8x64xf32>, vector<128x64xf32> -> vector<128x64xf32>
    %87 = vector.broadcast %72 : vector<1x64xf32> to vector<128x64xf32>
    %88 = arith.addf %86, %87 : vector<128x64xf32>
    %89 = arith.truncf %71 : vector<128x16xf32> to vector<128x16xbf16>
    %c0_54 = arith.constant 0 : index
    %c0_55 = arith.constant 0 : index
    %90 = vector.load %arg0[%c0_54, %c0_55] : memref<128x128xbf16, #tpu.memory_space<vmem>>, vector<128x128xbf16>
    %cst_56 = arith.constant dense<0.000000e+00> : vector<128x16xf32>
    %91 = tpu.matmul %90, %89, %cst_56 {dimension_numbers = #tpu.dot_dimension_numbers<[1], [0], [0], [1], [0, 0, 1, 1], [], []>} : vector<128x128xbf16>, vector<128x16xbf16>, vector<128x16xf32> -> vector<128x16xf32>
    %c0_57 = arith.constant 0 : index
    %c0_58 = arith.constant 0 : index
    %92 = vector.load %arg8[%c0_57, %c0_58] : memref<128x128xbf16, #tpu.memory_space<vmem>>, vector<128x128xbf16>
    %cst_59 = arith.constant dense<0.000000e+00> : vector<128x16xf32>
    %93 = tpu.matmul %92, %89, %cst_59 {dimension_numbers = #tpu.dot_dimension_numbers<[1], [0], [0], [1], [0, 0, 1, 1], [], []>} : vector<128x128xbf16>, vector<128x16xbf16>, vector<128x16xf32> -> vector<128x16xf32>
    %94 = vector.extract_strided_slice %91 {offsets = [0, 0], sizes = [128, 8], strides = [1, 1]} : vector<128x16xf32> to vector<128x8xf32>
    %95 = vector.extract_strided_slice %93 {offsets = [0, 8], sizes = [128, 8], strides = [1, 1]} : vector<128x16xf32> to vector<128x8xf32>
    %96 = arith.subf %94, %95 : vector<128x8xf32>
    %c1_60 = arith.constant 1 : index
    %c0_61 = arith.constant 0 : index
    %c0_62 = arith.constant 0 : index
    %97 = vector.load %arg5[%c1_60, %c0_61, %c0_62] : memref<3x8x64xf32, #tpu.memory_space<vmem>>, vector<1x8x64xf32>
    %98 = vector.shape_cast %97 : vector<1x8x64xf32> to vector<8x64xf32>
    %cst_63 = arith.constant dense<0.000000e+00> : vector<128x64xf32>
    %99 = tpu.matmul %96, %98, %cst_63 {dimension_numbers = #tpu.dot_dimension_numbers<[1], [0], [0], [1], [0, 0, 1, 1], [], []>} : vector<128x8xf32>, vector<8x64xf32>, vector<128x64xf32> -> vector<128x64xf32>
    %100 = arith.addf %80, %99 : vector<128x64xf32>
    %101 = vector.extract_strided_slice %91 {offsets = [0, 8], sizes = [128, 8], strides = [1, 1]} : vector<128x16xf32> to vector<128x8xf32>
    %102 = vector.extract_strided_slice %93 {offsets = [0, 0], sizes = [128, 8], strides = [1, 1]} : vector<128x16xf32> to vector<128x8xf32>
    %103 = arith.addf %101, %102 : vector<128x8xf32>
    %c1_64 = arith.constant 1 : index
    %c0_65 = arith.constant 0 : index
    %c0_66 = arith.constant 0 : index
    %104 = vector.load %arg5[%c1_64, %c0_65, %c0_66] : memref<3x8x64xf32, #tpu.memory_space<vmem>>, vector<1x8x64xf32>
    %105 = vector.shape_cast %104 : vector<1x8x64xf32> to vector<8x64xf32>
    %cst_67 = arith.constant dense<0.000000e+00> : vector<128x64xf32>
    %106 = tpu.matmul %103, %105, %cst_67 {dimension_numbers = #tpu.dot_dimension_numbers<[1], [0], [0], [1], [0, 0, 1, 1], [], []>} : vector<128x8xf32>, vector<8x64xf32>, vector<128x64xf32> -> vector<128x64xf32>
    %107 = arith.addf %88, %106 : vector<128x64xf32>
    %c0_68 = arith.constant 0 : index
    %c0_69 = arith.constant 0 : index
    %108 = vector.load %arg0[%c0_68, %c0_69] : memref<128x128xbf16, #tpu.memory_space<vmem>>, vector<128x128xbf16>
    %109 = arith.truncf %91 : vector<128x16xf32> to vector<128x16xbf16>
    %cst_70 = arith.constant dense<0.000000e+00> : vector<128x16xf32>
    %110 = tpu.matmul %108, %109, %cst_70 {dimension_numbers = #tpu.dot_dimension_numbers<[1], [0], [0], [1], [0, 0, 1, 1], [], []>} : vector<128x128xbf16>, vector<128x16xbf16>, vector<128x16xf32> -> vector<128x16xf32>
    %cst_71 = arith.constant 2.000000e+00 : f32
    %111 = vector.broadcast %cst_71 : f32 to vector<128x16xf32>
    %112 = arith.mulf %111, %110 : vector<128x16xf32>
    %113 = arith.subf %112, %71 : vector<128x16xf32>
    %c0_72 = arith.constant 0 : index
    %c0_73 = arith.constant 0 : index
    %114 = vector.load %arg8[%c0_72, %c0_73] : memref<128x128xbf16, #tpu.memory_space<vmem>>, vector<128x128xbf16>
    %115 = arith.truncf %93 : vector<128x16xf32> to vector<128x16xbf16>
    %cst_74 = arith.constant dense<0.000000e+00> : vector<128x16xf32>
    %116 = tpu.matmul %114, %115, %cst_74 {dimension_numbers = #tpu.dot_dimension_numbers<[1], [0], [0], [1], [0, 0, 1, 1], [], []>} : vector<128x128xbf16>, vector<128x16xbf16>, vector<128x16xf32> -> vector<128x16xf32>
    %cst_75 = arith.constant 2.000000e+00 : f32
    %117 = vector.broadcast %cst_75 : f32 to vector<128x16xf32>
    %118 = arith.mulf %117, %116 : vector<128x16xf32>
    %119 = arith.subf %118, %71 : vector<128x16xf32>
    %120 = vector.extract_strided_slice %113 {offsets = [0, 0], sizes = [128, 8], strides = [1, 1]} : vector<128x16xf32> to vector<128x8xf32>
    %121 = vector.extract_strided_slice %119 {offsets = [0, 8], sizes = [128, 8], strides = [1, 1]} : vector<128x16xf32> to vector<128x8xf32>
    %122 = arith.subf %120, %121 : vector<128x8xf32>
    %c2_76 = arith.constant 2 : index
    %c0_77 = arith.constant 0 : index
    %c0_78 = arith.constant 0 : index
    %123 = vector.load %arg5[%c2_76, %c0_77, %c0_78] : memref<3x8x64xf32, #tpu.memory_space<vmem>>, vector<1x8x64xf32>
    %124 = vector.shape_cast %123 : vector<1x8x64xf32> to vector<8x64xf32>
    %cst_79 = arith.constant dense<0.000000e+00> : vector<128x64xf32>
    %125 = tpu.matmul %122, %124, %cst_79 {dimension_numbers = #tpu.dot_dimension_numbers<[1], [0], [0], [1], [0, 0, 1, 1], [], []>} : vector<128x8xf32>, vector<8x64xf32>, vector<128x64xf32> -> vector<128x64xf32>
    %126 = arith.addf %100, %125 : vector<128x64xf32>
    %127 = vector.extract_strided_slice %113 {offsets = [0, 8], sizes = [128, 8], strides = [1, 1]} : vector<128x16xf32> to vector<128x8xf32>
    %128 = vector.extract_strided_slice %119 {offsets = [0, 0], sizes = [128, 8], strides = [1, 1]} : vector<128x16xf32> to vector<128x8xf32>
    %129 = arith.addf %127, %128 : vector<128x8xf32>
    %c2_80 = arith.constant 2 : index
    %c0_81 = arith.constant 0 : index
    %c0_82 = arith.constant 0 : index
    %130 = vector.load %arg5[%c2_80, %c0_81, %c0_82] : memref<3x8x64xf32, #tpu.memory_space<vmem>>, vector<1x8x64xf32>
    %131 = vector.shape_cast %130 : vector<1x8x64xf32> to vector<8x64xf32>
    %cst_83 = arith.constant dense<0.000000e+00> : vector<128x64xf32>
    %132 = tpu.matmul %129, %131, %cst_83 {dimension_numbers = #tpu.dot_dimension_numbers<[1], [0], [0], [1], [0, 0, 1, 1], [], []>} : vector<128x8xf32>, vector<8x64xf32>, vector<128x64xf32> -> vector<128x64xf32>
    %133 = arith.addf %107, %132 : vector<128x64xf32>
    %cst_84 = arith.constant 0.000000e+00 : f32
    %134 = vector.broadcast %cst_84 : f32 to vector<128x64xf32>
    %135 = arith.cmpf oge, %126, %134 : vector<128x64xf32>
    %136 = arith.extui %135 : vector<128x64xi1> to vector<128x64xi32>
    %137 = arith.sitofp %136 : vector<128x64xi32> to vector<128x64xf32>
    %138 = arith.mulf %137, %126 : vector<128x64xf32>
    %139 = arith.mulf %137, %133 : vector<128x64xf32>
    %140 = tpu.concatenate %138, %139 in 1 : vector<128x64xf32>, vector<128x64xf32> -> vector<128x128xf32>
    %c0_85 = arith.constant 0 : index
    %c0_86 = arith.constant 0 : index
    %141 = vector.load %arg7[%c0_85, %c0_86] : memref<128x128xf32, #tpu.memory_space<vmem>>, vector<128x128xf32>
    tpu.vector_store %arg7[%c0_85, %c0_86], %140 {strides = array<i32>} : memref<128x128xf32, #tpu.memory_space<vmem>>, vector<128x128xf32>,
    return
  }
}

</mosaic_0001>

<bundles_post_ra>
// kernel: custom-call
= control target key start
LH: loop header
LB: loop body
LE: loop exit
PB: predicated region body
PF: predicated region fallthrough
CT: control target
= control target key end

     0   :  { %s37_s0 = inlined_call_operand.vmem [shape: f32[8,2], index: 0, kind: input, shape index: {}]   ;;  %s38_s1 = inlined_call_operand.vmem [shape: f32[8,2], index: 1, kind: input, shape index: {}]   ;;  %s39_s2 = inlined_call_operand.vmem [shape: c64[8,2], index: 2, kind: output, shape index: {}]  }
   0x1   :  { %v5_v0 = vld [vmem:[%s37_s0] sm:$0xff] }
   0x2   :  { %v7_v1 = vld [vmem:[%s38_s1] sm:$0xff]  ;;  %6 = vst [vmem:[%s39_s2] sm:$0xff] %v5_v0 }
   0x3   :  { %9 = vst [vmem:[%s39_s2 + $0x8] sm:$0xff] %v7_v1 }

// kernel: sigmanet_link_prediction_forward.1
= control target key start
LH: loop header
LB: loop body
LE: loop exit
PB: predicated region body
PF: predicated region fallthrough
CT: control target
= control target key end

     0   :  { %s6586_s21 = smov 124   ;;  %vm234_vm0 = vcmask 1043456   ;;  %s8783_s0 = inlined_call_operand.vmem [shape: bf16[128,128], index: 0, kind: input, shape index: {}]   ;;  %s8784_s1 = inlined_call_operand.vmem [shape: bf16[128,128], index: 1, kind: input, shape index: {}]   ;;  %s8785_s2 = inlined_call_operand.vmem [shape: f32[128,8], index: 2, kind: input, shape index: {}]   ;;  %s8786_s3 = inlined_call_operand.vmem [shape: f32[3,4,8], index: 3, kind: input, shape index: {}]   ;;  %s8787_s4 = inlined_call_operand.vmem [shape: f32[1,8], index: 4, kind: input, shape index: {}]   ;;  %s8788_s5 = inlined_call_operand.vmem [shape: f32[3,8,64], index: 5, kind: input, shape index: {}]   ;;  %s8789_s6 = inlined_call_operand.vmem [shape: f32[1,64], index: 6, kind: input, shape index: {}]   ;;  %s8790_s7 = inlined_call_operand.vmem [shape: f32[128,128], index: 7, kind: output, shape index: {}]  }
   0x1   :  { %v6635_v0 = vld [vmem:[%s8784_s1] sm:$0xff]  ;;  %v6640_v1 = vld [vmem:[%s8784_s1 + $0x8] sm:$0xff]  ;;  %v6645_v2 = vld [vmem:[%s8784_s1 + $0x10] sm:$0xff] }
   0x2   :  { %v6650_v3 = vld [vmem:[%s8784_s1 + $0x18] sm:$0xff]  ;;  %v6655_v4 = vld [vmem:[%s8784_s1 + $0x20] sm:$0xff]  ;;  %v6660_v5 = vld [vmem:[%s8784_s1 + $0x28] sm:$0xff] }
   0x3   :  { %v6665_v6 = vld [vmem:[%s8784_s1 + $0x30] sm:$0xff]  ;;  %v6670_v7 = vld [vmem:[%s8784_s1 + $0x38] sm:$0xff]  ;;  %v6675_v8 = vld [vmem:[%s8785_s2] sm:$0xff] }
   0x4   :  { %8826 = vst [vmem:[#allocation7_spill] sm:$0xff] %v6670_v7  ;;  %v6680_v9 = vld [vmem:[%s8785_s2 + $0x10] sm:$0xff]  ;;  %114 = vrot.lane.b32.xlu0 %v6675_v8, %s6586_s21  ;;  %v6689_v10 = vld [vmem:[%s8785_s2 + $0x8] sm:$0xff]  ;;  %v6694_v11 = vld [vmem:[%s8785_s2 + $0x18] sm:$0xff] }
   0x5   :  { %118 = vrot.lane.b32.xlu1 %v6680_v9, %s6586_s21  ;;  %v6703_v12 = vld [vmem:[%s8785_s2 + $0x20] sm:$0xff]  ;;  %v6708_v13 = vld [vmem:[%s8785_s2 + $0x28] sm:$0xff] }
   0x6   :  { %8827 = vst [vmem:[#allocation8_spill] sm:$0xff] %v6703_v12  ;;  %8828 = vst [vmem:[#allocation9_spill] sm:$0xff] %v6708_v13 }
   0x8   :  { %116 = vrot.lane.b32.xlu0 %v6689_v10, %s6586_s21 }
   0x9   :  { %120 = vrot.lane.b32.xlu1 %v6694_v11, %s6586_s21 }
   0xa   :  { %80 = vsyncadd [#allocation4], 1024  ;;  %v178_v14 = vld [vmem:[%s8786_s3] sm:$0xf]  ;;  %v6715_v15 = vpack.c.bf16 %v6689_v10, %v6675_v8  ;;  %v6727_v17 = vld [vmem:[%s8785_s2 + $0x30] sm:$0xff]  ;;  %s6587_s29 = smov 4   ;;  %v6839_v34 = vpack.c.bf16 %v6694_v11, %v6680_v9  ;;  %v6849_v39 = vpack.c.bf16 %v6708_v13, %v6703_v12 }
   0xb   :  { %v6720_v16 = vld [vmem:[%s8787_s4] ss:$0 sm:$0xff]  ;;  %5778 = vmatprep.subr.msk.mxu0 %vm234_vm0, %v178_v14  ;;  %5804 = vmatprep.subr.msk.mxu1 %vm234_vm0, %v178_v14  ;;  %v6732_v18 = vld [vmem:[%s8785_s2 + $0x38] sm:$0xff]  ;;  %v6753_v20 = vld [vmem:[%s8785_s2 + $0x48] sm:$0xff]  ;;  %vm185_vm1 = vcmask 31744  }
   0xc   :  { %8829 = vst [vmem:[#allocation10_spill] sm:$0xff] %v6720_v16  ;;  %8830 = vst [vmem:[#allocation11_spill] sm:$0xff] %v6732_v18  ;;  %5779 = vmatpush3.msk.msra.mxu0 %vm234_vm0, %v178_v14  ;;  %5805 = vmatpush3.msk.msra.mxu1 %vm234_vm0, %v178_v14  ;;  %v6748_v19 = vld [vmem:[%s8785_s2 + $0x40] sm:$0xff]  ;;  %v6762_v21 = vld [vmem:[%s8785_s2 + $0x50] sm:$0xff]  ;;  %v6859_v44 = vpack.c.bf16 %v6732_v18, %v6727_v17 }
   0xd   :  { %122 = vrot.lane.b32.xlu0 %v6703_v12, %s6586_s21  ;;  %124 = vrot.lane.b32.xlu1 %v6708_v13, %s6586_s21  ;;  %8831 = vst [vmem:[#allocation12_spill] sm:$0xff] %v6748_v19  ;;  %8832 = vst [vmem:[#allocation13_spill] sm:$0xff] %v6753_v20  ;;  %v6767_v22 = vld [vmem:[%s8785_s2 + $0x58] sm:$0xff]  ;;  %v6776_v23 = vld [vmem:[%s8785_s2 + $0x60] sm:$0xff]  ;;  %v6869_v49 = vpack.c.bf16 %v6753_v20, %v6748_v19 }
   0xe   :  { %5830 = vmatprep.subr.bf16.mxu0 %v6715_v15  ;;  %8833 = vst [vmem:[#allocation14_spill] sm:$0xff] %v6762_v21  ;;  %8834 = vst [vmem:[#allocation15_spill] sm:$0xff] %v6767_v22  ;;  %v6781_v24 = vld [vmem:[%s8785_s2 + $0x68] sm:$0xff]  ;;  %v6790_v25 = vld [vmem:[%s8785_s2 + $0x70] sm:$0xff]  ;;  %v6879_v54 = vpack.c.bf16 %v6767_v22, %v6762_v21  ;;  %5862 = vmatprep.subr.bf16.mxu1 %v6715_v15 }
   0xf   :  { %8835 = vst [vmem:[#allocation16_spill] sm:$0xff] %v6776_v23  ;;  %8836 = vst [vmem:[#allocation17_spill] sm:$0xff] %v6781_v24  ;;  %v6795_v26 = vld [vmem:[%s8785_s2 + $0x78] sm:$0xff]  ;;  %v6889_v59 = vpack.c.bf16 %v6781_v24, %v6776_v23 }
  0x10   :  { %8837 = vst [vmem:[#allocation18_spill] sm:$0xff] %v6790_v25  ;;  %8838 = vst [vmem:[#allocation19_spill] sm:$0xff] %v6795_v26  ;;  %v6899_v14 = vpack.c.bf16 %v6795_v26, %v6790_v25 }
  0x11   :  { %126 = vrot.lane.b32.xlu0 %v6727_v17, %s6586_s21  ;;  %128 = vrot.lane.b32.xlu1 %v6732_v18, %s6586_s21 }
  0x15   :  { %130 = vrot.lane.b32.xlu0 %v6748_v19, %s6586_s21  ;;  %132 = vrot.lane.b32.xlu1 %v6753_v20, %s6586_s21 }
  0x19   :  { %134 = vrot.lane.b32.xlu0 %v6762_v21, %s6586_s21  ;;  %136 = vrot.lane.b32.xlu1 %v6767_v22, %s6586_s21 }
  0x1d   :  { %138 = vrot.lane.b32.xlu0 %v6776_v23, %s6586_s21  ;;  %140 = vrot.lane.b32.xlu1 %v6781_v24, %s6586_s21 }
  0x21   :  { %142 = vrot.lane.b32.xlu0 %v6790_v25, %s6586_s21  ;;  %144 = vrot.lane.b32.xlu1 %v6795_v26, %s6586_s21 }
  0x25   :  { %383 = vrot.lane.b32.xlu0 %v6675_v8, %s6587_s29  ;;  %385 = vrot.lane.b32.xlu1 %v6689_v10, %s6587_s29 }
  0x29   :  { %387 = vrot.lane.b32.xlu0 %v6680_v9, %s6587_s29  ;;  %389 = vrot.lane.b32.xlu1 %v6694_v11, %s6587_s29 }
  0x2d   :  { %391 = vrot.lane.b32.xlu0 %v6703_v12, %s6587_s29  ;;  %393 = vrot.lane.b32.xlu1 %v6708_v13, %s6587_s29 }
  0x31   :  { %395 = vrot.lane.b32.xlu0 %v6727_v17, %s6587_s29  ;;  %397 = vrot.lane.b32.xlu1 %v6732_v18, %s6587_s29 }
  0x35   :  { %399 = vrot.lane.b32.xlu0 %v6748_v19, %s6587_s29  ;;  %401 = vrot.lane.b32.xlu1 %v6753_v20, %s6587_s29 }
  0x39   :  { %403 = vrot.lane.b32.xlu0 %v6762_v21, %s6587_s29  ;;  %405 = vrot.lane.b32.xlu1 %v6767_v22, %s6587_s29 }
  0x3d   :  { %407 = vrot.lane.b32.xlu0 %v6776_v23, %s6587_s29  ;;  %409 = vrot.lane.b32.xlu1 %v6781_v24, %s6587_s29 }
  0x41   :  { %411 = vrot.lane.b32.xlu0 %v6790_v25, %s6587_s29  ;;  %413 = vrot.lane.b32.xlu1 %v6795_v26, %s6587_s29 }
  0x76   :  { %v115_v27 = vpop.permute.xlu0 %114 }
  0x77   :  { %v119_v28 = vpop.permute.xlu1 %118  ;;  %v162_v29 = vsub.f32 %v6675_v8, %v115_v27 }
  0x78   :  { %v164_v30 = vsub.f32 %v6680_v9, %v119_v28  ;;  %v6544_v28 = vld [vmem:[%s8783_s0] sm:$0xff]  }
  0x79   :  { %5780 = vmatprep.mubr.msk.f32.mxu0 %vm185_vm1, %v162_v29 }
  0x7a   :  { %v117_v31 = vpop.permute.xlu0 %116 }
  0x7b   :  { %v121_v32 = vpop.permute.xlu1 %120  ;;  %v163_v33 = vsub.f32 %v6689_v10, %v117_v31 }
  0x7c   :  { %v165_v35 = vsub.f32 %v6694_v11, %v121_v32 }
  0x7d   :  { %5781 = vmatmul.mubr.msk.f32.vlgmr.msra.gmra.mrb[0].mxu0 %vm185_vm1, %v163_v33  ;;  %v6545_v33 = vld [vmem:[%s8783_s0 + $0x8] sm:$0xff]  }
  0x7e   :  { %5831 = vmatpush3.bf16.msra.mxu0 %v6715_v15  ;;  %5783 = vmatprep.mubr.msk.f32.mxu0 %vm185_vm1, %v164_v30 }
  0x7f   :  { %v123_v36 = vpop.permute.xlu0 %122  ;;  %v125_v37 = vpop.permute.xlu1 %124  ;;  %5832 = vmatprep.subr.bf16.mxu0 %v6839_v34 }
  0x80   :  { %v166_v38 = vsub.f32 %v6703_v12, %v123_v36  ;;  %v167_v40 = vsub.f32 %v6708_v13, %v125_v37 }
  0x81   :  { %5784 = vmatmul.mubr.msk.f32.gmra.mrb[2].mxu0 %vm185_vm1, %v165_v35  ;;  %v6546_v35 = vld [vmem:[%s8783_s0 + $0x10] sm:$0xff]  }
  0x82   :  { %5833 = vmatpush3.bf16.msra.mxu0 %v6839_v34  ;;  %5786 = vmatprep.mubr.msk.f32.mxu0 %vm185_vm1, %v166_v38 }
  0x83   :  { %v127_v41 = vpop.permute.xlu0 %126  ;;  %v129_v42 = vpop.permute.xlu1 %128  ;;  %5834 = vmatprep.subr.bf16.mxu0 %v6849_v39 }
  0x84   :  { %v168_v43 = vsub.f32 %v6727_v17, %v127_v41  ;;  %v169_v45 = vsub.f32 %v6732_v18, %v129_v42 }
  0x85   :  { %5787 = vmatmul.mubr.msk.f32.gmra.mrb[4].mxu0 %vm185_vm1, %v167_v40 }
  0x86   :  { %5835 = vmatpush3.bf16.msra.mxu0 %v6849_v39  ;;  %5789 = vmatprep.mubr.msk.f32.mxu0 %vm185_vm1, %v168_v43 }
  0x87   :  { %v131_v46 = vpop.permute.xlu0 %130  ;;  %v133_v47 = vpop.permute.xlu1 %132  ;;  %5836 = vmatprep.subr.bf16.mxu0 %v6859_v44 }
  0x88   :  { %v170_v48 = vsub.f32 %v6748_v19, %v131_v46  ;;  %v171_v50 = vsub.f32 %v6753_v20, %v133_v47  ;;  %v6547_v46 = vld [vmem:[%s8783_s0 + $0x18] sm:$0xff]   ;;  %v6548_v47 = vld [vmem:[%s8783_s0 + $0x20] sm:$0xff]  }
  0x89   :  { %5790 = vmatmul.mubr.msk.f32.gmra.mrb[6].mxu0 %vm185_vm1, %v169_v45 }
  0x8a   :  { %5837 = vmatpush3.bf16.msra.mxu0 %v6859_v44  ;;  %5792 = vmatprep.mubr.msk.f32.mxu0 %vm185_vm1, %v170_v48 }
  0x8b   :  { %v135_v51 = vpop.permute.xlu0 %134  ;;  %v137_v52 = vpop.permute.xlu1 %136  ;;  %5838 = vmatprep.subr.bf16.mxu0 %v6869_v49 }
  0x8c   :  { %v172_v53 = vsub.f32 %v6762_v21, %v135_v51  ;;  %v173_v55 = vsub.f32 %v6767_v22, %v137_v52 }
  0x8d   :  { %5793 = vmatmul.mubr.msk.f32.gmra.mrb[8].mxu0 %vm185_vm1, %v171_v50 }
  0x8e   :  { %5839 = vmatpush3.bf16.msra.mxu0 %v6869_v49  ;;  %5795 = vmatprep.mubr.msk.f32.mxu0 %vm185_vm1, %v172_v53 }
  0x8f   :  { %v139_v56 = vpop.permute.xlu0 %138  ;;  %v141_v57 = vpop.permute.xlu1 %140  ;;  %5840 = vmatprep.subr.bf16.mxu0 %v6879_v54 }
  0x90   :  { %v174_v58 = vsub.f32 %v6776_v23, %v139_v56  ;;  %v175_v60 = vsub.f32 %v6781_v24, %v141_v57 }
  0x91   :  { %5796 = vmatmul.mubr.msk.f32.gmra.mrb[10].mxu0 %vm185_vm1, %v173_v55 }
  0x92   :  { %5841 = vmatpush3.bf16.msra.mxu0 %v6879_v54  ;;  %5798 = vmatprep.mubr.msk.f32.mxu0 %vm185_vm1, %v174_v58  ;;  %v6549_v58 = vld [vmem:[%s8783_s0 + $0x28] sm:$0xff]  }
  0x93   :  { %v143_v61 = vpop.permute.xlu0 %142  ;;  %v145_v62 = vpop.permute.xlu1 %144  ;;  %5842 = vmatprep.subr.bf16.mxu0 %v6889_v59 }
  0x94   :  { %v176_v63 = vsub.f32 %v6790_v25, %v143_v61  ;;  %v177_v27 = vsub.f32 %v6795_v26, %v145_v62 }
  0x95   :  { %5799 = vmatmul.mubr.msk.f32.gmra.mrb[12].mxu0 %vm185_vm1, %v175_v60  ;;  %v6550_v60 = vld [vmem:[%s8783_s0 + $0x30] sm:$0xff]  }
  0x96   :  { %5843 = vmatpush3.bf16.msra.mxu0 %v6889_v59  ;;  %5801 = vmatprep.mubr.msk.f32.mxu0 %vm185_vm1, %v176_v63 }
  0x97   :  { %v384_v29 = vpop.permute.xlu0 %383  ;;  %v386_v30 = vpop.permute.xlu1 %385  ;;  %5844 = vmatprep.subr.bf16.mxu0 %v6899_v14 }
  0x98   :  { %v431_v31 = vadd.f32 %v384_v29, %v6675_v8  ;;  %v432_v32 = vadd.f32 %v386_v30, %v6689_v10 }
  0x99   :  { %5802 = vmatmul.mubr.msk.f32.gmra.mrb[14].mxu0 %vm185_vm1, %v177_v27 }
  0x9a   :  { %463 = vrot.lane.b32.xlu0 %v431_v31, %s6586_s21  ;;  %5845 = vmatpush3.bf16.msra.mxu0 %v6899_v14 }
  0x9b   :  { %5846 = vmatprep.mubr.bf16.mxu0 %v6544_v28  ;;  %v388_v36 = vpop.permute.xlu0 %387  ;;  %v390_v37 = vpop.permute.xlu1 %389  ;;  %465 = vrot.lane.b32.xlu1 %v432_v32, %s6586_s21  ;;  %v6551_v32 = vld [vmem:[%s8783_s0 + $0x38] sm:$0xff]  }
  0x9c   :  { %v433_v38 = vadd.f32 %v388_v36, %v6680_v9  ;;  %v434_v40 = vadd.f32 %v390_v37, %v6694_v11 }
  0x9d   :  { %5847 = vmatmul.mubr.bf16.vlgmr.msra.gmra.mrb[16].mxu0 %v6545_v33 }
  0x9e   :  { %467 = vrot.lane.b32.xlu0 %v433_v38, %s6586_s21  ;;  %5850 = vmatprep.mubr.bf16.mxu0 %v6546_v35 }
  0x9f   :  { %v392_v41 = vpop.permute.xlu0 %391  ;;  %v394_v42 = vpop.permute.xlu1 %393  ;;  %469 = vrot.lane.b32.xlu1 %v434_v40, %s6586_s21 }
  0xa0   :  { %v435_v43 = vadd.f32 %v392_v41, %v6703_v12  ;;  %v436_v45 = vadd.f32 %v394_v42, %v6708_v13 }
  0xa2   :  { %471 = vrot.lane.b32.xlu0 %v435_v43, %s6586_s21 }
  0xa3   :  { %v396_v48 = vpop.permute.xlu0 %395  ;;  %v398_v50 = vpop.permute.xlu1 %397  ;;  %473 = vrot.lane.b32.xlu1 %v436_v45, %s6586_s21 }
  0xa4   :  { %v437_v51 = vadd.f32 %v396_v48, %v6727_v17  ;;  %v438_v52 = vadd.f32 %v398_v50, %v6732_v18 }
  0xa5   :  { %5851 = vmatmul.mubr.bf16.gmra.mrb[20].mxu0 %v6547_v46 }
  0xa6   :  { %475 = vrot.lane.b32.xlu0 %v437_v51, %s6586_s21  ;;  %5854 = vmatprep.mubr.bf16.mxu0 %v6548_v47 }
  0xa7   :  { %v400_v53 = vpop.permute.xlu0 %399  ;;  %v402_v55 = vpop.permute.xlu1 %401  ;;  %477 = vrot.lane.b32.xlu1 %v438_v52, %s6586_s21 }
  0xa8   :  { %v439_v56 = vadd.f32 %v400_v53, %v6748_v19  ;;  %v440_v57 = vadd.f32 %v402_v55, %v6753_v20 }
  0xaa   :  { %479 = vrot.lane.b32.xlu0 %v439_v56, %s6586_s21 }
  0xab   :  { %v404_v61 = vpop.permute.xlu0 %403  ;;  %v406_v62 = vpop.permute.xlu1 %405  ;;  %481 = vrot.lane.b32.xlu1 %v440_v57, %s6586_s21 }
  0xac   :  { %v441_v63 = vadd.f32 %v404_v61, %v6762_v21  ;;  %v442_v27 = vadd.f32 %v406_v62, %v6767_v22 }
  0xad   :  { %5855 = vmatmul.mubr.bf16.gmra.mrb[24].mxu0 %v6549_v58 }
  0xae   :  { %483 = vrot.lane.b32.xlu0 %v441_v63, %s6586_s21  ;;  %5858 = vmatprep.mubr.bf16.mxu0 %v6550_v60 }
  0xaf   :  { %v408_v28 = vpop.permute.xlu0 %407  ;;  %v410_v29 = vpop.permute.xlu1 %409  ;;  %485 = vrot.lane.b32.xlu1 %v442_v27, %s6586_s21 }
  0xb0   :  { %v443_v30 = vadd.f32 %v408_v28, %v6776_v23  ;;  %v444_v31 = vadd.f32 %v410_v29, %v6781_v24 }
  0xb2   :  { %487 = vrot.lane.b32.xlu0 %v443_v30, %s6586_s21 }
  0xb3   :  { %v412_v33 = vpop.permute.xlu0 %411  ;;  %v414_v35 = vpop.permute.xlu1 %413  ;;  %489 = vrot.lane.b32.xlu1 %v444_v31, %s6586_s21 }
  0xb4   :  { %v445_v36 = vadd.f32 %v412_v33, %v6790_v25  ;;  %v446_v37 = vadd.f32 %v414_v35, %v6795_v26 }
  0xb5   :  { %5859 = vmatmul.mubr.bf16.gmra.mrb[28].mxu0 %v6551_v32 }
  0xb6   :  { %491 = vrot.lane.b32.xlu0 %v445_v36, %s6586_s21 }
  0xb7   :  { %493 = vrot.lane.b32.xlu1 %v446_v37, %s6586_s21 }
 0x10c   :  { %v464_v38 = vpop.permute.xlu0 %463 }
 0x10d   :  { %5806 = vmatprep.mubr.msk.f32.mxu1 %vm185_vm1, %v464_v38  ;;  %v466_v40 = vpop.permute.xlu1 %465 }
 0x10e   :  { %5807 = vmatmul.mubr.msk.f32.vlgmr.msra.gmra.mrb[0].mxu1 %vm185_vm1, %v466_v40 }
 0x110   :  { %v468_v41 = vpop.permute.xlu0 %467 }
 0x111   :  { %5809 = vmatprep.mubr.msk.f32.mxu1 %vm185_vm1, %v468_v41  ;;  %v470_v42 = vpop.permute.xlu1 %469 }
 0x112   :  { %5810 = vmatmul.mubr.msk.f32.gmra.mrb[2].mxu1 %vm185_vm1, %v470_v42 }
 0x114   :  { %v472_v43 = vpop.permute.xlu0 %471 }
 0x115   :  { %5812 = vmatprep.mubr.msk.f32.mxu1 %vm185_vm1, %v472_v43  ;;  %v474_v45 = vpop.permute.xlu1 %473 }
 0x116   :  { %5813 = vmatmul.mubr.msk.f32.gmra.mrb[4].mxu1 %vm185_vm1, %v474_v45 }
 0x118   :  { %v476_v46 = vpop.permute.xlu0 %475 }
 0x119   :  { %5815 = vmatprep.mubr.msk.f32.mxu1 %vm185_vm1, %v476_v46  ;;  %v478_v47 = vpop.permute.xlu1 %477 }
 0x11a   :  { %5816 = vmatmul.mubr.msk.f32.gmra.mrb[6].mxu1 %vm185_vm1, %v478_v47 }
 0x11c   :  { %v480_v48 = vpop.permute.xlu0 %479 }
 0x11d   :  { %5818 = vmatprep.mubr.msk.f32.mxu1 %vm185_vm1, %v480_v48  ;;  %v482_v50 = vpop.permute.xlu1 %481 }
 0x11e   :  { %5819 = vmatmul.mubr.msk.f32.gmra.mrb[8].mxu1 %vm185_vm1, %v482_v50 }
 0x120   :  { %v484_v51 = vpop.permute.xlu0 %483 }
 0x121   :  { %5821 = vmatprep.mubr.msk.f32.mxu1 %vm185_vm1, %v484_v51  ;;  %v486_v52 = vpop.permute.xlu1 %485 }
 0x122   :  { %5822 = vmatmul.mubr.msk.f32.gmra.mrb[10].mxu1 %vm185_vm1, %v486_v52 }
 0x124   :  { %v488_v53 = vpop.permute.xlu0 %487 }
 0x125   :  { %5824 = vmatprep.mubr.msk.f32.mxu1 %vm185_vm1, %v488_v53  ;;  %v490_v55 = vpop.permute.xlu1 %489 }
 0x126   :  { %5825 = vmatmul.mubr.msk.f32.gmra.mrb[12].mxu1 %vm185_vm1, %v490_v55 }
 0x128   :  { %v492_v56 = vpop.permute.xlu0 %491 }
 0x129   :  { %5827 = vmatprep.mubr.msk.f32.mxu1 %vm185_vm1, %v492_v56  ;;  %v494_v57 = vpop.permute.xlu1 %493 }
 0x12a   :  { %5828 = vmatmul.mubr.msk.f32.gmra.mrb[14].mxu1 %vm185_vm1, %v494_v57 }
 0x12b   :  { %5878 = vmatprep.mubr.bf16.mxu1 %v6635_v0 }
 0x170   :  { %v6980_v58 = vpop.f32.mrb[16].mxu0 }
 0x171   :  { %v6982_v60 = vpop.f32.mrb[17].mxu0 }
 0x172   :  { %v6984_v61 = vpop.f32.mrb[18].mxu0 }
 0x173   :  { %v6986_v62 = vpop.f32.mrb[19].mxu0 }
 0x178   :  { %v6988_v63 = vpop.f32.mrb[20].mxu0 }
 0x179   :  { %v6990_v27 = vpop.f32.mrb[21].mxu0 }
 0x17a   :  { %v6992_v28 = vpop.f32.mrb[22].mxu0 }
 0x17b   :  { %v6994_v29 = vpop.f32.mrb[23].mxu0 }
 0x180   :  { %v6996_v30 = vpop.f32.mrb[24].mxu0 }
 0x181   :  { %v6998_v31 = vpop.f32.mrb[25].mxu0 }
 0x182   :  { %v7000_v32 = vpop.f32.mrb[26].mxu0 }
 0x183   :  { %v7002_v33 = vpop.f32.mrb[27].mxu0 }
 0x188   :  { %v7004_v35 = vpop.f32.mrb[28].mxu0 }
 0x189   :  { %v7006_v36 = vpop.f32.mrb[29].mxu0 }
 0x18a   :  { %v7008_v37 = vpop.f32.mrb[30].mxu0 }
 0x18b   :  { %v7010_v38 = vpop.f32.mrb[31].mxu0 }
 0x18c   :  { %6584 = dma.done.wait [#allocation4], 1024 }
 0x18d   :  { %6585 = vsyncadd [#allocation4], 4294966272  ;;  %5863 = vmatpush3.bf16.msra.mxu1 %v6715_v15  ;;  %v5228_v15 = vld [vmem:[%s8786_s3 + $0x4] sm:$0xf]  ;;  %vm2566_vm3 = vcmask 64512   ;;  %s6590_s17 = smov 120  }
 0x18e   :  { %5864 = vmatprep.subr.bf16.mxu1 %v6839_v34  ;;  %5894 = vmatprep.subr.msk.mxu0 %vm234_vm0, %v5228_v15 }
 0x18f   :  { %5895 = vmatpush3.msk.msra.mxu0 %vm234_vm0, %v5228_v15 }
 0x191   :  { %5865 = vmatpush3.bf16.msra.mxu1 %v6839_v34 }
 0x192   :  { %5866 = vmatprep.subr.bf16.mxu1 %v6849_v39 }
 0x195   :  { %5867 = vmatpush3.bf16.msra.mxu1 %v6849_v39 }
 0x196   :  { %5868 = vmatprep.subr.bf16.mxu1 %v6859_v44 }
 0x199   :  { %5869 = vmatpush3.bf16.msra.mxu1 %v6859_v44 }
 0x19a   :  { %5870 = vmatprep.subr.bf16.mxu1 %v6869_v49 }
 0x19d   :  { %5871 = vmatpush3.bf16.msra.mxu1 %v6869_v49 }
 0x19e   :  { %5872 = vmatprep.subr.bf16.mxu1 %v6879_v54 }
 0x1a1   :  { %5873 = vmatpush3.bf16.msra.mxu1 %v6879_v54 }
 0x1a2   :  { %5874 = vmatprep.subr.bf16.mxu1 %v6889_v59 }
 0x1a5   :  { %5875 = vmatpush3.bf16.msra.mxu1 %v6889_v59 }
 0x1a6   :  { %5876 = vmatprep.subr.bf16.mxu1 %v6899_v14 }
 0x1a9   :  { %5877 = vmatpush3.bf16.msra.mxu1 %v6899_v14 }
 0x1aa   :  { %5920 = vmatprep.subr.msk.mxu1 %vm234_vm0, %v5228_v15 }
 0x1ac   :  { %5879 = vmatmul.mubr.bf16.vlgmr.msra.gmra.mrb[16].mxu1 %v6640_v1 }
 0x1ad   :  { %5882 = vmatprep.mubr.bf16.mxu1 %v6645_v2  ;;  %5921 = vmatpush3.msk.msra.mxu1 %vm234_vm0, %v5228_v15 }
 0x1b4   :  { %5883 = vmatmul.mubr.bf16.gmra.mrb[20].mxu1 %v6650_v3 }
 0x1b5   :  { %5886 = vmatprep.mubr.bf16.mxu1 %v6655_v4 }
 0x1bc   :  { %5887 = vmatmul.mubr.bf16.gmra.mrb[24].mxu1 %v6660_v5 }
 0x1bd   :  { %5890 = vmatprep.mubr.bf16.mxu1 %v6665_v6 }
 0x1c4   :  { %5891 = vmatmul.mubr.bf16.gmra.mrb[28].mxu1 %v6670_v7 }
 0x27f   :  { %v7043_v34 = vpop.f32.mrb[16].mxu1 }
 0x280   :  { %1248 = vrot.lane.b32.xlu1 %v7043_v34, %s6587_s29  ;;  %v7047_v39 = vpop.f32.mrb[17].mxu1 }
 0x281   :  { %1244 = vrot.lane.b32.xlu0 %v7047_v39, %s6587_s29  ;;  %v7051_v44 = vpop.f32.mrb[18].mxu1 }
 0x282   :  { %v7055_v49 = vpack.c.bf16 %v7051_v44, %v7043_v34  ;;  %v7057_v54 = vpop.f32.mrb[19].mxu1 }
 0x283   :  { %v7061_v59 = vpack.c.bf16 %v7057_v54, %v7047_v39 }
 0x284   :  { %1250 = vrot.lane.b32.xlu1 %v7051_v44, %s6587_s29 }
 0x285   :  { %1246 = vrot.lane.b32.xlu0 %v7057_v54, %s6587_s29  ;;  %5978 = vmatprep.subr.bf16.mxu1 %v7061_v59 }
 0x287   :  { %v7068_v14 = vpop.f32.mrb[20].mxu1 }
 0x288   :  { %v7070_v40 = vpop.f32.mrb[21].mxu1 }
 0x289   :  { %1252 = vrot.lane.b32.xlu0 %v7070_v40, %s6587_s29  ;;  %v7074_v41 = vpop.f32.mrb[22].mxu1 }
 0x28a   :  { %v7078_v42 = vpack.c.bf16 %v7074_v41, %v7068_v14  ;;  %v7080_v43 = vpop.f32.mrb[23].mxu1 }
 0x28b   :  { %v7084_v45 = vpack.c.bf16 %v7080_v43, %v7070_v40  ;;  %1254 = vrot.lane.b32.xlu1 %v7080_v43, %s6587_s29 }
 0x28d   :  { %1256 = vrot.lane.b32.xlu0 %v7068_v14, %s6587_s29 }
 0x28f   :  { %1258 = vrot.lane.b32.xlu1 %v7074_v41, %s6587_s29  ;;  %v7092_v46 = vpop.f32.mrb[24].mxu1 }
 0x290   :  { %v7094_v47 = vpop.f32.mrb[25].mxu1 }
 0x291   :  { %1260 = vrot.lane.b32.xlu0 %v7094_v47, %s6587_s29  ;;  %v7098_v48 = vpop.f32.mrb[26].mxu1 }
 0x292   :  { %v7102_v50 = vpack.c.bf16 %v7098_v48, %v7092_v46  ;;  %v7104_v51 = vpop.f32.mrb[27].mxu1 }
 0x293   :  { %v7108_v52 = vpack.c.bf16 %v7104_v51, %v7094_v47  ;;  %1262 = vrot.lane.b32.xlu1 %v7104_v51, %s6587_s29 }
 0x295   :  { %1264 = vrot.lane.b32.xlu0 %v7092_v46, %s6587_s29 }
 0x297   :  { %1266 = vrot.lane.b32.xlu1 %v7098_v48, %s6587_s29  ;;  %v7116_v53 = vpop.f32.mrb[28].mxu1 }
 0x298   :  { %v7118_v55 = vpop.f32.mrb[29].mxu1 }
 0x299   :  { %1268 = vrot.lane.b32.xlu0 %v7118_v55, %s6587_s29  ;;  %v7122_v56 = vpop.f32.mrb[30].mxu1 }
 0x29a   :  { %v7126_v57 = vpack.c.bf16 %v7122_v56, %v7116_v53  ;;  %v7128_v15 = vpop.f32.mrb[31].mxu1 }
 0x29b   :  { %v7132_v16 = vpack.c.bf16 %v7128_v15, %v7118_v55  ;;  %1270 = vrot.lane.b32.xlu1 %v7128_v15, %s6587_s29 }
 0x29d   :  { %1272 = vrot.lane.b32.xlu0 %v7116_v53, %s6587_s29 }
 0x29f   :  { %1274 = vrot.lane.b32.xlu1 %v7122_v56, %s6587_s29 }
 0x2f2   :  { %v1249_v24 = vpop.permute.xlu1 %1248 }
 0x2f3   :  { %v1245_v26 = vpop.permute.xlu0 %1244  ;;  %v1294_v20 = vadd.f32 %v6980_v58, %v1249_v24 }
 0x2f4   :  { %v1292_v23 = vadd.f32 %v1245_v26, %v6982_v60 }
 0x2f6   :  { %1324 = vrot.lane.b32.xlu0 %v1292_v23, %s6586_s21  ;;  %v1251_v19 = vpop.permute.xlu1 %1250 }
 0x2f7   :  { %v1247_v25 = vpop.permute.xlu0 %1246  ;;  %v1295_v18 = vadd.f32 %v6984_v61, %v1251_v19 }
 0x2f8   :  { %v1293_v22 = vadd.f32 %v1247_v25, %v6986_v62 }
 0x2fa   :  { %1328 = vrot.lane.b32.xlu0 %v1294_v20, %s6586_s21  ;;  %1326 = vrot.lane.b32.xlu1 %v1293_v22, %s6586_s21 }
 0x2fb   :  { %v1253_v21 = vpop.permute.xlu0 %1252 }
 0x2fc   :  { %v1296_v13 = vadd.f32 %v1253_v21, %v6990_v27 }
 0x2fd   :  { %v1255_v12 = vpop.permute.xlu1 %1254 }
 0x2fe   :  { %1332 = vrot.lane.b32.xlu0 %v1296_v13, %s6586_s21  ;;  %1330 = vrot.lane.b32.xlu1 %v1295_v18, %s6586_s21  ;;  %v1297_v25 = vadd.f32 %v1255_v12, %v6994_v29 }
 0x2ff   :  { %v1257_v23 = vpop.permute.xlu0 %1256 }
 0x300   :  { %v1298_v24 = vadd.f32 %v6988_v63, %v1257_v23 }
 0x301   :  { %v1259_v26 = vpop.permute.xlu1 %1258 }
 0x302   :  { %1336 = vrot.lane.b32.xlu0 %v1298_v24, %s6586_s21  ;;  %1334 = vrot.lane.b32.xlu1 %v1297_v25, %s6586_s21  ;;  %v1299_v19 = vadd.f32 %v6992_v28, %v1259_v26 }
 0x303   :  { %v1261_v20 = vpop.permute.xlu0 %1260 }
 0x304   :  { %v1300_v21 = vadd.f32 %v1261_v20, %v6998_v31 }
 0x305   :  { %v1263_v22 = vpop.permute.xlu1 %1262 }
 0x306   :  { %1340 = vrot.lane.b32.xlu0 %v1300_v21, %s6586_s21  ;;  %1338 = vrot.lane.b32.xlu1 %v1299_v19, %s6586_s21  ;;  %v1301_v12 = vadd.f32 %v1263_v22, %v7002_v33 }
 0x307   :  { %v1265_v13 = vpop.permute.xlu0 %1264 }
 0x308   :  { %v1302_v18 = vadd.f32 %v6996_v30, %v1265_v13 }
 0x309   :  { %v1267_v23 = vpop.permute.xlu1 %1266 }
 0x30a   :  { %1344 = vrot.lane.b32.xlu0 %v1302_v18, %s6586_s21  ;;  %1342 = vrot.lane.b32.xlu1 %v1301_v12, %s6586_s21  ;;  %v1303_v26 = vadd.f32 %v7000_v32, %v1267_v23  ;;  %v1566_v12 = vpack.c.bf16 %v6984_v61, %v6980_v58 }
 0x30b   :  { %v1269_v24 = vpop.permute.xlu0 %1268 }
 0x30c   :  { %v1304_v25 = vadd.f32 %v1269_v24, %v7006_v36 }
 0x30d   :  { %v1271_v20 = vpop.permute.xlu1 %1270 }
 0x30e   :  { %1348 = vrot.lane.b32.xlu0 %v1304_v25, %s6586_s21  ;;  %1346 = vrot.lane.b32.xlu1 %v1303_v26, %s6586_s21  ;;  %v1305_v22 = vadd.f32 %v1271_v20, %v7010_v38 }
 0x30f   :  { %v1273_v21 = vpop.permute.xlu0 %1272 }
 0x310   :  { %v1306_v19 = vadd.f32 %v7004_v35, %v1273_v21 }
 0x311   :  { %v1275_v13 = vpop.permute.xlu1 %1274 }
 0x312   :  { %1352 = vrot.lane.b32.xlu0 %v1306_v19, %s6586_s21  ;;  %1350 = vrot.lane.b32.xlu1 %v1305_v22, %s6586_s21  ;;  %v1307_v18 = vadd.f32 %v7008_v37, %v1275_v13 }
 0x316   :  { %966 = vrot.lane.b32.xlu0 %v7047_v39, %s6586_s21  ;;  %1354 = vrot.lane.b32.xlu1 %v1307_v18, %s6586_s21 }
 0x31a   :  { %970 = vrot.lane.b32.xlu0 %v7043_v34, %s6586_s21  ;;  %968 = vrot.lane.b32.xlu1 %v7057_v54, %s6586_s21  ;;  %v7196_v34 = vpack.c.bf16 %v6986_v62, %v6982_v60 }
 0x31c   :  { %5946 = vmatprep.subr.bf16.mxu0 %v7196_v34 }
 0x31e   :  { %974 = vrot.lane.b32.xlu0 %v7070_v40, %s6586_s21  ;;  %972 = vrot.lane.b32.xlu1 %v7051_v44, %s6586_s21 }
 0x322   :  { %978 = vrot.lane.b32.xlu0 %v7068_v14, %s6586_s21  ;;  %976 = vrot.lane.b32.xlu1 %v7080_v43, %s6586_s21 }
 0x326   :  { %982 = vrot.lane.b32.xlu0 %v7094_v47, %s6586_s21  ;;  %980 = vrot.lane.b32.xlu1 %v7074_v41, %s6586_s21 }
 0x32a   :  { %986 = vrot.lane.b32.xlu0 %v7092_v46, %s6586_s21  ;;  %984 = vrot.lane.b32.xlu1 %v7104_v51, %s6586_s21 }
 0x32e   :  { %990 = vrot.lane.b32.xlu0 %v7118_v55, %s6586_s21  ;;  %988 = vrot.lane.b32.xlu1 %v7098_v48, %s6586_s21 }
 0x332   :  { %994 = vrot.lane.b32.xlu0 %v7116_v53, %s6586_s21  ;;  %992 = vrot.lane.b32.xlu1 %v7128_v15, %s6586_s21 }
 0x336   :  { %996 = vrot.lane.b32.xlu1 %v7122_v56, %s6586_s21 }
 0x368   :  { %v1325_v39 = vpop.permute.xlu0 %1324 }
 0x369   :  { %5922 = vmatprep.mubr.msk.f32.mxu1 %vm185_vm1, %v1325_v39 }
 0x36c   :  { %v1329_v44 = vpop.permute.xlu0 %1328  ;;  %v1327_v54 = vpop.permute.xlu1 %1326 }
 0x36d   :  { %5923 = vmatmul.mubr.msk.f32.vlgmr.msra.gmra.mrb[0].mxu1 %vm185_vm1, %v1327_v54 }
 0x36e   :  { %5979 = vmatpush3.bf16.msra.mxu1 %v7061_v59  ;;  %5925 = vmatprep.mubr.msk.f32.mxu1 %vm185_vm1, %v1329_v44 }
 0x36f   :  { %5980 = vmatprep.subr.bf16.mxu1 %v7055_v49 }
 0x370   :  { %v1333_v14 = vpop.permute.xlu0 %1332  ;;  %v1331_v40 = vpop.permute.xlu1 %1330 }
 0x371   :  { %5926 = vmatmul.mubr.msk.f32.gmra.mrb[2].mxu1 %vm185_vm1, %v1331_v40 }
 0x372   :  { %5981 = vmatpush3.bf16.msra.mxu1 %v7055_v49  ;;  %5928 = vmatprep.mubr.msk.f32.mxu1 %vm185_vm1, %v1333_v14 }
 0x373   :  { %5982 = vmatprep.subr.bf16.mxu1 %v7084_v45 }
 0x374   :  { %v1337_v41 = vpop.permute.xlu0 %1336  ;;  %v1335_v43 = vpop.permute.xlu1 %1334 }
 0x375   :  { %5929 = vmatmul.mubr.msk.f32.gmra.mrb[4].mxu1 %vm185_vm1, %v1335_v43  ;;  %v6552_v43 = vld [vmem:[%s8783_s0] sm:$0xff]  }
 0x376   :  { %5983 = vmatpush3.bf16.msra.mxu1 %v7084_v45  ;;  %5931 = vmatprep.mubr.msk.f32.mxu1 %vm185_vm1, %v1337_v41 }
 0x377   :  { %5984 = vmatprep.subr.bf16.mxu1 %v7078_v42 }
 0x378   :  { %v1341_v59 = vpop.permute.xlu0 %1340  ;;  %v1339_v46 = vpop.permute.xlu1 %1338 }
 0x379   :  { %5932 = vmatmul.mubr.msk.f32.gmra.mrb[6].mxu1 %vm185_vm1, %v1339_v46  ;;  %v6555_v46 = vld [vmem:[%s8783_s0 + $0x18] sm:$0xff]  }
 0x37a   :  { %5985 = vmatpush3.bf16.msra.mxu1 %v7078_v42  ;;  %5934 = vmatprep.mubr.msk.f32.mxu1 %vm185_vm1, %v1341_v59 }
 0x37b   :  { %5986 = vmatprep.subr.bf16.mxu1 %v7108_v52 }
 0x37c   :  { %v1345_v49 = vpop.permute.xlu0 %1344  ;;  %v1343_v47 = vpop.permute.xlu1 %1342 }
 0x37d   :  { %5935 = vmatmul.mubr.msk.f32.gmra.mrb[8].mxu1 %vm185_vm1, %v1343_v47  ;;  %v6558_v47 = vld [vmem:[%s8783_s0 + $0x30] sm:$0xff]  }
 0x37e   :  { %5987 = vmatpush3.bf16.msra.mxu1 %v7108_v52  ;;  %5937 = vmatprep.mubr.msk.f32.mxu1 %vm185_vm1, %v1345_v49  ;;  %v6557_v49 = vld [vmem:[%s8783_s0 + $0x28] sm:$0xff]  }
 0x37f   :  { %5988 = vmatprep.subr.bf16.mxu1 %v7102_v50 }
 0x380   :  { %v1349_v45 = vpop.permute.xlu0 %1348  ;;  %v1347_v48 = vpop.permute.xlu1 %1346 }
 0x381   :  { %5938 = vmatmul.mubr.msk.f32.gmra.mrb[10].mxu1 %vm185_vm1, %v1347_v48 }
 0x382   :  { %5989 = vmatpush3.bf16.msra.mxu1 %v7102_v50  ;;  %5940 = vmatprep.mubr.msk.f32.mxu1 %vm185_vm1, %v1349_v45  ;;  %v6559_v45 = vld [vmem:[%s8783_s0 + $0x38] sm:$0xff]  }
 0x383   :  { %5990 = vmatprep.subr.bf16.mxu1 %v7132_v16 }
 0x384   :  { %v1353_v42 = vpop.permute.xlu0 %1352  ;;  %v1351_v51 = vpop.permute.xlu1 %1350 }
 0x385   :  { %5941 = vmatmul.mubr.msk.f32.gmra.mrb[12].mxu1 %vm185_vm1, %v1351_v51 }
 0x386   :  { %5991 = vmatpush3.bf16.msra.mxu1 %v7132_v16  ;;  %5943 = vmatprep.mubr.msk.f32.mxu1 %vm185_vm1, %v1353_v42 }
 0x387   :  { %5992 = vmatprep.subr.bf16.mxu1 %v7126_v57 }
 0x388   :  { %v967_v52 = vpop.permute.xlu0 %966  ;;  %v1355_v53 = vpop.permute.xlu1 %1354 }
 0x389   :  { %5944 = vmatmul.mubr.msk.f32.gmra.mrb[14].mxu1 %vm185_vm1, %v1355_v53  ;;  %v1014_v50 = vsub.f32 %v6982_v60, %v967_v52 }
 0x38a   :  { %5993 = vmatpush3.bf16.msra.mxu1 %v7126_v57  ;;  %5994 = vmatprep.mubr.bf16.mxu1 %v6635_v0 }
 0x38b   :  { %5896 = vmatprep.mubr.msk.f32.mxu0 %vm185_vm1, %v1014_v50 }
 0x38c   :  { %v971_v55 = vpop.permute.xlu0 %970  ;;  %v969_v56 = vpop.permute.xlu1 %968 }
 0x38d   :  { %v1016_v16 = vsub.f32 %v6980_v58, %v971_v55  ;;  %v1015_v15 = vsub.f32 %v6986_v62, %v969_v56  ;;  %5995 = vmatmul.mubr.bf16.vlgmr.msra.gmra.mrb[32].mxu1 %v6640_v1  ;;  %v1567_v62 = vpack.c.bf16 %v6994_v29, %v6990_v27 }
 0x38e   :  { %5998 = vmatprep.mubr.bf16.mxu1 %v6645_v2 }
 0x38f   :  { %5897 = vmatmul.mubr.msk.f32.vlgmr.msra.gmra.mrb[0].mxu0 %vm185_vm1, %v1015_v15 }
 0x390   :  { %v975_v60 = vpop.permute.xlu0 %974  ;;  %v973_v57 = vpop.permute.xlu1 %972  ;;  %5899 = vmatprep.mubr.msk.f32.mxu0 %vm185_vm1, %v1016_v16  ;;  %5947 = vmatpush3.bf16.msra.mxu0 %v7196_v34 }
 0x391   :  { %v1018_v23 = vsub.f32 %v6990_v27, %v975_v60  ;;  %v1017_v24 = vsub.f32 %v6984_v61, %v973_v57  ;;  %5948 = vmatprep.subr.bf16.mxu0 %v1566_v12  ;;  %v1568_v61 = vpack.c.bf16 %v6992_v28, %v6988_v63 }
 0x393   :  { %5900 = vmatmul.mubr.msk.f32.gmra.mrb[2].mxu0 %vm185_vm1, %v1017_v24 }
 0x394   :  { %v979_v58 = vpop.permute.xlu0 %978  ;;  %v977_v25 = vpop.permute.xlu1 %976  ;;  %5902 = vmatprep.mubr.msk.f32.mxu0 %vm185_vm1, %v1018_v23  ;;  %5949 = vmatpush3.bf16.msra.mxu0 %v1566_v12 }
 0x395   :  { %v1020_v26 = vsub.f32 %v6988_v63, %v979_v58  ;;  %v1019_v20 = vsub.f32 %v6994_v29, %v977_v25  ;;  %5999 = vmatmul.mubr.bf16.gmra.mrb[36].mxu1 %v6650_v3  ;;  %5950 = vmatprep.subr.bf16.mxu0 %v1567_v62  ;;  %v1569_v29 = vpack.c.bf16 %v7002_v33, %v6998_v31 }
 0x396   :  { %6002 = vmatprep.mubr.bf16.mxu1 %v6655_v4 }
 0x397   :  { %5903 = vmatmul.mubr.msk.f32.gmra.mrb[4].mxu0 %vm185_vm1, %v1019_v20 }
 0x398   :  { %v983_v27 = vpop.permute.xlu0 %982  ;;  %v981_v21 = vpop.permute.xlu1 %980  ;;  %5905 = vmatprep.mubr.msk.f32.mxu0 %vm185_vm1, %v1020_v26  ;;  %5951 = vmatpush3.bf16.msra.mxu0 %v1567_v62 }
 0x399   :  { %v1022_v19 = vsub.f32 %v6998_v31, %v983_v27  ;;  %v1021_v22 = vsub.f32 %v6992_v28, %v981_v21  ;;  %5952 = vmatprep.subr.bf16.mxu0 %v1568_v61  ;;  %v1570_v28 = vpack.c.bf16 %v7000_v32, %v6996_v30  ;;  %v8839_v27 = vld [vmem:[#allocation8_spill] sm:$0xff] }
 0x39b   :  { %5906 = vmatmul.mubr.msk.f32.gmra.mrb[6].mxu0 %vm185_vm1, %v1021_v22 }
 0x39c   :  { %v987_v63 = vpop.permute.xlu0 %986  ;;  %v985_v13 = vpop.permute.xlu1 %984  ;;  %5908 = vmatprep.mubr.msk.f32.mxu0 %vm185_vm1, %v1022_v19  ;;  %5953 = vmatpush3.bf16.msra.mxu0 %v1568_v61  ;;  %v8840_v19 = vld [vmem:[#allocation11_spill] sm:$0xff] }
 0x39d   :  { %v1024_v18 = vsub.f32 %v6996_v30, %v987_v63  ;;  %v1023_v34 = vsub.f32 %v7002_v33, %v985_v13  ;;  %6003 = vmatmul.mubr.bf16.gmra.mrb[40].mxu1 %v6660_v5  ;;  %5954 = vmatprep.subr.bf16.mxu0 %v1569_v29  ;;  %v1571_v33 = vpack.c.bf16 %v7010_v38, %v7006_v36 }
 0x39e   :  { %6006 = vmatprep.mubr.bf16.mxu1 %v6665_v6 }
 0x39f   :  { %5909 = vmatmul.mubr.msk.f32.gmra.mrb[8].mxu0 %vm185_vm1, %v1023_v34 }
 0x3a0   :  { %v991_v31 = vpop.permute.xlu0 %990  ;;  %v989_v39 = vpop.permute.xlu1 %988  ;;  %5911 = vmatprep.mubr.msk.f32.mxu0 %vm185_vm1, %v1024_v18  ;;  %5955 = vmatpush3.bf16.msra.mxu0 %v1569_v29  ;;  %v8841_v29 = vld [vmem:[#allocation9_spill] sm:$0xff] }
 0x3a1   :  { %v1026_v44 = vsub.f32 %v7006_v36, %v991_v31  ;;  %v1025_v54 = vsub.f32 %v7000_v32, %v989_v39  ;;  %5956 = vmatprep.subr.bf16.mxu0 %v1570_v28  ;;  %v1572_v32 = vpack.c.bf16 %v7008_v37, %v7004_v35  ;;  %v8842_v39 = vld [vmem:[#allocation14_spill] sm:$0xff] }
 0x3a3   :  { %5912 = vmatmul.mubr.msk.f32.gmra.mrb[10].mxu0 %vm185_vm1, %v1025_v54 }
 0x3a4   :  { %v995_v30 = vpop.permute.xlu0 %994  ;;  %v993_v14 = vpop.permute.xlu1 %992  ;;  %5914 = vmatprep.mubr.msk.f32.mxu0 %vm185_vm1, %v1026_v44  ;;  %5957 = vmatpush3.bf16.msra.mxu0 %v1570_v28 }
 0x3a5   :  { %v1028_v40 = vsub.f32 %v7004_v35, %v995_v30  ;;  %v1027_v41 = vsub.f32 %v7010_v38, %v993_v14  ;;  %6007 = vmatmul.mubr.bf16.gmra.mrb[44].mxu1 %v6670_v7  ;;  %5958 = vmatprep.subr.bf16.mxu0 %v1571_v33  ;;  %v6553_v38 = vld [vmem:[%s8783_s0 + $0x8] sm:$0xff]   ;;  %v6554_v35 = vld [vmem:[%s8783_s0 + $0x10] sm:$0xff]  }
 0x3a6   :  { %v8843_v14 = vld [vmem:[#allocation12_spill] sm:$0xff] }
 0x3a7   :  { %5915 = vmatmul.mubr.msk.f32.gmra.mrb[12].mxu0 %vm185_vm1, %v1027_v41  ;;  %v8844_v41 = vld [vmem:[#allocation15_spill] sm:$0xff] }
 0x3a8   :  { %v997_v36 = vpop.permute.xlu1 %996  ;;  %5917 = vmatprep.mubr.msk.f32.mxu0 %vm185_vm1, %v1028_v40  ;;  %5959 = vmatpush3.bf16.msra.mxu0 %v1571_v33 }
 0x3a9   :  { %v1029_v59 = vsub.f32 %v7008_v37, %v997_v36  ;;  %5960 = vmatprep.subr.bf16.mxu0 %v1572_v32  ;;  %v6556_v37 = vld [vmem:[%s8783_s0 + $0x20] sm:$0xff]   ;;  %v8845_v36 = vld [vmem:[#allocation13_spill] sm:$0xff] }
 0x3ab   :  { %5918 = vmatmul.mubr.msk.f32.gmra.mrb[14].mxu0 %vm185_vm1, %v1029_v59 }
 0x3ac   :  { %5961 = vmatpush3.bf16.msra.mxu0 %v1572_v32  ;;  %5962 = vmatprep.mubr.bf16.mxu0 %v6552_v43 }
 0x3af   :  { %5963 = vmatmul.mubr.bf16.vlgmr.msra.gmra.mrb[32].mxu0 %v6553_v38 }
 0x3b0   :  { %5966 = vmatprep.mubr.bf16.mxu0 %v6554_v35 }
 0x3b7   :  { %5967 = vmatmul.mubr.bf16.gmra.mrb[36].mxu0 %v6555_v46 }
 0x3b8   :  { %5970 = vmatprep.mubr.bf16.mxu0 %v6556_v37 }
 0x3bf   :  { %5971 = vmatmul.mubr.bf16.gmra.mrb[40].mxu0 %v6557_v49  ;;  %v5271_v49 = vld [vmem:[%s8786_s3 + $0x8] sm:$0xf] }
 0x3c0   :  { %5974 = vmatprep.mubr.bf16.mxu0 %v6558_v47  ;;  %v8846_v47 = vld [vmem:[#allocation18_spill] sm:$0xff]  ;;  %6010 = vmatprep.subr.msk.mxu0 %vm234_vm0, %v5271_v49 }
 0x3c1   :  { %6011 = vmatpush3.msk.msra.mxu0 %vm234_vm0, %v5271_v49  ;;  %6036 = vmatprep.subr.msk.mxu1 %vm234_vm0, %v5271_v49 }
 0x3c2   :  { %6037 = vmatpush3.msk.msra.mxu1 %vm234_vm0, %v5271_v49 }
 0x3c7   :  { %5975 = vmatmul.mubr.bf16.gmra.mrb[44].mxu0 %v6559_v45 }
 0x460   :  { %v5996_v48 = vpop.f32.mrb[32].mxu1 }
 0x461   :  { %v1857_v42 = vmul.f32 2.0, %v5996_v48  ;;  %v1792_v51 = vpop.f32.mrb[33].mxu1 }
 0x462   :  { %v5997_v52 = vpop.f32.mrb[34].mxu1  ;;  %v1855_v50 = vmul.f32 2.0, %v1792_v51 }
 0x463   :  { %v7320_v53 = vsub.f32 %v1857_v42, %v6680_v9  ;;  %v1858_v55 = vmul.f32 2.0, %v5997_v52  ;;  %v1795_v56 = vpop.f32.mrb[35].mxu1  ;;  %v8847_v52 = vld [vmem:[#allocation16_spill] sm:$0xff] }
 0x464   :  { %v1856_v15 = vmul.f32 2.0, %v1795_v56  ;;  %v1871_v12 = vsub.f32 %v1855_v50, %v6675_v8 }
 0x465   :  { %v7323_v16 = vsub.f32 %v1858_v55, %v6694_v11  ;;  %2185 = vrot.lane.b32.xlu0 %v7320_v53, %s6587_s29  ;;  %v8848_v55 = vld [vmem:[#allocation19_spill] sm:$0xff] }
 0x466   :  { %v1872_v57 = vsub.f32 %v1856_v15, %v6689_v10  ;;  %v8849_v15 = vld [vmem:[#allocation17_spill] sm:$0xff] }
 0x467   :  { %2187 = vrot.lane.b32.xlu1 %v7323_v16, %s6587_s29 }
 0x468   :  { %v6000_v60 = vpop.f32.mrb[36].mxu1 }
 0x469   :  { %v1861_v23 = vmul.f32 2.0, %v6000_v60  ;;  %2181 = vrot.lane.b32.xlu0 %v1871_v12, %s6587_s29  ;;  %v1808_v24 = vpop.f32.mrb[37].mxu1 }
 0x46a   :  { %v1859_v62 = vmul.f32 2.0, %v1808_v24  ;;  %v6001_v58 = vpop.f32.mrb[38].mxu1 }
 0x46b   :  { %v7333_v25 = vsub.f32 %v1861_v23, %v6727_v17  ;;  %v1862_v26 = vmul.f32 2.0, %v6001_v58  ;;  %2183 = vrot.lane.b32.xlu1 %v1872_v57, %s6587_s29  ;;  %v1811_v20 = vpop.f32.mrb[39].mxu1 }
 0x46c   :  { %v1860_v61 = vmul.f32 2.0, %v1811_v20  ;;  %v1875_v21 = vsub.f32 %v1859_v62, %v8839_v27 }
 0x46d   :  { %v7338_v22 = vsub.f32 %v1862_v26, %v8840_v19  ;;  %2193 = vrot.lane.b32.xlu0 %v7333_v25, %s6587_s29 }
 0x46e   :  { %v1876_v63 = vsub.f32 %v1860_v61, %v8841_v29 }
 0x46f   :  { %2195 = vrot.lane.b32.xlu1 %v7338_v22, %s6587_s29 }
 0x470   :  { %v6004_v13 = vpop.f32.mrb[40].mxu1 }
 0x471   :  { %v1865_v18 = vmul.f32 2.0, %v6004_v13  ;;  %2189 = vrot.lane.b32.xlu0 %v1875_v21, %s6587_s29  ;;  %v1824_v34 = vpop.f32.mrb[41].mxu1 }
 0x472   :  { %v1863_v28 = vmul.f32 2.0, %v1824_v34  ;;  %v6005_v31 = vpop.f32.mrb[42].mxu1 }
 0x473   :  { %v1881_v44 = vsub.f32 %v1865_v18, %v8842_v39  ;;  %v1866_v54 = vmul.f32 2.0, %v6005_v31  ;;  %2191 = vrot.lane.b32.xlu1 %v1876_v63, %s6587_s29  ;;  %v1827_v33 = vpop.f32.mrb[43].mxu1 }
 0x474   :  { %v1864_v30 = vmul.f32 2.0, %v1827_v33  ;;  %v1879_v40 = vsub.f32 %v1863_v28, %v8843_v14 }
 0x475   :  { %v1882_v32 = vsub.f32 %v1866_v54, %v8844_v41  ;;  %2201 = vrot.lane.b32.xlu0 %v1881_v44, %s6587_s29 }
 0x476   :  { %v1880_v43 = vsub.f32 %v1864_v30, %v8845_v36 }
 0x477   :  { %2203 = vrot.lane.b32.xlu1 %v1882_v32, %s6587_s29 }
 0x478   :  { %v6008_v59 = vpop.f32.mrb[44].mxu1 }
 0x479   :  { %v1869_v38 = vmul.f32 2.0, %v6008_v59  ;;  %2197 = vrot.lane.b32.xlu0 %v1879_v40, %s6587_s29  ;;  %v1840_v35 = vpop.f32.mrb[45].mxu1 }
 0x47a   :  { %v1867_v46 = vmul.f32 2.0, %v1840_v35  ;;  %v6009_v37 = vpop.f32.mrb[46].mxu1 }
 0x47b   :  { %v1885_v45 = vsub.f32 %v1869_v38, %v8846_v47  ;;  %v1870_v48 = vmul.f32 2.0, %v6009_v37  ;;  %2199 = vrot.lane.b32.xlu1 %v1880_v43, %s6587_s29  ;;  %v1843_v42 = vpop.f32.mrb[47].mxu1 }
 0x47c   :  { %v1868_v51 = vmul.f32 2.0, %v1843_v42  ;;  %v1883_v50 = vsub.f32 %v1867_v46, %v8847_v52 }
 0x47d   :  { %v1886_v56 = vsub.f32 %v1870_v48, %v8848_v55  ;;  %2209 = vrot.lane.b32.xlu0 %v1885_v45, %s6587_s29 }
 0x47e   :  { %v1884_v60 = vsub.f32 %v1868_v51, %v8849_v15 }
 0x47f   :  { %2211 = vrot.lane.b32.xlu1 %v1886_v56, %s6587_s29 }
 0x481   :  { %2205 = vrot.lane.b32.xlu0 %v1883_v50, %s6587_s29 }
 0x482   :  { %v5964_v23 = vpop.f32.mrb[32].mxu0 }
 0x483   :  { %2207 = vrot.lane.b32.xlu1 %v1884_v60, %s6587_s29  ;;  %v1655_v24 = vpop.f32.mrb[33].mxu0  ;;  %s6589_s29 = smov 8  }
 0x484   :  { %v5965_v62 = vpop.f32.mrb[34].mxu0 }
 0x485   :  { %1903 = vrot.lane.b32.xlu0 %v1871_v12, %s6586_s21  ;;  %v1658_v58 = vpop.f32.mrb[35].mxu0  ;;  %v1721_v30 = vmul.f32 2.0, %v5965_v62 }
 0x486   :  { %v1719_v38 = vmul.f32 2.0, %v1658_v58 }
 0x487   :  { %1905 = vrot.lane.b32.xlu1 %v1872_v57, %s6586_s21  ;;  %v7409_v59 = vsub.f32 %v1721_v30, %v6694_v11 }
 0x488   :  { %v1735_v49 = vsub.f32 %v1719_v38, %v6689_v10 }
 0x489   :  { %1907 = vrot.lane.b32.xlu0 %v7320_v53, %s6586_s21 }
 0x48a   :  { %v5968_v26 = vpop.f32.mrb[36].mxu0 }
 0x48b   :  { %v1671_v20 = vpop.f32.mrb[37].mxu0 }
 0x48c   :  { %v5969_v61 = vpop.f32.mrb[38].mxu0  ;;  %v1722_v48 = vmul.f32 2.0, %v1671_v20 }
 0x48d   :  { %1909 = vrot.lane.b32.xlu0 %v7323_v16, %s6586_s21  ;;  %v1674_v13 = vpop.f32.mrb[39].mxu0 }
 0x48e   :  { %v1723_v62 = vmul.f32 2.0, %v1674_v13 }
 0x491   :  { %1911 = vrot.lane.b32.xlu0 %v1875_v21, %s6586_s21 }
 0x492   :  { %v5972_v18 = vpop.f32.mrb[40].mxu0 }
 0x493   :  { %v7377_v34 = vpop.f32.mrb[41].mxu0 }
 0x494   :  { %v7379_v28 = vpop.f32.mrb[42].mxu0  ;;  %v1726_v13 = vmul.f32 2.0, %v7377_v34 }
 0x495   :  { %1913 = vrot.lane.b32.xlu0 %v1876_v63, %s6586_s21  ;;  %v7382_v12 = vpop.f32.mrb[43].mxu0 }
 0x496   :  { %v1742_v30 = vsub.f32 %v1726_v13, %v8843_v14 }
 0x499   :  { %1915 = vrot.lane.b32.xlu0 %v7333_v25, %s6586_s21  ;;  %v1720_v25 = vmul.f32 2.0, %v5964_v23 }
 0x49a   :  { %v5976_v53 = vpop.f32.mrb[44].mxu0 }
 0x49b   :  { %v7386_v57 = vpop.f32.mrb[45].mxu0  ;;  %v7403_v21 = vsub.f32 %v1720_v25, %v6680_v9  ;;  %v1724_v9 = vmul.f32 2.0, %v5968_v26  ;;  %v1732_v23 = vmul.f32 2.0, %v5976_v53  ;;  %v1728_v25 = vmul.f32 2.0, %v5972_v18 }
 0x49c   :  { %v7388_v31 = vpop.f32.mrb[46].mxu0 }
 0x49d   :  { %1917 = vrot.lane.b32.xlu0 %v7338_v22, %s6586_s21  ;;  %v7392_v16 = vpop.f32.mrb[47].mxu0  ;;  %v1718_v22 = vmul.f32 2.0, %v1655_v24  ;;  %v7426_v26 = vsub.f32 %v1732_v23, %v8846_v47 }
 0x4a1   :  { %1919 = vrot.lane.b32.xlu0 %v1879_v40, %s6586_s21 }
 0x4a5   :  { %1921 = vrot.lane.b32.xlu0 %v1880_v43, %s6586_s21 }
 0x4a9   :  { %1923 = vrot.lane.b32.xlu0 %v1881_v44, %s6586_s21  ;;  %v1734_v44 = vsub.f32 %v1718_v22, %v6675_v8  ;;  %v7415_v8 = vsub.f32 %v1724_v9, %v6727_v17  ;;  %v1727_v9 = vmul.f32 2.0, %v7382_v12 }
 0x4ad   :  { %1925 = vrot.lane.b32.xlu0 %v1882_v32, %s6586_s21 }
 0x4b1   :  { %1927 = vrot.lane.b32.xlu0 %v1883_v50, %s6586_s21 }
 0x4b5   :  { %1931 = vrot.lane.b32.xlu0 %v1885_v45, %s6586_s21 }
 0x4b9   :  { %1929 = vrot.lane.b32.xlu0 %v1884_v60, %s6586_s21  ;;  %v1725_v60 = vmul.f32 2.0, %v5969_v61 }
 0x4bb   :  { %v7423_v17 = vsub.f32 %v1725_v60, %v8840_v19  ;;  %v7433_v19 = vsub.f32 %v1728_v25, %v8842_v39 }
 0x4bd   :  { %1933 = vrot.lane.b32.xlu0 %v1886_v56, %s6586_s21  ;;  %v1738_v56 = vsub.f32 %v1722_v48, %v8839_v27  ;;  %v1739_v27 = vsub.f32 %v1723_v62, %v8841_v29 }
 0x4d7   :  { %v2186_v63 = vpop.permute.xlu0 %2185 }
 0x4d8   :  { %v2231_v54 = vadd.f32 %v2186_v63, %v7403_v21 }
 0x4d9   :  { %v2188_v33 = vpop.permute.xlu1 %2187 }
 0x4da   :  { %2265 = vrot.lane.b32.xlu1 %v2231_v54, %s6586_s21  ;;  %v2232_v46 = vadd.f32 %v2188_v33, %v7409_v59 }
 0x4db   :  { %v2182_v40 = vpop.permute.xlu0 %2181 }
 0x4dc   :  { %v2229_v32 = vadd.f32 %v2182_v40, %v1734_v44  ;;  %v1729_v40 = vmul.f32 2.0, %v7379_v28  ;;  %v1743_v28 = vsub.f32 %v1727_v9, %v8845_v36 }
 0x4dd   :  { %v2184_v43 = vpop.permute.xlu1 %2183 }
 0x4de   :  { %2261 = vrot.lane.b32.xlu1 %v2229_v32, %s6586_s21  ;;  %v2230_v42 = vadd.f32 %v2184_v43, %v1735_v49  ;;  %v1745_v34 = vsub.f32 %v1729_v40, %v8844_v41 }
 0x4df   :  { %v2194_v35 = vpop.permute.xlu0 %2193 }
 0x4e0   :  { %v2235_v51 = vadd.f32 %v2194_v35, %v7415_v8 }
 0x4e1   :  { %v2196_v37 = vpop.permute.xlu1 %2195 }
 0x4e2   :  { %2267 = vrot.lane.b32.xlu1 %v2232_v46, %s6586_s21  ;;  %v2236_v61 = vadd.f32 %v2196_v37, %v7423_v17 }
 0x4e3   :  { %v2190_v45 = vpop.permute.xlu0 %2189 }
 0x4e4   :  { %v2233_v58 = vadd.f32 %v2190_v45, %v1738_v56 }
 0x4e5   :  { %v2192_v11 = vpop.permute.xlu1 %2191 }
 0x4e6   :  { %2263 = vrot.lane.b32.xlu1 %v2230_v42, %s6586_s21  ;;  %v2234_v54 = vadd.f32 %v2192_v11, %v1739_v27 }
 0x4e7   :  { %v2202_v50 = vpop.permute.xlu0 %2201 }
 0x4e8   :  { %v2239_v29 = vadd.f32 %v2202_v50, %v7433_v19 }
 0x4e9   :  { %v2204_v24 = vpop.permute.xlu1 %2203 }
 0x4ea   :  { %2273 = vrot.lane.b32.xlu1 %v2235_v51, %s6586_s21 }
 0x4eb   :  { %v2198_v10 = vpop.permute.xlu0 %2197 }
 0x4ec   :  { %v2237_v46 = vadd.f32 %v2198_v10, %v1742_v30 }
 0x4ed   :  { %v2200_v20 = vpop.permute.xlu1 %2199 }
 0x4ee   :  { %2269 = vrot.lane.b32.xlu1 %v2233_v58, %s6586_s21  ;;  %v2238_v48 = vadd.f32 %v2200_v20, %v1743_v28 }
 0x4ef   :  { %v2210_v22 = vpop.permute.xlu0 %2209 }
 0x4f0   :  { %v2243_v53 = vadd.f32 %v2210_v22, %v7426_v26 }
 0x4f1   :  { %v2212_v63 = vpop.permute.xlu1 %2211 }
 0x4f2   :  { %2275 = vrot.lane.b32.xlu1 %v2236_v61, %s6586_s21  ;;  %2289 = vrot.lane.b32.xlu0 %v2243_v53, %s6586_s21 }
 0x4f3   :  { %v2206_v47 = vpop.permute.xlu0 %2205 }
 0x4f5   :  { %v2208_v18 = vpop.permute.xlu1 %2207 }
 0x4f6   :  { %2271 = vrot.lane.b32.xlu1 %v2234_v54, %s6586_s21 }
 0x4f7   :  { %v1904_v33 = vpop.permute.xlu0 %1903 }
 0x4f8   :  { %v1951_v39 = vsub.f32 %v1734_v44, %v1904_v33  ;;  %v1730_v44 = vmul.f32 2.0, %v7386_v57  ;;  %v1733_v57 = vmul.f32 2.0, %v7388_v31 }
 0x4f9   :  { %v1906_v32 = vpop.permute.xlu1 %1905 }
 0x4fa   :  { %v1952_v43 = vsub.f32 %v1735_v49, %v1906_v32  ;;  %6012 = vmatprep.mubr.msk.f32.mxu0 %vm185_vm1, %v1951_v39  ;;  %2281 = vrot.lane.b32.xlu1 %v2239_v29, %s6586_s21  ;;  %v2240_v49 = vadd.f32 %v2204_v24, %v1745_v34  ;;  %v1746_v12 = vsub.f32 %v1730_v44, %v8847_v52 }
 0x4fb   :  { %v1908_v38 = vpop.permute.xlu0 %1907 }
 0x4fc   :  { %v1953_v35 = vsub.f32 %v7403_v21, %v1908_v38  ;;  %6013 = vmatmul.mubr.msk.f32.vlgmr.msra.gmra.mrb[0].mxu0 %vm185_vm1, %v1952_v43  ;;  %v1731_v21 = vmul.f32 2.0, %v7392_v16  ;;  %v2241_v11 = vadd.f32 %v2206_v47, %v1746_v12  ;;  %v1749_v16 = vsub.f32 %v1733_v57, %v8848_v55 }
 0x4fe   :  { %6015 = vmatprep.mubr.msk.f32.mxu0 %vm185_vm1, %v1953_v35  ;;  %2277 = vrot.lane.b32.xlu1 %v2237_v46, %s6586_s21  ;;  %v8850_v46 = vld [vmem:[#allocation10_spill] sm:$0xff] }
 0x4ff   :  { %v1910_v14 = vpop.permute.xlu0 %1909 }
 0x500   :  { %v1954_v37 = vsub.f32 %v7409_v59, %v1910_v14  ;;  %v1747_v59 = vsub.f32 %v1731_v21, %v8849_v15  ;;  %v2244_v15 = vadd.f32 %v2212_v63, %v1749_v16 }
 0x502   :  { %6016 = vmatmul.mubr.msk.f32.gmra.mrb[2].mxu0 %vm185_vm1, %v1954_v37  ;;  %2283 = vrot.lane.b32.xlu1 %v2240_v49, %s6586_s21  ;;  %v2242_v50 = vadd.f32 %v2208_v18, %v1747_v59  ;;  %v8814_v37 = vmov 0.0  }
 0x503   :  { %v1912_v41 = vpop.permute.xlu0 %1911 }
 0x504   :  { %v1955_v45 = vsub.f32 %v1738_v56, %v1912_v41 }
 0x506   :  { %6018 = vmatprep.mubr.msk.f32.mxu0 %vm185_vm1, %v1955_v45  ;;  %2279 = vrot.lane.b32.xlu1 %v2238_v48, %s6586_s21 }
 0x507   :  { %v1914_v36 = vpop.permute.xlu0 %1913 }
 0x508   :  { %v1956_v42 = vsub.f32 %v1739_v27, %v1914_v36 }
 0x50a   :  { %6019 = vmatmul.mubr.msk.f32.gmra.mrb[4].mxu0 %vm185_vm1, %v1956_v42  ;;  %2285 = vrot.lane.b32.xlu1 %v2241_v11, %s6586_s21 }
 0x50b   :  { %v1916_v52 = vpop.permute.xlu0 %1915 }
 0x50c   :  { %v1957_v51 = vsub.f32 %v7415_v8, %v1916_v52 }
 0x50e   :  { %6021 = vmatprep.mubr.msk.f32.mxu0 %vm185_vm1, %v1957_v51  ;;  %2287 = vrot.lane.b32.xlu1 %v2242_v50, %s6586_s21 }
 0x50f   :  { %v1918_v56 = vpop.permute.xlu0 %1917 }
 0x510   :  { %v1958_v31 = vsub.f32 %v7423_v17, %v1918_v56 }
 0x512   :  { %6022 = vmatmul.mubr.msk.f32.gmra.mrb[6].mxu0 %vm185_vm1, %v1958_v31  ;;  %2291 = vrot.lane.b32.xlu1 %v2244_v15, %s6586_s21 }
 0x513   :  { %v1920_v60 = vpop.permute.xlu0 %1919 }
 0x514   :  { %v1959_v23 = vsub.f32 %v1742_v30, %v1920_v60 }
 0x516   :  { %6024 = vmatprep.mubr.msk.f32.mxu0 %vm185_vm1, %v1959_v23 }
 0x517   :  { %v1922_v55 = vpop.permute.xlu0 %1921 }
 0x518   :  { %v1960_v24 = vsub.f32 %v1743_v28, %v1922_v55 }
 0x51a   :  { %6025 = vmatmul.mubr.msk.f32.gmra.mrb[8].mxu0 %vm185_vm1, %v1960_v24 }
 0x51b   :  { %v1924_v8 = vpop.permute.xlu0 %1923 }
 0x51c   :  { %v1961_v10 = vsub.f32 %v7433_v19, %v1924_v8 }
 0x51e   :  { %6027 = vmatprep.mubr.msk.f32.mxu0 %vm185_vm1, %v1961_v10 }
 0x51f   :  { %v1926_v62 = vpop.permute.xlu0 %1925 }
 0x520   :  { %v1962_v17 = vsub.f32 %v1745_v34, %v1926_v62 }
 0x522   :  { %6028 = vmatmul.mubr.msk.f32.gmra.mrb[10].mxu0 %vm185_vm1, %v1962_v17 }
 0x523   :  { %v1928_v58 = vpop.permute.xlu0 %1927 }
 0x524   :  { %v1963_v20 = vsub.f32 %v1746_v12, %v1928_v58 }
 0x526   :  { %6030 = vmatprep.mubr.msk.f32.mxu0 %vm185_vm1, %v1963_v20 }
 0x527   :  { %v1932_v25 = vpop.permute.xlu0 %1931 }
 0x528   :  { %v1965_v61 = vsub.f32 %v7426_v26, %v1932_v25 }
 0x52b   :  { %v1930_v22 = vpop.permute.xlu0 %1929 }
 0x52c   :  { %v1964_v27 = vsub.f32 %v1747_v59, %v1930_v22 }
 0x52e   :  { %6031 = vmatmul.mubr.msk.f32.gmra.mrb[12].mxu0 %vm185_vm1, %v1964_v27 }
 0x52f   :  { %v1934_v53 = vpop.permute.xlu0 %1933  ;;  %6033 = vmatprep.mubr.msk.f32.mxu0 %vm185_vm1, %v1965_v61 }
 0x530   :  { %v1966_v63 = vsub.f32 %v1749_v16, %v1934_v53 }
 0x532   :  { %6034 = vmatmul.mubr.msk.f32.gmra.mrb[14].mxu0 %vm185_vm1, %v1966_v63 }
 0x54c   :  { %v2266_v19 = vpop.permute.xlu1 %2265 }
 0x550   :  { %v2262_v47 = vpop.permute.xlu1 %2261 }
 0x551   :  { %6038 = vmatprep.mubr.msk.f32.mxu1 %vm185_vm1, %v2262_v47 }
 0x554   :  { %v2268_v13 = vpop.permute.xlu1 %2267 }
 0x558   :  { %v2264_v54 = vpop.permute.xlu1 %2263 }
 0x559   :  { %6039 = vmatmul.mubr.msk.f32.vlgmr.msra.gmra.mrb[0].mxu1 %vm185_vm1, %v2264_v54 }
 0x55a   :  { %6041 = vmatprep.mubr.msk.f32.mxu1 %vm185_vm1, %v2266_v19 }
 0x55c   :  { %v2274_v18 = vpop.permute.xlu1 %2273 }
 0x55d   :  { %6042 = vmatmul.mubr.msk.f32.gmra.mrb[2].mxu1 %vm185_vm1, %v2268_v13 }
 0x560   :  { %v2270_v26 = vpop.permute.xlu1 %2269 }
 0x561   :  { %6044 = vmatprep.mubr.msk.f32.mxu1 %vm185_vm1, %v2270_v26 }
 0x564   :  { %v2276_v29 = vpop.permute.xlu1 %2275  ;;  %v2290_v34 = vpop.permute.xlu0 %2289 }
 0x568   :  { %v2272_v33 = vpop.permute.xlu1 %2271 }
 0x569   :  { %6045 = vmatmul.mubr.msk.f32.gmra.mrb[4].mxu1 %vm185_vm1, %v2272_v33 }
 0x56a   :  { %6047 = vmatprep.mubr.msk.f32.mxu1 %vm185_vm1, %v2274_v18 }
 0x56c   :  { %v2282_v30 = vpop.permute.xlu1 %2281 }
 0x56d   :  { %6048 = vmatmul.mubr.msk.f32.gmra.mrb[6].mxu1 %vm185_vm1, %v2276_v29 }
 0x570   :  { %v2278_v40 = vpop.permute.xlu1 %2277 }
 0x571   :  { %6050 = vmatprep.mubr.msk.f32.mxu1 %vm185_vm1, %v2278_v40 }
 0x574   :  { %v2284_v39 = vpop.permute.xlu1 %2283 }
 0x578   :  { %v2280_v32 = vpop.permute.xlu1 %2279 }
 0x579   :  { %6051 = vmatmul.mubr.msk.f32.gmra.mrb[8].mxu1 %vm185_vm1, %v2280_v32 }
 0x57a   :  { %6053 = vmatprep.mubr.msk.f32.mxu1 %vm185_vm1, %v2282_v30 }
 0x57c   :  { %v2286_v43 = vpop.permute.xlu1 %2285 }
 0x57d   :  { %6054 = vmatmul.mubr.msk.f32.gmra.mrb[10].mxu1 %vm185_vm1, %v2284_v39 }
 0x57e   :  { %6056 = vmatprep.mubr.msk.f32.mxu1 %vm185_vm1, %v2286_v43 }
 0x580   :  { %v2288_v38 = vpop.permute.xlu1 %2287 }
 0x581   :  { %6057 = vmatmul.mubr.msk.f32.gmra.mrb[12].mxu1 %vm185_vm1, %v2288_v38 }
 0x582   :  { %6059 = vmatprep.mubr.msk.f32.mxu1 %vm185_vm1, %v2290_v34 }
 0x584   :  { %v2292_v9 = vpop.permute.xlu1 %2291 }
 0x585   :  { %6060 = vmatmul.mubr.msk.f32.gmra.mrb[14].mxu1 %vm185_vm1, %v2292_v9 }
 0x5cf   :  { %v6014_v35 = vpop.f32.mrb[0].mxu0 }
 0x5d0   :  { %v6346_v14 = vadd.f32 %v6014_v35, %v8850_v46  ;;  %v2086_v28 = vpop.f32.mrb[1].mxu0 }
 0x5d1   :  { %v6347_v44 = vadd.f32 %v8850_v46, %v2086_v28 }
 0x5d2   :  { %vm2487_vm2 = vcmp.ge.f32.partialorder %v6346_v14, 0.0 }
 0x5d3   :  { %v7499_v49 = vsel %vm2487_vm2, 1.0, %v8814_v37  ;;  %vm2486_vm4 = vcmp.ge.f32.partialorder %v6347_v44, 0.0 }
 0x5d4   :  { %v2535_v41 = vmul.f32 %v6346_v14, %v7499_v49  ;;  %v7503_v12 = vsel %vm2486_vm4, 1.0, %v8814_v37  ;;  %vm2647_vm4 = vcmask 130112  }
 0x5d5   :  { %v2534_v21 = vmul.f32 %v6347_v44, %v7503_v12  ;;  %v6017_v45 = vpop.f32.mrb[2].mxu0 }
 0x5d6   :  { %2568 = vst.msk [vmem:[#allocation3 + $0x8] sm:$0xff] %vm2566_vm3, %v2535_v41  ;;  %v6348_v48 = vadd.f32 %v6017_v45, %v8850_v46  ;;  %v2096_v36 = vpop.f32.mrb[3].mxu0 }
 0x5d7   :  { %2567 = vst.msk [vmem:[#allocation3] sm:$0xff] %vm2566_vm3, %v2534_v21  ;;  %v6349_v57 = vadd.f32 %v8850_v46, %v2096_v36 }
 0x5d8   :  { %vm2489_vm5 = vcmp.ge.f32.partialorder %v6348_v48, 0.0 }
 0x5d9   :  { %v7511_v59 = vsel %vm2489_vm5, 1.0, %v8814_v37  ;;  %vm2488_vm6 = vcmp.ge.f32.partialorder %v6349_v57, 0.0 }
 0x5da   :  { %v2537_v42 = vmul.f32 %v6348_v48, %v7511_v59  ;;  %v7515_v11 = vsel %vm2488_vm6, 1.0, %v8814_v37 }
 0x5db   :  { %v2536_v52 = vmul.f32 %v6349_v57, %v7515_v11 }
 0x5dc   :  { %2570 = vst.msk [vmem:[#allocation3 + $0x18] sm:$0xff] %vm2566_vm3, %v2537_v42 }
 0x5dd   :  { %2569 = vst.msk [vmem:[#allocation3 + $0x10] sm:$0xff] %vm2566_vm3, %v2536_v52  ;;  %v6020_v16 = vpop.f32.mrb[4].mxu0  ;;  %v2761_v52 = vld [vmem:[%s8788_s5] sm:$0xff] }
 0x5de   :  { %v6350_v51 = vadd.f32 %v6020_v16, %v8850_v46  ;;  %v2106_v50 = vpop.f32.mrb[5].mxu0  ;;  %6062 = vmatprep.subr.mxu0 %v2761_v52  ;;  %6088 = vmatprep.subr.mxu1 %v2761_v52 }
 0x5df   :  { %v6351_v56 = vadd.f32 %v8850_v46, %v2106_v50  ;;  %6063 = vmatpush3.msra.mxu0 %v2761_v52  ;;  %6089 = vmatpush3.msra.mxu1 %v2761_v52 }
 0x5e0   :  { %vm2491_vm7 = vcmp.ge.f32.partialorder %v6350_v51, 0.0 }
 0x5e1   :  { %v7523_v31 = vsel %vm2491_vm7, 1.0, %v8814_v37  ;;  %vm2490_vm8 = vcmp.ge.f32.partialorder %v6351_v56, 0.0 }
 0x5e2   :  { %v2539_v15 = vmul.f32 %v6350_v51, %v7523_v31  ;;  %v7527_v60 = vsel %vm2490_vm8, 1.0, %v8814_v37 }
 0x5e3   :  { %v2538_v23 = vmul.f32 %v6351_v56, %v7527_v60 }
 0x5e4   :  { %2572 = vst.msk [vmem:[#allocation3 + $0x28] sm:$0xff] %vm2566_vm3, %v2539_v15 }
 0x5e5   :  { %2571 = vst.msk [vmem:[#allocation3 + $0x20] sm:$0xff] %vm2566_vm3, %v2538_v23  ;;  %v6023_v55 = vpop.f32.mrb[6].mxu0 }
 0x5e6   :  { %v6352_v24 = vadd.f32 %v6023_v55, %v8850_v46  ;;  %v2116_v8 = vpop.f32.mrb[7].mxu0 }
 0x5e7   :  { %v6353_v10 = vadd.f32 %v8850_v46, %v2116_v8 }
 0x5e8   :  { %vm2493_vm9 = vcmp.ge.f32.partialorder %v6352_v24, 0.0 }
 0x5e9   :  { %v7535_v62 = vsel %vm2493_vm9, 1.0, %v8814_v37  ;;  %vm2492_vm10 = vcmp.ge.f32.partialorder %v6353_v10, 0.0 }
 0x5ea   :  { %v2541_v17 = vmul.f32 %v6352_v24, %v7535_v62  ;;  %v7539_v58 = vsel %vm2492_vm10, 1.0, %v8814_v37 }
 0x5eb   :  { %v2540_v20 = vmul.f32 %v6353_v10, %v7539_v58 }
 0x5ec   :  { %2574 = vst.msk [vmem:[#allocation3 + $0x38] sm:$0xff] %vm2566_vm3, %v2541_v17 }
 0x5ed   :  { %2573 = vst.msk [vmem:[#allocation3 + $0x30] sm:$0xff] %vm2566_vm3, %v2540_v20  ;;  %v6026_v25 = vpop.f32.mrb[8].mxu0 }
 0x5ee   :  { %v6354_v22 = vadd.f32 %v6026_v25, %v8850_v46  ;;  %v2126_v27 = vpop.f32.mrb[9].mxu0 }
 0x5ef   :  { %v6355_v61 = vadd.f32 %v8850_v46, %v2126_v27 }
 0x5f0   :  { %vm2495_vm11 = vcmp.ge.f32.partialorder %v6354_v22, 0.0 }
 0x5f1   :  { %v7547_v53 = vsel %vm2495_vm11, 1.0, %v8814_v37  ;;  %vm2494_vm12 = vcmp.ge.f32.partialorder %v6355_v61, 0.0 }
 0x5f2   :  { %v2543_v63 = vmul.f32 %v6354_v22, %v7547_v53  ;;  %v7551_v19 = vsel %vm2494_vm12, 1.0, %v8814_v37 }
 0x5f3   :  { %v2542_v47 = vmul.f32 %v6355_v61, %v7551_v19 }
 0x5f4   :  { %2576 = vst.msk [vmem:[#allocation3 + $0x48] sm:$0xff] %vm2566_vm3, %v2543_v63 }
 0x5f5   :  { %2575 = vst.msk [vmem:[#allocation3 + $0x40] sm:$0xff] %vm2566_vm3, %v2542_v47  ;;  %v6029_v13 = vpop.f32.mrb[10].mxu0 }
 0x5f6   :  { %v6356_v54 = vadd.f32 %v6029_v13, %v8850_v46  ;;  %v2136_v18 = vpop.f32.mrb[11].mxu0 }
 0x5f7   :  { %v6357_v26 = vadd.f32 %v8850_v46, %v2136_v18 }
 0x5f8   :  { %vm2497_vm13 = vcmp.ge.f32.partialorder %v6356_v54, 0.0 }
 0x5f9   :  { %v7559_v29 = vsel %vm2497_vm13, 1.0, %v8814_v37  ;;  %vm2496_vm14 = vcmp.ge.f32.partialorder %v6357_v26, 0.0 }
 0x5fa   :  { %v2545_v33 = vmul.f32 %v6356_v54, %v7559_v29  ;;  %v7563_v30 = vsel %vm2496_vm14, 1.0, %v8814_v37 }
 0x5fb   :  { %v2544_v40 = vmul.f32 %v6357_v26, %v7563_v30 }
 0x5fc   :  { %2578 = vst.msk [vmem:[#allocation3 + $0x58] sm:$0xff] %vm2566_vm3, %v2545_v33 }
 0x5fd   :  { %2577 = vst.msk [vmem:[#allocation3 + $0x50] sm:$0xff] %vm2566_vm3, %v2544_v40 }
 0x601   :  { %v6032_v39 = vpop.f32.mrb[12].mxu0 }
 0x602   :  { %v6358_v32 = vadd.f32 %v6032_v39, %v8850_v46  ;;  %v2146_v43 = vpop.f32.mrb[13].mxu0 }
 0x603   :  { %v6359_v38 = vadd.f32 %v8850_v46, %v2146_v43 }
 0x604   :  { %vm2499_vm15 = vcmp.ge.f32.partialorder %v6358_v32, 0.0 }
 0x605   :  { %v7571_v34 = vsel %vm2499_vm15, 1.0, %v8814_v37  ;;  %vm2498_vm0 = vcmp.ge.f32.partialorder %v6359_v38, 0.0  ;;  %v6035_v9 = vpop.f32.mrb[14].mxu0 }
 0x606   :  { %v2547_v35 = vmul.f32 %v6358_v32, %v7571_v34  ;;  %v7575_v14 = vsel %vm2498_vm0, 1.0, %v8814_v37  ;;  %v6360_v28 = vadd.f32 %v6035_v9, %v8850_v46  ;;  %v2156_v44 = vpop.f32.mrb[15].mxu0 }
 0x607   :  { %v2546_v41 = vmul.f32 %v6359_v38, %v7575_v14  ;;  %v6361_v21 = vadd.f32 %v8850_v46, %v2156_v44 }
 0x608   :  { %2580 = vst.msk [vmem:[#allocation3 + $0x68] sm:$0xff] %vm2566_vm3, %v2547_v35  ;;  %vm2501_vm1 = vcmp.ge.f32.partialorder %v6360_v28, 0.0 }
 0x609   :  { %2579 = vst.msk [vmem:[#allocation3 + $0x60] sm:$0xff] %vm2566_vm3, %v2546_v41  ;;  %v7583_v45 = vsel %vm2501_vm1, 1.0, %v8814_v37  ;;  %vm2500_vm2 = vcmp.ge.f32.partialorder %v6361_v21, 0.0 }
 0x60a   :  { %v2549_v48 = vmul.f32 %v6360_v28, %v7583_v45  ;;  %v7587_v36 = vsel %vm2500_vm2, 1.0, %v8814_v37 }
 0x60b   :  { %v2548_v57 = vmul.f32 %v6361_v21, %v7587_v36 }
 0x60c   :  { %2582 = vst.msk [vmem:[#allocation3 + $0x78] sm:$0xff] %vm2566_vm3, %v2549_v48 }
 0x60d   :  { %2581 = vst.msk [vmem:[#allocation3 + $0x70] sm:$0xff] %vm2566_vm3, %v2548_v57 }
 0x62c   :  { %v6040_v42 = vpop.f32.mrb[0].mxu1 }
 0x62d   :  { %v6362_v16 = vadd.f32 %v6040_v42, %v8850_v46  ;;  %v2391_v51 = vpop.f32.mrb[1].mxu1 }
 0x62e   :  { %v6363_v50 = vadd.f32 %v8850_v46, %v2391_v51 }
 0x62f   :  { %v2551_v56 = vmul.f32 %v6362_v16, %v7499_v49 }
 0x630   :  { %v2550_v15 = vmul.f32 %v6363_v50, %v7503_v12  ;;  %v6043_v23 = vpop.f32.mrb[2].mxu1 }
 0x631   :  { %v6364_v55 = vadd.f32 %v6043_v23, %v8850_v46  ;;  %v2401_v24 = vpop.f32.mrb[3].mxu1  ;;  %2601 = vrot.lane.b32.xlu1 %v2551_v56, %s6589_s29 }
 0x632   :  { %v6365_v8 = vadd.f32 %v8850_v46, %v2401_v24  ;;  %2599 = vrot.lane.b32.xlu0 %v2550_v15, %s6589_s29 }
 0x633   :  { %v2553_v10 = vmul.f32 %v6364_v55, %v7511_v59 }
 0x634   :  { %v2552_v17 = vmul.f32 %v6365_v8, %v7515_v11 }
 0x635   :  { %2605 = vrot.lane.b32.xlu1 %v2553_v10, %s6589_s29 }
 0x636   :  { %2603 = vrot.lane.b32.xlu0 %v2552_v17, %s6589_s29 }
 0x63c   :  { %v6046_v49 = vpop.f32.mrb[4].mxu1 }
 0x63d   :  { %v6366_v12 = vadd.f32 %v6046_v49, %v8850_v46  ;;  %v2411_v20 = vpop.f32.mrb[5].mxu1 }
 0x63e   :  { %v6367_v25 = vadd.f32 %v8850_v46, %v2411_v20 }
 0x63f   :  { %v2555_v22 = vmul.f32 %v6366_v12, %v7523_v31 }
 0x640   :  { %v2554_v27 = vmul.f32 %v6367_v25, %v7527_v60  ;;  %v6049_v61 = vpop.f32.mrb[6].mxu1 }
 0x641   :  { %v6368_v63 = vadd.f32 %v6049_v61, %v8850_v46  ;;  %v2421_v59 = vpop.f32.mrb[7].mxu1  ;;  %2609 = vrot.lane.b32.xlu1 %v2555_v22, %s6589_s29 }
 0x642   :  { %v6369_v11 = vadd.f32 %v8850_v46, %v2421_v59  ;;  %2607 = vrot.lane.b32.xlu0 %v2554_v27, %s6589_s29 }
 0x643   :  { %v2557_v47 = vmul.f32 %v6368_v63, %v7535_v62 }
 0x644   :  { %v2556_v13 = vmul.f32 %v6369_v11, %v7539_v58 }
 0x645   :  { %2613 = vrot.lane.b32.xlu1 %v2557_v47, %s6589_s29 }
 0x646   :  { %2611 = vrot.lane.b32.xlu0 %v2556_v13, %s6589_s29 }
 0x64c   :  { %v6052_v31 = vpop.f32.mrb[8].mxu1 }
 0x64d   :  { %v6370_v60 = vadd.f32 %v6052_v31, %v8850_v46  ;;  %v2431_v54 = vpop.f32.mrb[9].mxu1 }
 0x64e   :  { %v6371_v18 = vadd.f32 %v8850_v46, %v2431_v54 }
 0x64f   :  { %v2559_v26 = vmul.f32 %v6370_v60, %v7547_v53 }
 0x650   :  { %v2558_v33 = vmul.f32 %v6371_v18, %v7551_v19  ;;  %v6055_v40 = vpop.f32.mrb[10].mxu1 }
 0x651   :  { %v6372_v39 = vadd.f32 %v6055_v40, %v8850_v46  ;;  %v2441_v62 = vpop.f32.mrb[11].mxu1  ;;  %2617 = vrot.lane.b32.xlu1 %v2559_v26, %s6589_s29 }
 0x652   :  { %v6373_v58 = vadd.f32 %v8850_v46, %v2441_v62  ;;  %2615 = vrot.lane.b32.xlu0 %v2558_v33, %s6589_s29 }
 0x653   :  { %v2561_v32 = vmul.f32 %v6372_v39, %v7559_v29 }
 0x654   :  { %v2560_v43 = vmul.f32 %v6373_v58, %v7563_v30  ;;  %v6058_v38 = vpop.f32.mrb[12].mxu1 }
 0x655   :  { %v6374_v9 = vadd.f32 %v6058_v38, %v8850_v46  ;;  %2621 = vrot.lane.b32.xlu1 %v2561_v32, %s6589_s29  ;;  %v2451_v53 = vpop.f32.mrb[13].mxu1 }
 0x656   :  { %v6375_v19 = vadd.f32 %v8850_v46, %v2451_v53  ;;  %2619 = vrot.lane.b32.xlu0 %v2560_v43, %s6589_s29 }
 0x657   :  { %v2563_v35 = vmul.f32 %v6374_v9, %v7571_v34 }
 0x658   :  { %v2562_v28 = vmul.f32 %v6375_v19, %v7575_v14  ;;  %v6061_v44 = vpop.f32.mrb[14].mxu1 }
 0x659   :  { %v6376_v41 = vadd.f32 %v6061_v44, %v8850_v46  ;;  %v2461_v29 = vpop.f32.mrb[15].mxu1  ;;  %2625 = vrot.lane.b32.xlu1 %v2563_v35, %s6589_s29 }
 0x65a   :  { %v6377_v30 = vadd.f32 %v8850_v46, %v2461_v29  ;;  %2623 = vrot.lane.b32.xlu0 %v2562_v28, %s6589_s29 }
 0x65b   :  { %v2565_v21 = vmul.f32 %v6376_v41, %v7583_v45 }
 0x65c   :  { %v2564_v48 = vmul.f32 %v6377_v30, %v7587_v36 }
 0x65d   :  { %2629 = vrot.lane.b32.xlu1 %v2565_v21, %s6589_s29 }
 0x65e   :  { %2627 = vrot.lane.b32.xlu0 %v2564_v48, %s6589_s29 }
 0x6a3   :  { %v2602_v34 = vpop.permute.xlu1 %2601 }
 0x6a4   :  { %2649 = vst.msk [vmem:[#allocation3 + $0x8] sm:$0xff] %vm2647_vm4, %v2602_v34  ;;  %v2600_v14 = vpop.permute.xlu0 %2599 }
 0x6a5   :  { %2648 = vst.msk [vmem:[#allocation3] sm:$0xff] %vm2647_vm4, %v2600_v14 }
 0x6a7   :  { %v2606_v57 = vpop.permute.xlu1 %2605 }
 0x6a8   :  { %2651 = vst.msk [vmem:[#allocation3 + $0x18] sm:$0xff] %vm2647_vm4, %v2606_v57  ;;  %v2604_v46 = vpop.permute.xlu0 %2603 }
 0x6a9   :  { %2650 = vst.msk [vmem:[#allocation3 + $0x10] sm:$0xff] %vm2647_vm4, %v2604_v46 }
 0x6ab   :  { %v7647_v45 = vld [vmem:[#allocation3 + $0x8] sm:$0xff] }
 0x6ac   :  { %2963 = vrot.lane.b32.xlu1 %v7647_v45, %s6589_s29  ;;  %v7651_v36 = vld [vmem:[#allocation3] sm:$0xff] }
 0x6ad   :  { %2961 = vrot.lane.b32.xlu0 %v7651_v36, %s6589_s29  ;;  %v7657_v42 = vpack.c.bf16 %v7647_v45, %v7651_v36 }
 0x6af   :  { %6114 = vmatprep.subr.bf16.mxu0 %v7657_v42  ;;  %6146 = vmatprep.subr.bf16.mxu1 %v7657_v42  ;;  %v7661_v52 = vld [vmem:[#allocation3 + $0x18] sm:$0xff] }
 0x6b0   :  { %2967 = vrot.lane.b32.xlu1 %v7661_v52, %s6589_s29  ;;  %v7665_v16 = vld [vmem:[#allocation3 + $0x10] sm:$0xff] }
 0x6b1   :  { %2965 = vrot.lane.b32.xlu0 %v7665_v16, %s6589_s29 }
 0x6b3   :  { %v2610_v51 = vpop.permute.xlu1 %2609 }
 0x6b4   :  { %2653 = vst.msk [vmem:[#allocation3 + $0x28] sm:$0xff] %vm2647_vm4, %v2610_v51  ;;  %v2608_v50 = vpop.permute.xlu0 %2607 }
 0x6b5   :  { %2652 = vst.msk [vmem:[#allocation3 + $0x20] sm:$0xff] %vm2647_vm4, %v2608_v50 }
 0x6b7   :  { %v2614_v56 = vpop.permute.xlu1 %2613 }
 0x6b8   :  { %2655 = vst.msk [vmem:[#allocation3 + $0x38] sm:$0xff] %vm2647_vm4, %v2614_v56  ;;  %v2612_v15 = vpop.permute.xlu0 %2611 }
 0x6b9   :  { %2654 = vst.msk [vmem:[#allocation3 + $0x30] sm:$0xff] %vm2647_vm4, %v2612_v15 }
 0x6bb   :  { %v7673_v23 = vld [vmem:[#allocation3 + $0x28] sm:$0xff] }
 0x6bc   :  { %2971 = vrot.lane.b32.xlu1 %v7673_v23, %s6589_s29  ;;  %v7677_v55 = vld [vmem:[#allocation3 + $0x20] sm:$0xff] }
 0x6bd   :  { %2969 = vrot.lane.b32.xlu0 %v7677_v55, %s6589_s29 }
 0x6bf   :  { %v7681_v24 = vld [vmem:[#allocation3 + $0x38] sm:$0xff] }
 0x6c0   :  { %2975 = vrot.lane.b32.xlu1 %v7681_v24, %s6589_s29  ;;  %v7685_v8 = vld [vmem:[#allocation3 + $0x30] sm:$0xff] }
 0x6c1   :  { %2973 = vrot.lane.b32.xlu0 %v7685_v8, %s6589_s29 }
 0x6c3   :  { %v2618_v10 = vpop.permute.xlu1 %2617 }
 0x6c4   :  { %2657 = vst.msk [vmem:[#allocation3 + $0x48] sm:$0xff] %vm2647_vm4, %v2618_v10  ;;  %v2616_v17 = vpop.permute.xlu0 %2615 }
 0x6c5   :  { %2656 = vst.msk [vmem:[#allocation3 + $0x40] sm:$0xff] %vm2647_vm4, %v2616_v17 }
 0x6c7   :  { %v2622_v49 = vpop.permute.xlu1 %2621 }
 0x6c8   :  { %2659 = vst.msk [vmem:[#allocation3 + $0x58] sm:$0xff] %vm2647_vm4, %v2622_v49  ;;  %v2620_v12 = vpop.permute.xlu0 %2619 }
 0x6c9   :  { %2658 = vst.msk [vmem:[#allocation3 + $0x50] sm:$0xff] %vm2647_vm4, %v2620_v12 }
 0x6cb   :  { %v2626_v20 = vpop.permute.xlu1 %2625  ;;  %v7693_v25 = vld [vmem:[#allocation3 + $0x48] sm:$0xff] }
 0x6cc   :  { %2661 = vst.msk [vmem:[#allocation3 + $0x68] sm:$0xff] %vm2647_vm4, %v2626_v20  ;;  %v2624_v22 = vpop.permute.xlu0 %2623  ;;  %2979 = vrot.lane.b32.xlu1 %v7693_v25, %s6589_s29  ;;  %v7698_v27 = vld [vmem:[#allocation3 + $0x40] sm:$0xff]  ;;  %v7797_v20 = vpack.c.bf16 %v7661_v52, %v7665_v16 }
 0x6cd   :  { %2660 = vst.msk [vmem:[#allocation3 + $0x60] sm:$0xff] %vm2647_vm4, %v2624_v22  ;;  %2977 = vrot.lane.b32.xlu0 %v7698_v27, %s6589_s29 }
 0x6cf   :  { %v2630_v61 = vpop.permute.xlu1 %2629  ;;  %v7703_v63 = vld [vmem:[#allocation3 + $0x58] sm:$0xff] }
 0x6d0   :  { %2663 = vst.msk [vmem:[#allocation3 + $0x78] sm:$0xff] %vm2647_vm4, %v2630_v61  ;;  %2983 = vrot.lane.b32.xlu1 %v7703_v63, %s6589_s29  ;;  %v2628_v59 = vpop.permute.xlu0 %2627  ;;  %v7708_v11 = vld [vmem:[#allocation3 + $0x50] sm:$0xff] }
 0x6d1   :  { %2662 = vst.msk [vmem:[#allocation3 + $0x70] sm:$0xff] %vm2647_vm4, %v2628_v59  ;;  %2981 = vrot.lane.b32.xlu0 %v7708_v11, %s6589_s29  ;;  %v7805_v59 = vpack.c.bf16 %v7673_v23, %v7677_v55 }
 0x6d3   :  { %v7713_v47 = vld [vmem:[#allocation3 + $0x68] sm:$0xff] }
 0x6d4   :  { %2987 = vrot.lane.b32.xlu1 %v7713_v47, %s6589_s29  ;;  %v7717_v13 = vld [vmem:[#allocation3 + $0x60] sm:$0xff] }
 0x6d5   :  { %2985 = vrot.lane.b32.xlu0 %v7717_v13, %s6589_s29 }
 0x6d7   :  { %v7721_v31 = vld [vmem:[#allocation3 + $0x78] sm:$0xff] }
 0x6d8   :  { %2991 = vrot.lane.b32.xlu1 %v7721_v31, %s6589_s29  ;;  %v7725_v60 = vld [vmem:[#allocation3 + $0x70] sm:$0xff] }
 0x6d9   :  { %2989 = vrot.lane.b32.xlu0 %v7725_v60, %s6589_s29 }
 0x71e   :  { %v2964_v54 = vpop.permute.xlu1 %2963 }
 0x71f   :  { %v3010_v18 = vadd.f32 %v2964_v54, %v7647_v45  ;;  %v2962_v26 = vpop.permute.xlu0 %2961  ;;  %v7811_v54 = vpack.c.bf16 %v7681_v24, %v7685_v8 }
 0x720   :  { %v3009_v33 = vadd.f32 %v2962_v26, %v7651_v36 }
 0x721   :  { %3043 = vrot.lane.b32.xlu1 %v3010_v18, %s6590_s17  ;;  %v7817_v18 = vpack.c.bf16 %v7693_v25, %v7698_v27 }
 0x722   :  { %v2968_v40 = vpop.permute.xlu1 %2967  ;;  %3041 = vrot.lane.b32.xlu0 %v3009_v33, %s6590_s17 }
 0x723   :  { %v3012_v39 = vadd.f32 %v2968_v40, %v7661_v52  ;;  %v2966_v62 = vpop.permute.xlu0 %2965  ;;  %v7825_v40 = vpack.c.bf16 %v7703_v63, %v7708_v11 }
 0x724   :  { %v3011_v58 = vadd.f32 %v2966_v62, %v7665_v16 }
 0x725   :  { %3047 = vrot.lane.b32.xlu1 %v3012_v39, %s6590_s17 }
 0x726   :  { %3045 = vrot.lane.b32.xlu0 %v3011_v58, %s6590_s17  ;;  %v7833_v58 = vpack.c.bf16 %v7713_v47, %v7717_v13 }
 0x72e   :  { %v2972_v32 = vpop.permute.xlu1 %2971 }
 0x72f   :  { %v3014_v43 = vadd.f32 %v2972_v32, %v7673_v23  ;;  %v2970_v38 = vpop.permute.xlu0 %2969  ;;  %v7839_v32 = vpack.c.bf16 %v7721_v31, %v7725_v60 }
 0x730   :  { %v3013_v9 = vadd.f32 %v2970_v38, %v7677_v55 }
 0x731   :  { %3051 = vrot.lane.b32.xlu1 %v3014_v43, %s6590_s17 }
 0x732   :  { %v2976_v53 = vpop.permute.xlu1 %2975  ;;  %3049 = vrot.lane.b32.xlu0 %v3013_v9, %s6590_s17 }
 0x733   :  { %v3016_v19 = vadd.f32 %v2976_v53, %v7681_v24  ;;  %v2974_v35 = vpop.permute.xlu0 %2973 }
 0x734   :  { %v3015_v28 = vadd.f32 %v2974_v35, %v7685_v8 }
 0x735   :  { %3055 = vrot.lane.b32.xlu1 %v3016_v19, %s6590_s17 }
 0x736   :  { %3053 = vrot.lane.b32.xlu0 %v3015_v28, %s6590_s17 }
 0x73e   :  { %v2980_v44 = vpop.permute.xlu1 %2979 }
 0x73f   :  { %v3018_v41 = vadd.f32 %v2980_v44, %v7693_v25  ;;  %v2978_v29 = vpop.permute.xlu0 %2977 }
 0x740   :  { %v3017_v30 = vadd.f32 %v2978_v29, %v7698_v27 }
 0x741   :  { %3059 = vrot.lane.b32.xlu1 %v3018_v41, %s6590_s17 }
 0x742   :  { %v2984_v21 = vpop.permute.xlu1 %2983  ;;  %3057 = vrot.lane.b32.xlu0 %v3017_v30, %s6590_s17 }
 0x743   :  { %v3020_v48 = vadd.f32 %v2984_v21, %v7703_v63  ;;  %v2982_v34 = vpop.permute.xlu0 %2981 }
 0x744   :  { %v3019_v14 = vadd.f32 %v2982_v34, %v7708_v11 }
 0x745   :  { %3063 = vrot.lane.b32.xlu1 %v3020_v48, %s6590_s17 }
 0x746   :  { %v2988_v57 = vpop.permute.xlu1 %2987  ;;  %3061 = vrot.lane.b32.xlu0 %v3019_v14, %s6590_s17 }
 0x747   :  { %v3022_v46 = vadd.f32 %v2988_v57, %v7713_v47  ;;  %v2986_v51 = vpop.permute.xlu0 %2985 }
 0x748   :  { %v3021_v50 = vadd.f32 %v2986_v51, %v7717_v13 }
 0x749   :  { %3067 = vrot.lane.b32.xlu1 %v3022_v46, %s6590_s17 }
 0x74a   :  { %v2992_v56 = vpop.permute.xlu1 %2991  ;;  %3065 = vrot.lane.b32.xlu0 %v3021_v50, %s6590_s17 }
 0x74b   :  { %v3024_v15 = vadd.f32 %v2992_v56, %v7721_v31  ;;  %v2990_v10 = vpop.permute.xlu0 %2989 }
 0x74c   :  { %v3023_v17 = vadd.f32 %v2990_v10, %v7725_v60 }
 0x74d   :  { %3071 = vrot.lane.b32.xlu1 %v3024_v15, %s6590_s17 }
 0x74e   :  { %3069 = vrot.lane.b32.xlu0 %v3023_v17, %s6590_s17 }
 0x751   :  { %2699 = vrot.lane.b32.xlu1 %v7647_v45, %s6590_s17 }
 0x752   :  { %2697 = vrot.lane.b32.xlu0 %v7651_v36, %s6590_s17 }
 0x755   :  { %2703 = vrot.lane.b32.xlu1 %v7661_v52, %s6590_s17 }
 0x756   :  { %2701 = vrot.lane.b32.xlu0 %v7665_v16, %s6590_s17 }
 0x759   :  { %2707 = vrot.lane.b32.xlu1 %v7673_v23, %s6590_s17 }
 0x75a   :  { %2705 = vrot.lane.b32.xlu0 %v7677_v55, %s6590_s17 }
 0x75d   :  { %2711 = vrot.lane.b32.xlu1 %v7681_v24, %s6590_s17 }
 0x75e   :  { %2709 = vrot.lane.b32.xlu0 %v7685_v8, %s6590_s17 }
 0x761   :  { %2715 = vrot.lane.b32.xlu1 %v7693_v25, %s6590_s17 }
 0x762   :  { %2713 = vrot.lane.b32.xlu0 %v7698_v27, %s6590_s17 }
 0x765   :  { %2719 = vrot.lane.b32.xlu1 %v7703_v63, %s6590_s17 }
 0x766   :  { %2717 = vrot.lane.b32.xlu0 %v7708_v11, %s6590_s17 }
 0x769   :  { %2723 = vrot.lane.b32.xlu1 %v7713_v47, %s6590_s17 }
 0x76a   :  { %2721 = vrot.lane.b32.xlu0 %v7717_v13, %s6590_s17 }
 0x76d   :  { %2727 = vrot.lane.b32.xlu1 %v7721_v31, %s6590_s17 }
 0x76e   :  { %2725 = vrot.lane.b32.xlu0 %v7725_v60, %s6590_s17 }
 0x793   :  { %v3044_v49 = vpop.permute.xlu1 %3043 }
 0x794   :  { %v3042_v12 = vpop.permute.xlu0 %3041 }
 0x795   :  { %6090 = vmatprep.mubr.msk.f32.mxu1 %vm2566_vm3, %v3042_v12 }
 0x796   :  { %6091 = vmatmul.mubr.msk.f32.vlgmr.msra.gmra.mrb[48].mxu1 %vm2566_vm3, %v3044_v49 }
 0x797   :  { %6147 = vmatpush3.bf16.msra.mxu1 %v7657_v42  ;;  %v3048_v61 = vpop.permute.xlu1 %3047 }
 0x798   :  { %6148 = vmatprep.subr.bf16.mxu1 %v7797_v20  ;;  %v3046_v22 = vpop.permute.xlu0 %3045 }
 0x799   :  { %6093 = vmatprep.mubr.msk.f32.mxu1 %vm2566_vm3, %v3046_v22  ;;  %v7914_v22 = vld [vmem:[%s8783_s0 + $0x8] sm:$0xff]  }
 0x79a   :  { %6094 = vmatmul.mubr.msk.f32.gmra.mrb[50].mxu1 %vm2566_vm3, %v3048_v61  ;;  %8852 = vst [vmem:[#allocation11_spill] sm:$0xff] %v7914_v22  ;;  %v7933_v61 = vld [vmem:[%s8783_s0 + $0x20] sm:$0xff]  }
 0x79b   :  { %6149 = vmatpush3.bf16.msra.mxu1 %v7797_v20  ;;  %8855 = vst [vmem:[#allocation12_spill] sm:$0xff] %v7933_v61 }
 0x79c   :  { %6150 = vmatprep.subr.bf16.mxu1 %v7805_v59 }
 0x79f   :  { %6151 = vmatpush3.bf16.msra.mxu1 %v7805_v59 }
 0x7a0   :  { %6152 = vmatprep.subr.bf16.mxu1 %v7811_v54 }
 0x7a3   :  { %6153 = vmatpush3.bf16.msra.mxu1 %v7811_v54  ;;  %v3052_v26 = vpop.permute.xlu1 %3051 }
 0x7a4   :  { %6154 = vmatprep.subr.bf16.mxu1 %v7817_v18  ;;  %v3050_v33 = vpop.permute.xlu0 %3049 }
 0x7a5   :  { %6096 = vmatprep.mubr.msk.f32.mxu1 %vm2566_vm3, %v3050_v33 }
 0x7a6   :  { %6097 = vmatmul.mubr.msk.f32.gmra.mrb[52].mxu1 %vm2566_vm3, %v3052_v26  ;;  %v5363_v26 = vld [vmem:[%s8788_s5 + $0x8] sm:$0xff] }
 0x7a7   :  { %6155 = vmatpush3.bf16.msra.mxu1 %v7817_v18  ;;  %v3056_v62 = vpop.permute.xlu1 %3055 }
 0x7a8   :  { %6156 = vmatprep.subr.bf16.mxu1 %v7825_v40  ;;  %v3054_v39 = vpop.permute.xlu0 %3053 }
 0x7a9   :  { %6099 = vmatprep.mubr.msk.f32.mxu1 %vm2566_vm3, %v3054_v39 }
 0x7aa   :  { %6100 = vmatmul.mubr.msk.f32.gmra.mrb[54].mxu1 %vm2566_vm3, %v3056_v62 }
 0x7ab   :  { %6157 = vmatpush3.bf16.msra.mxu1 %v7825_v40 }
 0x7ac   :  { %6158 = vmatprep.subr.bf16.mxu1 %v7833_v58 }
 0x7af   :  { %6159 = vmatpush3.bf16.msra.mxu1 %v7833_v58 }
 0x7b0   :  { %6160 = vmatprep.subr.bf16.mxu1 %v7839_v32 }
 0x7b3   :  { %6161 = vmatpush3.bf16.msra.mxu1 %v7839_v32  ;;  %v3060_v43 = vpop.permute.xlu1 %3059 }
 0x7b4   :  { %v3058_v38 = vpop.permute.xlu0 %3057  ;;  %6204 = vmatprep.subr.mxu1 %v5363_v26 }
 0x7b5   :  { %6102 = vmatprep.mubr.msk.f32.mxu1 %vm2566_vm3, %v3058_v38 }
 0x7b6   :  { %6103 = vmatmul.mubr.msk.f32.gmra.mrb[56].mxu1 %vm2566_vm3, %v3060_v43 }
 0x7b7   :  { %v3064_v9 = vpop.permute.xlu1 %3063 }
 0x7b8   :  { %v3062_v53 = vpop.permute.xlu0 %3061 }
 0x7b9   :  { %6105 = vmatprep.mubr.msk.f32.mxu1 %vm2566_vm3, %v3062_v53 }
 0x7ba   :  { %6106 = vmatmul.mubr.msk.f32.gmra.mrb[58].mxu1 %vm2566_vm3, %v3064_v9 }
 0x7bb   :  { %v3068_v19 = vpop.permute.xlu1 %3067 }
 0x7bc   :  { %v3066_v35 = vpop.permute.xlu0 %3065 }
 0x7bd   :  { %6108 = vmatprep.mubr.msk.f32.mxu1 %vm2566_vm3, %v3066_v35 }
 0x7be   :  { %6109 = vmatmul.mubr.msk.f32.gmra.mrb[60].mxu1 %vm2566_vm3, %v3068_v19 }
 0x7bf   :  { %v3072_v28 = vpop.permute.xlu1 %3071 }
 0x7c0   :  { %v3070_v44 = vpop.permute.xlu0 %3069 }
 0x7c1   :  { %6111 = vmatprep.mubr.msk.f32.mxu1 %vm2566_vm3, %v3070_v44 }
 0x7c2   :  { %6112 = vmatmul.mubr.msk.f32.gmra.mrb[62].mxu1 %vm2566_vm3, %v3072_v28 }
 0x7c3   :  { %v2700_v41 = vpop.permute.xlu1 %2699  ;;  %6162 = vmatprep.mubr.bf16.mxu1 %v6635_v0 }
 0x7c4   :  { %v2698_v29 = vpop.permute.xlu0 %2697  ;;  %v2746_v21 = vsub.f32 %v7647_v45, %v2700_v41 }
 0x7c5   :  { %v2745_v30 = vsub.f32 %v7651_v36, %v2698_v29 }
 0x7c6   :  { %6163 = vmatmul.mubr.bf16.vlgmr.msra.gmra.mrb[64].mxu1 %v6640_v1 }
 0x7c7   :  { %v2704_v48 = vpop.permute.xlu1 %2703  ;;  %6064 = vmatprep.mubr.msk.f32.mxu0 %vm2566_vm3, %v2745_v30  ;;  %6166 = vmatprep.mubr.bf16.mxu1 %v6645_v2 }
 0x7c8   :  { %6065 = vmatmul.mubr.msk.f32.vlgmr.msra.gmra.mrb[48].mxu0 %vm2566_vm3, %v2746_v21  ;;  %v2702_v34 = vpop.permute.xlu0 %2701  ;;  %v2748_v57 = vsub.f32 %v7661_v52, %v2704_v48  ;;  %6205 = vmatpush3.msra.mxu1 %v5363_v26 }
 0x7c9   :  { %6115 = vmatpush3.bf16.msra.mxu0 %v7657_v42  ;;  %v2747_v14 = vsub.f32 %v7665_v16, %v2702_v34 }
 0x7ca   :  { %6116 = vmatprep.subr.bf16.mxu0 %v7797_v20 }
 0x7cb   :  { %v2708_v36 = vpop.permute.xlu1 %2707  ;;  %6067 = vmatprep.mubr.msk.f32.mxu0 %vm2566_vm3, %v2747_v14 }
 0x7cc   :  { %6068 = vmatmul.mubr.msk.f32.gmra.mrb[50].mxu0 %vm2566_vm3, %v2748_v57  ;;  %v2706_v45 = vpop.permute.xlu0 %2705  ;;  %v2750_v51 = vsub.f32 %v7673_v23, %v2708_v36 }
 0x7cd   :  { %6117 = vmatpush3.bf16.msra.mxu0 %v7797_v20  ;;  %v2749_v46 = vsub.f32 %v7677_v55, %v2706_v45 }
 0x7ce   :  { %6118 = vmatprep.subr.bf16.mxu0 %v7805_v59  ;;  %6167 = vmatmul.mubr.bf16.gmra.mrb[68].mxu1 %v6650_v3 }
 0x7cf   :  { %v2712_v42 = vpop.permute.xlu1 %2711  ;;  %6070 = vmatprep.mubr.msk.f32.mxu0 %vm2566_vm3, %v2749_v46  ;;  %6170 = vmatprep.mubr.bf16.mxu1 %v6655_v4 }
 0x7d0   :  { %6071 = vmatmul.mubr.msk.f32.gmra.mrb[52].mxu0 %vm2566_vm3, %v2750_v51  ;;  %v2710_v52 = vpop.permute.xlu0 %2709  ;;  %v2752_v55 = vsub.f32 %v7681_v24, %v2712_v42 }
 0x7d1   :  { %6119 = vmatpush3.bf16.msra.mxu0 %v7805_v59  ;;  %v2751_v16 = vsub.f32 %v7685_v8, %v2710_v52  ;;  %v7940_v59 = vld [vmem:[%s8783_s0 + $0x28] sm:$0xff]  }
 0x7d2   :  { %6120 = vmatprep.subr.bf16.mxu0 %v7811_v54  ;;  %8856 = vst [vmem:[#allocation15_spill] sm:$0xff] %v7940_v59 }
 0x7d3   :  { %v2716_v23 = vpop.permute.xlu1 %2715  ;;  %6073 = vmatprep.mubr.msk.f32.mxu0 %vm2566_vm3, %v2751_v16 }
 0x7d4   :  { %6074 = vmatmul.mubr.msk.f32.gmra.mrb[54].mxu0 %vm2566_vm3, %v2752_v55  ;;  %v2714_v50 = vpop.permute.xlu0 %2713  ;;  %v2754_v15 = vsub.f32 %v7693_v25, %v2716_v23 }
 0x7d5   :  { %6121 = vmatpush3.bf16.msra.mxu0 %v7811_v54  ;;  %v2753_v56 = vsub.f32 %v7698_v27, %v2714_v50  ;;  %v7945_v54 = vld [vmem:[%s8783_s0 + $0x30] sm:$0xff]  }
 0x7d6   :  { %6122 = vmatprep.subr.bf16.mxu0 %v7817_v18  ;;  %6171 = vmatmul.mubr.bf16.gmra.mrb[72].mxu1 %v6660_v5  ;;  %8857 = vst [vmem:[#allocation13_spill] sm:$0xff] %v7945_v54 }
 0x7d7   :  { %v2720_v8 = vpop.permute.xlu1 %2719  ;;  %6076 = vmatprep.mubr.msk.f32.mxu0 %vm2566_vm3, %v2753_v56  ;;  %6174 = vmatprep.mubr.bf16.mxu1 %v6665_v6 }
 0x7d8   :  { %6077 = vmatmul.mubr.msk.f32.gmra.mrb[56].mxu0 %vm2566_vm3, %v2754_v15  ;;  %v2718_v24 = vpop.permute.xlu0 %2717  ;;  %v2756_v27 = vsub.f32 %v7703_v63, %v2720_v8 }
 0x7d9   :  { %6123 = vmatpush3.bf16.msra.mxu0 %v7817_v18  ;;  %v2755_v10 = vsub.f32 %v7708_v11, %v2718_v24  ;;  %v7952_v18 = vld [vmem:[%s8783_s0 + $0x38] sm:$0xff]  }
 0x7da   :  { %6124 = vmatprep.subr.bf16.mxu0 %v7825_v40  ;;  %8858 = vst [vmem:[#allocation18_spill] sm:$0xff] %v7952_v18 }
 0x7db   :  { %v2724_v25 = vpop.permute.xlu1 %2723  ;;  %6079 = vmatprep.mubr.msk.f32.mxu0 %vm2566_vm3, %v2755_v10 }
 0x7dc   :  { %6080 = vmatmul.mubr.msk.f32.gmra.mrb[58].mxu0 %vm2566_vm3, %v2756_v27  ;;  %v2722_v17 = vpop.permute.xlu0 %2721  ;;  %v2758_v12 = vsub.f32 %v7713_v47, %v2724_v25 }
 0x7dd   :  { %6125 = vmatpush3.bf16.msra.mxu0 %v7825_v40  ;;  %v2757_v49 = vsub.f32 %v7717_v13, %v2722_v17  ;;  %v7905_v13 = vld [vmem:[%s8783_s0] sm:$0xff]  }
 0x7de   :  { %6126 = vmatprep.subr.bf16.mxu0 %v7833_v58  ;;  %6175 = vmatmul.mubr.bf16.gmra.mrb[76].mxu1 %v6670_v7  ;;  %8851 = vst [vmem:[#allocation8_spill] sm:$0xff] %v7905_v13 }
 0x7df   :  { %v2728_v11 = vpop.permute.xlu1 %2727  ;;  %6082 = vmatprep.mubr.msk.f32.mxu0 %vm2566_vm3, %v2757_v49 }
 0x7e0   :  { %6083 = vmatmul.mubr.msk.f32.gmra.mrb[60].mxu0 %vm2566_vm3, %v2758_v12  ;;  %v2726_v63 = vpop.permute.xlu0 %2725  ;;  %v2760_v47 = vsub.f32 %v7721_v31, %v2728_v11  ;;  %v7928_v31 = vld [vmem:[%s8783_s0 + $0x18] sm:$0xff]  }
 0x7e1   :  { %6127 = vmatpush3.bf16.msra.mxu0 %v7833_v58  ;;  %v2759_v20 = vsub.f32 %v7725_v60, %v2726_v63  ;;  %v7921_v60 = vld [vmem:[%s8783_s0 + $0x10] sm:$0xff]   ;;  %8854 = vst [vmem:[#allocation14_spill] sm:$0xff] %v7928_v31 }
 0x7e2   :  { %6128 = vmatprep.subr.bf16.mxu0 %v7839_v32  ;;  %8853 = vst [vmem:[#allocation9_spill] sm:$0xff] %v7921_v60 }
 0x7e3   :  { %6085 = vmatprep.mubr.msk.f32.mxu0 %vm2566_vm3, %v2759_v20 }
 0x7e4   :  { %6086 = vmatmul.mubr.msk.f32.gmra.mrb[62].mxu0 %vm2566_vm3, %v2760_v47 }
 0x7e5   :  { %6129 = vmatpush3.bf16.msra.mxu0 %v7839_v32  ;;  %6130 = vmatprep.mubr.bf16.mxu0 %v7905_v13 }
 0x7e6   :  { %6178 = vmatprep.subr.mxu0 %v5363_v26 }
 0x7e8   :  { %6131 = vmatmul.mubr.bf16.vlgmr.msra.gmra.mrb[64].mxu0 %v7914_v22 }
 0x7e9   :  { %6134 = vmatprep.mubr.bf16.mxu0 %v7921_v60  ;;  %6179 = vmatpush3.msra.mxu0 %v5363_v26 }
 0x7f0   :  { %6135 = vmatmul.mubr.bf16.gmra.mrb[68].mxu0 %v7928_v31 }
 0x7f1   :  { %6138 = vmatprep.mubr.bf16.mxu0 %v7933_v61 }
 0x7f8   :  { %6139 = vmatmul.mubr.bf16.gmra.mrb[72].mxu0 %v7940_v59 }
 0x7f9   :  { %6142 = vmatprep.mubr.bf16.mxu0 %v7945_v54 }
 0x800   :  { %6143 = vmatmul.mubr.bf16.gmra.mrb[76].mxu0 %v7952_v18 }
 0x899   :  { %v7958_v33 = vpop.f32.mrb[64].mxu1 }
 0x89a   :  { %v7960_v40 = vpop.f32.mrb[65].mxu1 }
 0x89b   :  { %3815 = vrot.lane.b32.xlu0 %v7960_v40, %s6589_s29  ;;  %v7964_v39 = vpop.f32.mrb[66].mxu1 }
 0x89c   :  { %v7968_v62 = vpack.c.bf16 %v7964_v39, %v7958_v33  ;;  %v7970_v58 = vpop.f32.mrb[67].mxu1 }
 0x89d   :  { %v7974_v32 = vpack.c.bf16 %v7970_v58, %v7960_v40  ;;  %3817 = vrot.lane.b32.xlu1 %v7970_v58, %s6589_s29 }
 0x89f   :  { %3819 = vrot.lane.b32.xlu0 %v7958_v33, %s6589_s29  ;;  %6262 = vmatprep.subr.bf16.mxu1 %v7974_v32 }
 0x8a1   :  { %3821 = vrot.lane.b32.xlu1 %v7964_v39, %s6589_s29  ;;  %v7983_v43 = vpop.f32.mrb[68].mxu1 }
 0x8a2   :  { %v7985_v38 = vpop.f32.mrb[69].mxu1 }
 0x8a3   :  { %3823 = vrot.lane.b32.xlu0 %v7985_v38, %s6589_s29  ;;  %v7989_v9 = vpop.f32.mrb[70].mxu1 }
 0x8a4   :  { %v7993_v53 = vpack.c.bf16 %v7989_v9, %v7983_v43  ;;  %v7995_v19 = vpop.f32.mrb[71].mxu1 }
 0x8a5   :  { %v7999_v35 = vpack.c.bf16 %v7995_v19, %v7985_v38  ;;  %3825 = vrot.lane.b32.xlu1 %v7995_v19, %s6589_s29 }
 0x8a7   :  { %3827 = vrot.lane.b32.xlu0 %v7983_v43, %s6589_s29 }
 0x8a9   :  { %3829 = vrot.lane.b32.xlu1 %v7989_v9, %s6589_s29  ;;  %v8007_v28 = vpop.f32.mrb[72].mxu1 }
 0x8aa   :  { %v8009_v44 = vpop.f32.mrb[73].mxu1 }
 0x8ab   :  { %3831 = vrot.lane.b32.xlu0 %v8009_v44, %s6589_s29  ;;  %v8013_v41 = vpop.f32.mrb[74].mxu1 }
 0x8ac   :  { %v8017_v29 = vpack.c.bf16 %v8013_v41, %v8007_v28  ;;  %v8019_v30 = vpop.f32.mrb[75].mxu1 }
 0x8ad   :  { %v8023_v21 = vpack.c.bf16 %v8019_v30, %v8009_v44  ;;  %3833 = vrot.lane.b32.xlu1 %v8019_v30, %s6589_s29 }
 0x8af   :  { %3835 = vrot.lane.b32.xlu0 %v8007_v28, %s6589_s29 }
 0x8b1   :  { %3837 = vrot.lane.b32.xlu1 %v8013_v41, %s6589_s29  ;;  %v8031_v48 = vpop.f32.mrb[76].mxu1 }
 0x8b2   :  { %v8033_v34 = vpop.f32.mrb[77].mxu1 }
 0x8b3   :  { %3839 = vrot.lane.b32.xlu0 %v8033_v34, %s6589_s29  ;;  %v8037_v14 = vpop.f32.mrb[78].mxu1 }
 0x8b4   :  { %v8041_v57 = vpack.c.bf16 %v8037_v14, %v8031_v48  ;;  %v8043_v36 = vpop.f32.mrb[79].mxu1 }
 0x8b5   :  { %v8047_v45 = vpack.c.bf16 %v8043_v36, %v8033_v34  ;;  %3841 = vrot.lane.b32.xlu1 %v8043_v36, %s6589_s29 }
 0x8b7   :  { %3843 = vrot.lane.b32.xlu0 %v8031_v48, %s6589_s29 }
 0x8b9   :  { %3845 = vrot.lane.b32.xlu1 %v8037_v14, %s6589_s29 }
 0x8bb   :  { %v8055_v46 = vpop.f32.mrb[64].mxu0 }
 0x8bc   :  { %v8057_v51 = vpop.f32.mrb[65].mxu0 }
 0x8bd   :  { %v8059_v42 = vpop.f32.mrb[66].mxu0 }
 0x8be   :  { %v8063_v52 = vpack.c.bf16 %v8059_v42, %v8055_v46  ;;  %v8065_v16 = vpop.f32.mrb[67].mxu0 }
 0x8bf   :  { %v8069_v55 = vpack.c.bf16 %v8065_v16, %v8057_v51 }
 0x8c1   :  { %6230 = vmatprep.subr.bf16.mxu0 %v8069_v55 }
 0x8c3   :  { %v8072_v23 = vpop.f32.mrb[68].mxu0 }
 0x8c4   :  { %v8074_v50 = vpop.f32.mrb[69].mxu0 }
 0x8c5   :  { %v8076_v56 = vpop.f32.mrb[70].mxu0 }
 0x8c6   :  { %v8080_v15 = vpack.c.bf16 %v8076_v56, %v8072_v23  ;;  %v8082_v8 = vpop.f32.mrb[71].mxu0 }
 0x8c7   :  { %v8086_v24 = vpack.c.bf16 %v8082_v8, %v8074_v50 }
 0x8cb   :  { %v8088_v10 = vpop.f32.mrb[72].mxu0 }
 0x8cc   :  { %v8090_v27 = vpop.f32.mrb[73].mxu0 }
 0x8cd   :  { %v8092_v25 = vpop.f32.mrb[74].mxu0 }
 0x8ce   :  { %v8096_v17 = vpack.c.bf16 %v8092_v25, %v8088_v10  ;;  %v8098_v49 = vpop.f32.mrb[75].mxu0 }
 0x8cf   :  { %v8102_v12 = vpack.c.bf16 %v8098_v49, %v8090_v27 }
 0x8d3   :  { %v8104_v11 = vpop.f32.mrb[76].mxu0 }
 0x8d4   :  { %v8106_v63 = vpop.f32.mrb[77].mxu0 }
 0x8d5   :  { %v8108_v20 = vpop.f32.mrb[78].mxu0 }
 0x8d6   :  { %v8112_v47 = vpack.c.bf16 %v8108_v20, %v8104_v11  ;;  %v8114_v26 = vpop.f32.mrb[79].mxu0 }
 0x8d7   :  { %v8118_v37 = vpack.c.bf16 %v8114_v26, %v8106_v63 }
 0x8d8   :  { %8859 = vst [vmem:[#allocation16_spill] sm:$0xff] %v8112_v47 }
 0x90d   :  { %v3816_v18 = vpop.permute.xlu0 %3815 }
 0x90e   :  { %v3863_v54 = vadd.f32 %v3816_v18, %v8057_v51 }
 0x90f   :  { %v3818_v59 = vpop.permute.xlu1 %3817 }
 0x910   :  { %v3864_v61 = vadd.f32 %v3818_v59, %v8065_v16  ;;  %3895 = vrot.lane.b32.xlu0 %v3863_v54, %s6590_s17 }
 0x911   :  { %v3820_v31 = vpop.permute.xlu0 %3819 }
 0x912   :  { %v3865_v60 = vadd.f32 %v8055_v46, %v3820_v31  ;;  %3897 = vrot.lane.b32.xlu1 %v3864_v61, %s6590_s17 }
 0x913   :  { %v3822_v22 = vpop.permute.xlu1 %3821 }
 0x914   :  { %v3866_v13 = vadd.f32 %v8059_v42, %v3822_v22  ;;  %3899 = vrot.lane.b32.xlu0 %v3865_v60, %s6590_s17 }
 0x915   :  { %v3824_v47 = vpop.permute.xlu0 %3823 }
 0x916   :  { %v3867_v7 = vadd.f32 %v3824_v47, %v8074_v50  ;;  %3901 = vrot.lane.b32.xlu1 %v3866_v13, %s6590_s17 }
 0x917   :  { %v3826_v18 = vpop.permute.xlu1 %3825 }
 0x918   :  { %v3868_v59 = vadd.f32 %v3826_v18, %v8082_v8  ;;  %3903 = vrot.lane.b32.xlu0 %v3867_v7, %s6590_s17 }
 0x919   :  { %v3828_v54 = vpop.permute.xlu0 %3827 }
 0x91a   :  { %v3869_v31 = vadd.f32 %v8072_v23, %v3828_v54  ;;  %3905 = vrot.lane.b32.xlu1 %v3868_v59, %s6590_s17 }
 0x91b   :  { %v3830_v61 = vpop.permute.xlu1 %3829 }
 0x91c   :  { %v3870_v22 = vadd.f32 %v8076_v56, %v3830_v61  ;;  %3907 = vrot.lane.b32.xlu0 %v3869_v31, %s6590_s17 }
 0x91d   :  { %v3832_v60 = vpop.permute.xlu0 %3831 }
 0x91e   :  { %v3871_v47 = vadd.f32 %v3832_v60, %v8090_v27  ;;  %3909 = vrot.lane.b32.xlu1 %v3870_v22, %s6590_s17 }
 0x91f   :  { %v3834_v13 = vpop.permute.xlu1 %3833 }
 0x920   :  { %v3872_v18 = vadd.f32 %v3834_v13, %v8098_v49  ;;  %3911 = vrot.lane.b32.xlu0 %v3871_v47, %s6590_s17 }
 0x921   :  { %v3836_v7 = vpop.permute.xlu0 %3835 }
 0x922   :  { %v3873_v54 = vadd.f32 %v8088_v10, %v3836_v7  ;;  %3913 = vrot.lane.b32.xlu1 %v3872_v18, %s6590_s17 }
 0x923   :  { %v3838_v59 = vpop.permute.xlu1 %3837 }
 0x924   :  { %v3874_v61 = vadd.f32 %v8092_v25, %v3838_v59  ;;  %3915 = vrot.lane.b32.xlu0 %v3873_v54, %s6590_s17  ;;  %v8863_v54 = vld [vmem:[#allocation11_spill] sm:$0xff] }
 0x925   :  { %v3840_v31 = vpop.permute.xlu0 %3839 }
 0x926   :  { %v3875_v60 = vadd.f32 %v3840_v31, %v8106_v63  ;;  %3917 = vrot.lane.b32.xlu1 %v3874_v61, %s6590_s17  ;;  %v8865_v61 = vld [vmem:[#allocation14_spill] sm:$0xff]  ;;  %v8867_v31 = vld [vmem:[#allocation15_spill] sm:$0xff] }
 0x927   :  { %v3842_v22 = vpop.permute.xlu1 %3841 }
 0x928   :  { %v3876_v13 = vadd.f32 %v3842_v22, %v8114_v26  ;;  %3919 = vrot.lane.b32.xlu0 %v3875_v60, %s6590_s17  ;;  %v8868_v60 = vld [vmem:[#allocation13_spill] sm:$0xff] }
 0x929   :  { %v3844_v47 = vpop.permute.xlu0 %3843 }
 0x92a   :  { %v3877_v7 = vadd.f32 %v8104_v11, %v3844_v47  ;;  %3921 = vrot.lane.b32.xlu1 %v3876_v13, %s6590_s17 }
 0x92b   :  { %v3846_v18 = vpop.permute.xlu1 %3845 }
 0x92c   :  { %v3878_v59 = vadd.f32 %v8108_v20, %v3846_v18  ;;  %3923 = vrot.lane.b32.xlu0 %v3877_v7, %s6590_s17  ;;  %v8278_v18 = vld [vmem:[#allocation3 + $0x10] sm:$0xff] }
 0x92e   :  { %3925 = vrot.lane.b32.xlu1 %v3878_v59, %s6590_s17 }
 0x930   :  { %3540 = vrot.lane.b32.xlu0 %v7960_v40, %s6590_s17 }
 0x932   :  { %3542 = vrot.lane.b32.xlu1 %v7970_v58, %s6590_s17 }
 0x934   :  { %3544 = vrot.lane.b32.xlu0 %v7958_v33, %s6590_s17 }
 0x936   :  { %3546 = vrot.lane.b32.xlu1 %v7964_v39, %s6590_s17 }
 0x938   :  { %3548 = vrot.lane.b32.xlu0 %v7985_v38, %s6590_s17 }
 0x93a   :  { %3550 = vrot.lane.b32.xlu1 %v7995_v19, %s6590_s17 }
 0x93c   :  { %3552 = vrot.lane.b32.xlu0 %v7983_v43, %s6590_s17 }
 0x93e   :  { %3554 = vrot.lane.b32.xlu1 %v7989_v9, %s6590_s17 }
 0x940   :  { %3556 = vrot.lane.b32.xlu0 %v8009_v44, %s6590_s17 }
 0x942   :  { %3558 = vrot.lane.b32.xlu1 %v8019_v30, %s6590_s17 }
 0x944   :  { %3560 = vrot.lane.b32.xlu0 %v8007_v28, %s6590_s17 }
 0x946   :  { %3562 = vrot.lane.b32.xlu1 %v8013_v41, %s6590_s17 }
 0x948   :  { %3564 = vrot.lane.b32.xlu0 %v8033_v34, %s6590_s17 }
 0x94a   :  { %3566 = vrot.lane.b32.xlu1 %v8043_v36, %s6590_s17 }
 0x94c   :  { %3568 = vrot.lane.b32.xlu0 %v8031_v48, %s6590_s17 }
 0x94e   :  { %3570 = vrot.lane.b32.xlu1 %v8037_v14, %s6590_s17 }
 0x982   :  { %v3896_v33 = vpop.permute.xlu0 %3895 }
 0x983   :  { %6206 = vmatprep.mubr.msk.f32.mxu1 %vm2566_vm3, %v3896_v33 }
 0x984   :  { %v3898_v40 = vpop.permute.xlu1 %3897 }
 0x985   :  { %6207 = vmatmul.mubr.msk.f32.vlgmr.msra.gmra.mrb[48].mxu1 %vm2566_vm3, %v3898_v40 }
 0x986   :  { %6263 = vmatpush3.bf16.msra.mxu1 %v7974_v32  ;;  %v3900_v39 = vpop.permute.xlu0 %3899 }
 0x987   :  { %6264 = vmatprep.subr.bf16.mxu1 %v7968_v62  ;;  %6209 = vmatprep.mubr.msk.f32.mxu1 %vm2566_vm3, %v3900_v39 }
 0x988   :  { %v3902_v58 = vpop.permute.xlu1 %3901 }
 0x989   :  { %6210 = vmatmul.mubr.msk.f32.gmra.mrb[50].mxu1 %vm2566_vm3, %v3902_v58  ;;  %v8283_v58 = vld [vmem:[#allocation3 + $0x18] sm:$0xff] }
 0x98a   :  { %6265 = vmatpush3.bf16.msra.mxu1 %v7968_v62  ;;  %v3904_v43 = vpop.permute.xlu0 %3903 }
 0x98b   :  { %6266 = vmatprep.subr.bf16.mxu1 %v7999_v35  ;;  %6212 = vmatprep.mubr.msk.f32.mxu1 %vm2566_vm3, %v3904_v43 }
 0x98c   :  { %v3906_v38 = vpop.permute.xlu1 %3905 }
 0x98d   :  { %6213 = vmatmul.mubr.msk.f32.gmra.mrb[52].mxu1 %vm2566_vm3, %v3906_v38 }
 0x98e   :  { %6267 = vmatpush3.bf16.msra.mxu1 %v7999_v35  ;;  %v3908_v32 = vpop.permute.xlu0 %3907 }
 0x98f   :  { %6268 = vmatprep.subr.bf16.mxu1 %v7993_v53  ;;  %6215 = vmatprep.mubr.msk.f32.mxu1 %vm2566_vm3, %v3908_v32  ;;  %v8290_v32 = vld [vmem:[#allocation3] sm:$0xff] }
 0x990   :  { %v3910_v9 = vpop.permute.xlu1 %3909 }
 0x991   :  { %6216 = vmatmul.mubr.msk.f32.gmra.mrb[54].mxu1 %vm2566_vm3, %v3910_v9 }
 0x992   :  { %6269 = vmatpush3.bf16.msra.mxu1 %v7993_v53  ;;  %v3912_v62 = vpop.permute.xlu0 %3911 }
 0x993   :  { %6270 = vmatprep.subr.bf16.mxu1 %v8023_v21  ;;  %6218 = vmatprep.mubr.msk.f32.mxu1 %vm2566_vm3, %v3912_v62  ;;  %v8297_v62 = vld [vmem:[#allocation3 + $0x8] sm:$0xff] }
 0x994   :  { %v3914_v19 = vpop.permute.xlu1 %3913 }
 0x995   :  { %6219 = vmatmul.mubr.msk.f32.gmra.mrb[56].mxu1 %vm2566_vm3, %v3914_v19 }
 0x996   :  { %6271 = vmatpush3.bf16.msra.mxu1 %v8023_v21  ;;  %v3916_v35 = vpop.permute.xlu0 %3915 }
 0x997   :  { %6272 = vmatprep.subr.bf16.mxu1 %v8017_v29  ;;  %6221 = vmatprep.mubr.msk.f32.mxu1 %vm2566_vm3, %v3916_v35 }
 0x998   :  { %v3918_v28 = vpop.permute.xlu1 %3917 }
 0x999   :  { %6222 = vmatmul.mubr.msk.f32.gmra.mrb[58].mxu1 %vm2566_vm3, %v3918_v28 }
 0x99a   :  { %6273 = vmatpush3.bf16.msra.mxu1 %v8017_v29  ;;  %v3920_v53 = vpop.permute.xlu0 %3919 }
 0x99b   :  { %6274 = vmatprep.subr.bf16.mxu1 %v8047_v45  ;;  %6224 = vmatprep.mubr.msk.f32.mxu1 %vm2566_vm3, %v3920_v53 }
 0x99c   :  { %v3922_v44 = vpop.permute.xlu1 %3921 }
 0x99d   :  { %6225 = vmatmul.mubr.msk.f32.gmra.mrb[60].mxu1 %vm2566_vm3, %v3922_v44 }
 0x99e   :  { %6275 = vmatpush3.bf16.msra.mxu1 %v8047_v45  ;;  %v3924_v41 = vpop.permute.xlu0 %3923 }
 0x99f   :  { %6276 = vmatprep.subr.bf16.mxu1 %v8041_v57  ;;  %6227 = vmatprep.mubr.msk.f32.mxu1 %vm2566_vm3, %v3924_v41  ;;  %v8306_v41 = vld [vmem:[#allocation3 + $0x30] sm:$0xff] }
 0x9a0   :  { %v3926_v30 = vpop.permute.xlu1 %3925 }
 0x9a1   :  { %6228 = vmatmul.mubr.msk.f32.gmra.mrb[62].mxu1 %vm2566_vm3, %v3926_v30 }
 0x9a2   :  { %6277 = vmatpush3.bf16.msra.mxu1 %v8041_v57  ;;  %v3541_v29 = vpop.permute.xlu0 %3540  ;;  %6278 = vmatprep.mubr.bf16.mxu1 %v6635_v0 }
 0x9a3   :  { %v3588_v21 = vsub.f32 %v8057_v51, %v3541_v29 }
 0x9a4   :  { %v3543_v48 = vpop.permute.xlu1 %3542 }
 0x9a5   :  { %v3589_v34 = vsub.f32 %v8065_v16, %v3543_v48  ;;  %6180 = vmatprep.mubr.msk.f32.mxu0 %vm2566_vm3, %v3588_v21  ;;  %6279 = vmatmul.mubr.bf16.vlgmr.msra.gmra.mrb[80].mxu1 %v6640_v1 }
 0x9a6   :  { %v3545_v14 = vpop.permute.xlu0 %3544  ;;  %6282 = vmatprep.mubr.bf16.mxu1 %v6645_v2 }
 0x9a7   :  { %v3590_v36 = vsub.f32 %v8055_v46, %v3545_v14  ;;  %6181 = vmatmul.mubr.msk.f32.vlgmr.msra.gmra.mrb[48].mxu0 %vm2566_vm3, %v3589_v34  ;;  %v8311_v34 = vld [vmem:[#allocation3 + $0x38] sm:$0xff] }
 0x9a8   :  { %6231 = vmatpush3.bf16.msra.mxu0 %v8069_v55  ;;  %v3547_v57 = vpop.permute.xlu1 %3546 }
 0x9a9   :  { %6232 = vmatprep.subr.bf16.mxu0 %v8063_v52  ;;  %v3591_v0 = vsub.f32 %v8059_v42, %v3547_v57  ;;  %6183 = vmatprep.mubr.msk.f32.mxu0 %vm2566_vm3, %v3590_v36  ;;  %v8318_v57 = vld [vmem:[#allocation3 + $0x20] sm:$0xff] }
 0x9aa   :  { %v3549_v45 = vpop.permute.xlu0 %3548 }
 0x9ab   :  { %v3592_v51 = vsub.f32 %v8074_v50, %v3549_v45  ;;  %6184 = vmatmul.mubr.msk.f32.gmra.mrb[50].mxu0 %vm2566_vm3, %v3591_v0 }
 0x9ac   :  { %6233 = vmatpush3.bf16.msra.mxu0 %v8063_v52  ;;  %v3551_v1 = vpop.permute.xlu1 %3550 }
 0x9ad   :  { %6234 = vmatprep.subr.bf16.mxu0 %v8086_v24  ;;  %v3593_v2 = vsub.f32 %v8082_v8, %v3551_v1  ;;  %6186 = vmatprep.mubr.msk.f32.mxu0 %vm2566_vm3, %v3592_v51  ;;  %v8323_v51 = vld [vmem:[#allocation3 + $0x28] sm:$0xff] }
 0x9ae   :  { %6283 = vmatmul.mubr.bf16.gmra.mrb[84].mxu1 %v6650_v3  ;;  %v3553_v46 = vpop.permute.xlu0 %3552 }
 0x9af   :  { %v3594_v42 = vsub.f32 %v8072_v23, %v3553_v46  ;;  %6187 = vmatmul.mubr.msk.f32.gmra.mrb[52].mxu0 %vm2566_vm3, %v3593_v2  ;;  %6286 = vmatprep.mubr.bf16.mxu1 %v6655_v4 }
 0x9b0   :  { %6235 = vmatpush3.bf16.msra.mxu0 %v8086_v24  ;;  %v3555_v16 = vpop.permute.xlu1 %3554 }
 0x9b1   :  { %6236 = vmatprep.subr.bf16.mxu0 %v8080_v15  ;;  %v3595_v52 = vsub.f32 %v8076_v56, %v3555_v16  ;;  %6189 = vmatprep.mubr.msk.f32.mxu0 %vm2566_vm3, %v3594_v42  ;;  %v8329_v16 = vld [vmem:[#allocation3 + $0x50] sm:$0xff] }
 0x9b2   :  { %v3557_v55 = vpop.permute.xlu0 %3556 }
 0x9b3   :  { %v3596_v50 = vsub.f32 %v8090_v27, %v3557_v55  ;;  %6190 = vmatmul.mubr.msk.f32.gmra.mrb[54].mxu0 %vm2566_vm3, %v3595_v52 }
 0x9b4   :  { %6237 = vmatpush3.bf16.msra.mxu0 %v8080_v15  ;;  %v3559_v3 = vpop.permute.xlu1 %3558 }
 0x9b5   :  { %6238 = vmatprep.subr.bf16.mxu0 %v8102_v12  ;;  %v3597_v4 = vsub.f32 %v8098_v49, %v3559_v3  ;;  %6192 = vmatprep.mubr.msk.f32.mxu0 %vm2566_vm3, %v3596_v50 }
 0x9b6   :  { %6287 = vmatmul.mubr.bf16.gmra.mrb[88].mxu1 %v6660_v5  ;;  %v3561_v23 = vpop.permute.xlu0 %3560 }
 0x9b7   :  { %v3598_v56 = vsub.f32 %v8088_v10, %v3561_v23  ;;  %6193 = vmatmul.mubr.msk.f32.gmra.mrb[56].mxu0 %vm2566_vm3, %v3597_v4  ;;  %6290 = vmatprep.mubr.bf16.mxu1 %v6665_v6  ;;  %v8860_v10 = vld [vmem:[#allocation7_spill] sm:$0xff]  ;;  %v8336_v4 = vld [vmem:[#allocation3 + $0x58] sm:$0xff] }
 0x9b8   :  { %6239 = vmatpush3.bf16.msra.mxu0 %v8102_v12  ;;  %v3563_v8 = vpop.permute.xlu1 %3562 }
 0x9b9   :  { %6240 = vmatprep.subr.bf16.mxu0 %v8096_v17  ;;  %v3599_v15 = vsub.f32 %v8092_v25, %v3563_v8  ;;  %6195 = vmatprep.mubr.msk.f32.mxu0 %vm2566_vm3, %v3598_v56  ;;  %v8341_v8 = vld [vmem:[#allocation3 + $0x40] sm:$0xff] }
 0x9ba   :  { %v3565_v24 = vpop.permute.xlu0 %3564 }
 0x9bb   :  { %v3600_v27 = vsub.f32 %v8106_v63, %v3565_v24  ;;  %6196 = vmatmul.mubr.msk.f32.gmra.mrb[58].mxu0 %vm2566_vm3, %v3599_v15  ;;  %v8861_v63 = vld [vmem:[#allocation16_spill] sm:$0xff] }
 0x9bc   :  { %6241 = vmatpush3.bf16.msra.mxu0 %v8096_v17  ;;  %v3567_v5 = vpop.permute.xlu1 %3566 }
 0x9bd   :  { %6242 = vmatprep.subr.bf16.mxu0 %v8118_v37  ;;  %v3601_v6 = vsub.f32 %v8114_v26, %v3567_v5  ;;  %6198 = vmatprep.mubr.msk.f32.mxu0 %vm2566_vm3, %v3600_v27  ;;  %v8862_v26 = vld [vmem:[#allocation8_spill] sm:$0xff] }
 0x9be   :  { %6291 = vmatmul.mubr.bf16.gmra.mrb[92].mxu1 %v8860_v10  ;;  %v3569_v49 = vpop.permute.xlu0 %3568  ;;  %v8345_v27 = vld [vmem:[#allocation3 + $0x48] sm:$0xff] }
 0x9bf   :  { %v3602_v25 = vsub.f32 %v8104_v11, %v3569_v49  ;;  %6199 = vmatmul.mubr.msk.f32.gmra.mrb[60].mxu0 %vm2566_vm3, %v3601_v6  ;;  %v8864_v11 = vld [vmem:[#allocation9_spill] sm:$0xff] }
 0x9c0   :  { %6243 = vmatpush3.bf16.msra.mxu0 %v8118_v37  ;;  %v3571_v12 = vpop.permute.xlu1 %3570  ;;  %v8866_v37 = vld [vmem:[#allocation12_spill] sm:$0xff]  ;;  %v5396_v49 = vld [vmem:[%s8788_s5 + $0x10] sm:$0xff] }
 0x9c1   :  { %6244 = vmatprep.subr.bf16.mxu0 %v8861_v63  ;;  %v3603_v17 = vsub.f32 %v8108_v20, %v3571_v12  ;;  %6201 = vmatprep.mubr.msk.f32.mxu0 %vm2566_vm3, %v3602_v25  ;;  %v8869_v20 = vld [vmem:[#allocation18_spill] sm:$0xff]  ;;  %v8352_v12 = vld [vmem:[#allocation3 + $0x70] sm:$0xff] }
 0x9c2   :  { %6320 = vmatprep.subr.mxu1 %v5396_v49 }
 0x9c3   :  { %6202 = vmatmul.mubr.msk.f32.gmra.mrb[62].mxu0 %vm2566_vm3, %v3603_v17  ;;  %6321 = vmatpush3.msra.mxu1 %v5396_v49 }
 0x9c4   :  { %6245 = vmatpush3.bf16.msra.mxu0 %v8861_v63  ;;  %6246 = vmatprep.mubr.bf16.mxu0 %v8862_v26 }
 0x9c5   :  { %6294 = vmatprep.subr.mxu0 %v5396_v49 }
 0x9c7   :  { %6247 = vmatmul.mubr.bf16.vlgmr.msra.gmra.mrb[80].mxu0 %v8863_v54 }
 0x9c8   :  { %6250 = vmatprep.mubr.bf16.mxu0 %v8864_v11  ;;  %6295 = vmatpush3.msra.mxu0 %v5396_v49  ;;  %v8356_v11 = vld [vmem:[#allocation3 + $0x78] sm:$0xff] }
 0x9cf   :  { %6251 = vmatmul.mubr.bf16.gmra.mrb[84].mxu0 %v8865_v61 }
 0x9d0   :  { %6254 = vmatprep.mubr.bf16.mxu0 %v8866_v37 }
 0x9d7   :  { %6255 = vmatmul.mubr.bf16.gmra.mrb[88].mxu0 %v8867_v31  ;;  %v8360_v31 = vld [vmem:[#allocation3 + $0x60] sm:$0xff] }
 0x9d8   :  { %6258 = vmatprep.mubr.bf16.mxu0 %v8868_v60 }
 0x9df   :  { %6259 = vmatmul.mubr.bf16.gmra.mrb[92].mxu0 %v8869_v20  ;;  %v8364_v20 = vld [vmem:[#allocation3 + $0x68] sm:$0xff] }
 0xa78   :  { %v6280_v22 = vpop.f32.mrb[80].mxu1 }
 0xa79   :  { %v4364_v13 = vmul.f32 2.0, %v6280_v22  ;;  %v4299_v47 = vpop.f32.mrb[81].mxu1 }
 0xa7a   :  { %v6281_v7 = vpop.f32.mrb[82].mxu1  ;;  %v4362_v33 = vmul.f32 2.0, %v4299_v47 }
 0xa7b   :  { %v8281_v59 = vsub.f32 %v4364_v13, %v8278_v18  ;;  %v4365_v40 = vmul.f32 2.0, %v6281_v7  ;;  %v4302_v39 = vpop.f32.mrb[83].mxu1 }
 0xa7c   :  { %v4363_v38 = vmul.f32 2.0, %v4302_v39  ;;  %v8293_v9 = vsub.f32 %v4362_v33, %v8290_v32 }
 0xa7d   :  { %v8286_v43 = vsub.f32 %v4365_v40, %v8283_v58  ;;  %4689 = vrot.lane.b32.xlu0 %v8281_v59, %s6589_s29 }
 0xa7e   :  { %v8300_v19 = vsub.f32 %v4363_v38, %v8297_v62 }
 0xa7f   :  { %4691 = vrot.lane.b32.xlu1 %v8286_v43, %s6589_s29 }
 0xa81   :  { %v6284_v35 = vpop.f32.mrb[84].mxu1  ;;  %4685 = vrot.lane.b32.xlu0 %v8293_v9, %s6589_s29 }
 0xa82   :  { %v4368_v28 = vmul.f32 2.0, %v6284_v35  ;;  %v4315_v53 = vpop.f32.mrb[85].mxu1 }
 0xa83   :  { %v6285_v44 = vpop.f32.mrb[86].mxu1  ;;  %4687 = vrot.lane.b32.xlu1 %v8300_v19, %s6589_s29  ;;  %v4366_v29 = vmul.f32 2.0, %v4315_v53 }
 0xa84   :  { %v8309_v30 = vsub.f32 %v4368_v28, %v8306_v41  ;;  %v4369_v21 = vmul.f32 2.0, %v6285_v44  ;;  %v4318_v48 = vpop.f32.mrb[87].mxu1 }
 0xa85   :  { %v4367_v36 = vmul.f32 2.0, %v4318_v48  ;;  %v4382_v0 = vsub.f32 %v4366_v29, %v8318_v57 }
 0xa86   :  { %v8314_v14 = vsub.f32 %v4369_v21, %v8311_v34  ;;  %4697 = vrot.lane.b32.xlu0 %v8309_v30, %s6589_s29 }
 0xa87   :  { %v8326_v1 = vsub.f32 %v4367_v36, %v8323_v51 }
 0xa88   :  { %4699 = vrot.lane.b32.xlu1 %v8314_v14, %s6589_s29 }
 0xa89   :  { %v6288_v45 = vpop.f32.mrb[88].mxu1 }
 0xa8a   :  { %v4372_v2 = vmul.f32 2.0, %v6288_v45  ;;  %4693 = vrot.lane.b32.xlu0 %v4382_v0, %s6589_s29  ;;  %v4331_v46 = vpop.f32.mrb[89].mxu1 }
 0xa8b   :  { %v6289_v42 = vpop.f32.mrb[90].mxu1  ;;  %v4370_v55 = vmul.f32 2.0, %v4331_v46 }
 0xa8c   :  { %v8332_v52 = vsub.f32 %v4372_v2, %v8329_v16  ;;  %v4373_v50 = vmul.f32 2.0, %v6289_v42  ;;  %4695 = vrot.lane.b32.xlu1 %v8326_v1, %s6589_s29  ;;  %v4334_v3 = vpop.f32.mrb[91].mxu1 }
 0xa8d   :  { %v4371_v56 = vmul.f32 2.0, %v4334_v3  ;;  %v4386_v15 = vsub.f32 %v4370_v55, %v8341_v8 }
 0xa8e   :  { %v4389_v23 = vsub.f32 %v4373_v50, %v8336_v4  ;;  %4705 = vrot.lane.b32.xlu0 %v8332_v52, %s6589_s29 }
 0xa8f   :  { %v4387_v5 = vsub.f32 %v4371_v56, %v8345_v27 }
 0xa90   :  { %4707 = vrot.lane.b32.xlu1 %v4389_v23, %s6589_s29 }
 0xa91   :  { %v6292_v24 = vpop.f32.mrb[92].mxu1 }
 0xa92   :  { %v4376_v6 = vmul.f32 2.0, %v6292_v24  ;;  %4701 = vrot.lane.b32.xlu0 %v4386_v15, %s6589_s29  ;;  %v4347_v10 = vpop.f32.mrb[93].mxu1 }
 0xa93   :  { %v6293_v25 = vpop.f32.mrb[94].mxu1  ;;  %v4374_v17 = vmul.f32 2.0, %v4347_v10 }
 0xa94   :  { %v4392_v63 = vsub.f32 %v4376_v6, %v8352_v12  ;;  %v4377_v26 = vmul.f32 2.0, %v6293_v25  ;;  %4703 = vrot.lane.b32.xlu1 %v4387_v5, %s6589_s29  ;;  %v4350_v54 = vpop.f32.mrb[95].mxu1 }
 0xa95   :  { %v4375_v37 = vmul.f32 2.0, %v4350_v54  ;;  %v4390_v60 = vsub.f32 %v4374_v17, %v8360_v31 }
 0xa96   :  { %v4393_v61 = vsub.f32 %v4377_v26, %v8356_v11  ;;  %4713 = vrot.lane.b32.xlu0 %v4392_v63, %s6589_s29 }
 0xa97   :  { %v4391_v22 = vsub.f32 %v4375_v37, %v8364_v20 }
 0xa98   :  { %4715 = vrot.lane.b32.xlu1 %v4393_v61, %s6589_s29 }
 0xa9a   :  { %4709 = vrot.lane.b32.xlu0 %v4390_v60, %s6589_s29  ;;  %v6248_v13 = vpop.f32.mrb[80].mxu0 }
 0xa9b   :  { %v4162_v47 = vpop.f32.mrb[81].mxu0 }
 0xa9c   :  { %4711 = vrot.lane.b32.xlu1 %v4391_v22, %s6589_s29  ;;  %v6249_v7 = vpop.f32.mrb[82].mxu0  ;;  %v4225_v21 = vmul.f32 2.0, %v4162_v47 }
 0xa9d   :  { %v4165_v33 = vpop.f32.mrb[83].mxu0  ;;  %v4228_v45 = vmul.f32 2.0, %v6249_v7 }
 0xa9e   :  { %4410 = vrot.lane.b32.xlu0 %v8293_v9, %s6590_s17 }
 0xa9f   :  { %v8414_v55 = vsub.f32 %v4228_v45, %v8283_v58 }
 0xaa0   :  { %4412 = vrot.lane.b32.xlu1 %v8300_v19, %s6590_s17 }
 0xaa2   :  { %4414 = vrot.lane.b32.xlu0 %v8281_v59, %s6590_s17  ;;  %v6252_v40 = vpop.f32.mrb[84].mxu0 }
 0xaa3   :  { %v4178_v39 = vpop.f32.mrb[85].mxu0  ;;  %v4231_v3 = vmul.f32 2.0, %v6252_v40 }
 0xaa4   :  { %v6253_v38 = vpop.f32.mrb[86].mxu0  ;;  %v4229_v24 = vmul.f32 2.0, %v4178_v39 }
 0xaa5   :  { %v4181_v35 = vpop.f32.mrb[87].mxu0  ;;  %v4232_v49 = vmul.f32 2.0, %v6253_v38 }
 0xaa6   :  { %4416 = vrot.lane.b32.xlu0 %v8286_v43, %s6590_s17  ;;  %v4245_v25 = vsub.f32 %v4229_v24, %v8318_v57  ;;  %v4230_v54 = vmul.f32 2.0, %v4181_v35 }
 0xaa8   :  { %v4246_v47 = vsub.f32 %v4230_v54, %v8323_v51 }
 0xaaa   :  { %4418 = vrot.lane.b32.xlu0 %v4382_v0, %s6590_s17  ;;  %v8378_v28 = vpop.f32.mrb[88].mxu0 }
 0xaab   :  { %v8380_v53 = vpop.f32.mrb[89].mxu0 }
 0xaac   :  { %v8382_v9 = vpop.f32.mrb[90].mxu0  ;;  %v4233_v40 = vmul.f32 2.0, %v8380_v53 }
 0xaad   :  { %v8384_v44 = vpop.f32.mrb[91].mxu0 }
 0xaae   :  { %4420 = vrot.lane.b32.xlu0 %v8326_v1, %s6590_s17  ;;  %v4241_v1 = vsub.f32 %v4225_v21, %v8290_v32  ;;  %v4249_v51 = vsub.f32 %v4233_v40, %v8341_v8 }
 0xab2   :  { %4422 = vrot.lane.b32.xlu0 %v8309_v30, %s6590_s17  ;;  %v6260_v59 = vpop.f32.mrb[92].mxu0  ;;  %v4227_v30 = vmul.f32 2.0, %v6248_v13  ;;  %v4235_v13 = vmul.f32 2.0, %v8378_v28  ;;  %v4236_v28 = vmul.f32 2.0, %v8382_v9 }
 0xab3   :  { %v8390_v19 = vpop.f32.mrb[93].mxu0 }
 0xab4   :  { %v8392_v43 = vpop.f32.mrb[94].mxu0  ;;  %v8408_v48 = vsub.f32 %v4227_v30, %v8278_v18 }
 0xab5   :  { %v8394_v29 = vpop.f32.mrb[95].mxu0 }
 0xab6   :  { %4424 = vrot.lane.b32.xlu0 %v8314_v14, %s6590_s17 }
 0xaba   :  { %4426 = vrot.lane.b32.xlu0 %v4386_v15, %s6590_s17 }
 0xabe   :  { %4428 = vrot.lane.b32.xlu0 %v4387_v5, %s6590_s17  ;;  %v8421_v5 = vsub.f32 %v4231_v3, %v8306_v41 }
 0xac2   :  { %4430 = vrot.lane.b32.xlu0 %v8332_v52, %s6590_s17  ;;  %v4226_v52 = vmul.f32 2.0, %v4165_v33 }
 0xac6   :  { %4432 = vrot.lane.b32.xlu0 %v4389_v23, %s6590_s17  ;;  %v4242_v23 = vsub.f32 %v4226_v52, %v8297_v62  ;;  %v4239_v62 = vmul.f32 2.0, %v6260_v59 }
 0xac8   :  { %v8432_v37 = vsub.f32 %v4239_v62, %v8352_v12  ;;  %v4251_v12 = vsub.f32 %v4235_v13, %v8329_v16 }
 0xaca   :  { %4434 = vrot.lane.b32.xlu0 %v4390_v60, %s6590_s17 }
 0xace   :  { %4438 = vrot.lane.b32.xlu0 %v4392_v63, %s6590_s17 }
 0xad2   :  { %4436 = vrot.lane.b32.xlu0 %v4391_v22, %s6590_s17 }
 0xad6   :  { %4440 = vrot.lane.b32.xlu0 %v4393_v61, %s6590_s17  ;;  %v8428_v61 = vsub.f32 %v4232_v49, %v8311_v34 }
 0xaef   :  { %v4690_v14 = vpop.permute.xlu0 %4689 }
 0xaf0   :  { %v4735_v36 = vadd.f32 %v4690_v14, %v8408_v48 }
 0xaf1   :  { %v4692_v0 = vpop.permute.xlu1 %4691 }
 0xaf2   :  { %4769 = vrot.lane.b32.xlu1 %v4735_v36, %s6590_s17  ;;  %v4736_v18 = vadd.f32 %v4692_v0, %v8414_v55  ;;  %v4234_v36 = vmul.f32 2.0, %v8384_v44  ;;  %v4252_v0 = vsub.f32 %v4236_v28, %v8336_v4  ;;  %v4238_v4 = vmul.f32 2.0, %v8394_v29 }
 0xaf3   :  { %v4686_v2 = vpop.permute.xlu0 %4685 }
 0xaf4   :  { %v4733_v46 = vadd.f32 %v4686_v2, %v4241_v1  ;;  %v4250_v2 = vsub.f32 %v4234_v36, %v8345_v27  ;;  %v4240_v27 = vmul.f32 2.0, %v8392_v43 }
 0xaf5   :  { %v4688_v42 = vpop.permute.xlu1 %4687 }
 0xaf6   :  { %4765 = vrot.lane.b32.xlu1 %v4733_v46, %s6590_s17  ;;  %v4734_v15 = vadd.f32 %v4688_v42, %v4242_v23 }
 0xaf8   :  { %v4698_v50 = vpop.permute.xlu0 %4697 }
 0xaf9   :  { %v4739_v58 = vadd.f32 %v4698_v50, %v8421_v5 }
 0xafa   :  { %v4700_v56 = vpop.permute.xlu1 %4699  ;;  %4771 = vrot.lane.b32.xlu1 %v4736_v18, %s6590_s17  ;;  %v4254_v18 = vsub.f32 %v4238_v4, %v8364_v20 }
 0xafb   :  { %v4740_v60 = vadd.f32 %v4700_v56, %v8428_v61 }
 0xafc   :  { %v4694_v32 = vpop.permute.xlu0 %4693 }
 0xafd   :  { %v4737_v17 = vadd.f32 %v4694_v32, %v4245_v25 }
 0xafe   :  { %v4696_v6 = vpop.permute.xlu1 %4695  ;;  %4767 = vrot.lane.b32.xlu1 %v4734_v15, %s6590_s17 }
 0xaff   :  { %v4738_v34 = vadd.f32 %v4696_v6, %v4246_v47 }
 0xb00   :  { %v4706_v10 = vpop.permute.xlu0 %4705 }
 0xb01   :  { %v4743_v38 = vadd.f32 %v4706_v10, %v4251_v12 }
 0xb02   :  { %v4708_v63 = vpop.permute.xlu1 %4707  ;;  %4777 = vrot.lane.b32.xlu1 %v4739_v58, %s6590_s17 }
 0xb03   :  { %v4744_v8 = vadd.f32 %v4708_v63, %v4252_v0 }
 0xb04   :  { %v4702_v26 = vpop.permute.xlu0 %4701 }
 0xb05   :  { %v4741_v14 = vadd.f32 %v4702_v26, %v4249_v51 }
 0xb06   :  { %v4704_v41 = vpop.permute.xlu1 %4703  ;;  %4773 = vrot.lane.b32.xlu1 %v4737_v17, %s6590_s17 }
 0xb08   :  { %v4714_v22 = vpop.permute.xlu0 %4713 }
 0xb09   :  { %v4747_v57 = vadd.f32 %v4714_v22, %v8432_v37 }
 0xb0a   :  { %v4716_v7 = vpop.permute.xlu1 %4715  ;;  %4779 = vrot.lane.b32.xlu1 %v4740_v60, %s6590_s17 }
 0xb0b   :  { %4793 = vrot.lane.b32.xlu0 %v4747_v57, %s6590_s17 }
 0xb0c   :  { %v4710_v33 = vpop.permute.xlu0 %4709 }
 0xb0e   :  { %v4712_v39 = vpop.permute.xlu1 %4711  ;;  %4775 = vrot.lane.b32.xlu1 %v4738_v34, %s6590_s17 }
 0xb0f   :  { %v4746_v50 = vadd.f32 %v4712_v39, %v4254_v18 }
 0xb10   :  { %v4411_v35 = vpop.permute.xlu0 %4410 }
 0xb11   :  { %v4458_v59 = vsub.f32 %v4241_v1, %v4411_v35  ;;  %v4237_v1 = vmul.f32 2.0, %v8390_v19 }
 0xb12   :  { %v4413_v30 = vpop.permute.xlu1 %4412  ;;  %4785 = vrot.lane.b32.xlu1 %v4743_v38, %s6590_s17 }
 0xb13   :  { %v4459_v21 = vsub.f32 %v4242_v23, %v4413_v30  ;;  %6296 = vmatprep.mubr.msk.f32.mxu0 %vm2566_vm3, %v4458_v59  ;;  %v4253_v42 = vsub.f32 %v4237_v1, %v8360_v31  ;;  %v4256_v31 = vsub.f32 %v4240_v27, %v8356_v11 }
 0xb14   :  { %v4415_v53 = vpop.permute.xlu0 %4414 }
 0xb15   :  { %v4460_v16 = vsub.f32 %v8408_v48, %v4415_v53  ;;  %6297 = vmatmul.mubr.msk.f32.vlgmr.msra.gmra.mrb[48].mxu0 %vm2566_vm3, %v4459_v21  ;;  %v4742_v48 = vadd.f32 %v4704_v41, %v4250_v2  ;;  %v4745_v52 = vadd.f32 %v4710_v33, %v4253_v42  ;;  %v4748_v23 = vadd.f32 %v4716_v7, %v4256_v31 }
 0xb16   :  { %4781 = vrot.lane.b32.xlu1 %v4741_v14, %s6590_s17 }
 0xb17   :  { %6299 = vmatprep.mubr.msk.f32.mxu0 %vm2566_vm3, %v4460_v16 }
 0xb18   :  { %v4417_v9 = vpop.permute.xlu0 %4416 }
 0xb19   :  { %v4461_v45 = vsub.f32 %v8414_v55, %v4417_v9 }
 0xb1a   :  { %4787 = vrot.lane.b32.xlu1 %v4744_v8, %s6590_s17 }
 0xb1b   :  { %6300 = vmatmul.mubr.msk.f32.gmra.mrb[50].mxu0 %vm2566_vm3, %v4461_v45 }
 0xb1c   :  { %v4419_v44 = vpop.permute.xlu0 %4418 }
 0xb1d   :  { %v4462_v46 = vsub.f32 %v4245_v25, %v4419_v44  ;;  %v8517_v44 = vld [vmem:[%s8789_s6] ss:$0 sm:$0xff]  ;;  %s6591_s6 = smov 64  }
 0xb1e   :  { %4783 = vrot.lane.b32.xlu1 %v4742_v48, %s6590_s17 }
 0xb1f   :  { %6302 = vmatprep.mubr.msk.f32.mxu0 %vm2566_vm3, %v4462_v46 }
 0xb20   :  { %v4421_v55 = vpop.permute.xlu0 %4420 }
 0xb21   :  { %v4463_v19 = vsub.f32 %v4246_v47, %v4421_v55 }
 0xb22   :  { %4789 = vrot.lane.b32.xlu1 %v4745_v52, %s6590_s17 }
 0xb23   :  { %6303 = vmatmul.mubr.msk.f32.gmra.mrb[52].mxu0 %vm2566_vm3, %v4463_v19 }
 0xb24   :  { %v4423_v3 = vpop.permute.xlu0 %4422 }
 0xb25   :  { %v4464_v29 = vsub.f32 %v8421_v5, %v4423_v3 }
 0xb26   :  { %4791 = vrot.lane.b32.xlu1 %v4746_v50, %s6590_s17 }
 0xb27   :  { %6305 = vmatprep.mubr.msk.f32.mxu0 %vm2566_vm3, %v4464_v29 }
 0xb28   :  { %v4425_v56 = vpop.permute.xlu0 %4424 }
 0xb29   :  { %v4465_v43 = vsub.f32 %v8428_v61, %v4425_v56 }
 0xb2a   :  { %4795 = vrot.lane.b32.xlu1 %v4748_v23, %s6590_s17 }
 0xb2b   :  { %6306 = vmatmul.mubr.msk.f32.gmra.mrb[54].mxu0 %vm2566_vm3, %v4465_v43 }
 0xb2c   :  { %v4427_v20 = vpop.permute.xlu0 %4426 }
 0xb2d   :  { %v4466_v15 = vsub.f32 %v4249_v51, %v4427_v20 }
 0xb2f   :  { %6308 = vmatprep.mubr.msk.f32.mxu0 %vm2566_vm3, %v4466_v15 }
 0xb30   :  { %v4429_v32 = vpop.permute.xlu0 %4428 }
 0xb31   :  { %v4467_v24 = vsub.f32 %v4250_v2, %v4429_v32 }
 0xb33   :  { %6309 = vmatmul.mubr.msk.f32.gmra.mrb[56].mxu0 %vm2566_vm3, %v4467_v24 }
 0xb34   :  { %v4431_v11 = vpop.permute.xlu0 %4430 }
 0xb35   :  { %v4468_v5 = vsub.f32 %v4251_v12, %v4431_v11 }
 0xb37   :  { %6311 = vmatprep.mubr.msk.f32.mxu0 %vm2566_vm3, %v4468_v5 }
 0xb38   :  { %v4433_v6 = vpop.permute.xlu0 %4432 }
 0xb39   :  { %v4469_v58 = vsub.f32 %v4252_v0, %v4433_v6 }
 0xb3b   :  { %6312 = vmatmul.mubr.msk.f32.gmra.mrb[58].mxu0 %vm2566_vm3, %v4469_v58 }
 0xb3c   :  { %v4435_v10 = vpop.permute.xlu0 %4434 }
 0xb3d   :  { %v4470_v49 = vsub.f32 %v4253_v42, %v4435_v10 }
 0xb3f   :  { %6314 = vmatprep.mubr.msk.f32.mxu0 %vm2566_vm3, %v4470_v49 }
 0xb40   :  { %v4439_v25 = vpop.permute.xlu0 %4438 }
 0xb41   :  { %v4472_v17 = vsub.f32 %v8432_v37, %v4439_v25 }
 0xb44   :  { %v4437_v63 = vpop.permute.xlu0 %4436 }
 0xb45   :  { %v4471_v62 = vsub.f32 %v4254_v18, %v4437_v63  ;;  %v8870_v18 = vmov 0.0  }
 0xb47   :  { %6315 = vmatmul.mubr.msk.f32.gmra.mrb[60].mxu0 %vm2566_vm3, %v4471_v62 }
 0xb48   :  { %v4441_v26 = vpop.permute.xlu0 %4440  ;;  %6317 = vmatprep.mubr.msk.f32.mxu0 %vm2566_vm3, %v4472_v17 }
 0xb49   :  { %v4473_v54 = vsub.f32 %v4256_v31, %v4441_v26 }
 0xb4b   :  { %6318 = vmatmul.mubr.msk.f32.gmra.mrb[62].mxu0 %vm2566_vm3, %v4473_v54 }
 0xb64   :  { %v4770_v61 = vpop.permute.xlu1 %4769 }
 0xb68   :  { %v4766_v41 = vpop.permute.xlu1 %4765 }
 0xb69   :  { %6322 = vmatprep.mubr.msk.f32.mxu1 %vm2566_vm3, %v4766_v41 }
 0xb6c   :  { %v4772_v60 = vpop.permute.xlu1 %4771 }
 0xb70   :  { %v4768_v22 = vpop.permute.xlu1 %4767 }
 0xb71   :  { %6323 = vmatmul.mubr.msk.f32.vlgmr.msra.gmra.mrb[48].mxu1 %vm2566_vm3, %v4768_v22 }
 0xb72   :  { %6325 = vmatprep.mubr.msk.f32.mxu1 %vm2566_vm3, %v4770_v61 }
 0xb74   :  { %v4778_v57 = vpop.permute.xlu1 %4777 }
 0xb75   :  { %6326 = vmatmul.mubr.msk.f32.gmra.mrb[50].mxu1 %vm2566_vm3, %v4772_v60 }
 0xb78   :  { %v4774_v37 = vpop.permute.xlu1 %4773 }
 0xb79   :  { %6328 = vmatprep.mubr.msk.f32.mxu1 %vm2566_vm3, %v4774_v37 }
 0xb7c   :  { %v4780_v13 = vpop.permute.xlu1 %4779 }
 0xb7d   :  { %v4794_v38 = vpop.permute.xlu0 %4793 }
 0xb80   :  { %v4776_v47 = vpop.permute.xlu1 %4775 }
 0xb81   :  { %6329 = vmatmul.mubr.msk.f32.gmra.mrb[52].mxu1 %vm2566_vm3, %v4776_v47 }
 0xb82   :  { %6331 = vmatprep.mubr.msk.f32.mxu1 %vm2566_vm3, %v4778_v57 }
 0xb84   :  { %v4786_v7 = vpop.permute.xlu1 %4785 }
 0xb85   :  { %6332 = vmatmul.mubr.msk.f32.gmra.mrb[54].mxu1 %vm2566_vm3, %v4780_v13 }
 0xb88   :  { %v4782_v34 = vpop.permute.xlu1 %4781 }
 0xb89   :  { %6334 = vmatprep.mubr.msk.f32.mxu1 %vm2566_vm3, %v4782_v34 }
 0xb8c   :  { %v4788_v33 = vpop.permute.xlu1 %4787 }
 0xb90   :  { %v4784_v40 = vpop.permute.xlu1 %4783 }
 0xb91   :  { %6335 = vmatmul.mubr.msk.f32.gmra.mrb[56].mxu1 %vm2566_vm3, %v4784_v40 }
 0xb92   :  { %6337 = vmatprep.mubr.msk.f32.mxu1 %vm2566_vm3, %v4786_v7 }
 0xb94   :  { %v4790_v12 = vpop.permute.xlu1 %4789 }
 0xb95   :  { %6338 = vmatmul.mubr.msk.f32.gmra.mrb[58].mxu1 %vm2566_vm3, %v4788_v33 }
 0xb96   :  { %6340 = vmatprep.mubr.msk.f32.mxu1 %vm2566_vm3, %v4790_v12 }
 0xb98   :  { %v4792_v39 = vpop.permute.xlu1 %4791 }
 0xb99   :  { %6341 = vmatmul.mubr.msk.f32.gmra.mrb[60].mxu1 %vm2566_vm3, %v4792_v39 }
 0xb9a   :  { %6343 = vmatprep.mubr.msk.f32.mxu1 %vm2566_vm3, %v4794_v38 }
 0xb9c   :  { %v4796_v35 = vpop.permute.xlu1 %4795 }
 0xb9d   :  { %6344 = vmatmul.mubr.msk.f32.gmra.mrb[62].mxu1 %vm2566_vm3, %v4796_v35 }
 0xbe8   :  { %v6298_v59 = vpop.f32.mrb[48].mxu0 }
 0xbe9   :  { %v4590_v28 = vpop.f32.mrb[49].mxu0  ;;  %v8520_v46 = vadd.f32 %v6298_v59, %v8517_v44 }
 0xbea   :  { %v8523_v4 = vadd.f32 %v8517_v44, %v4590_v28 }
 0xbeb   :  { %vm4991_vm3 = vcmp.ge.f32.partialorder %v8520_v46, 0.0 }
 0xbec   :  { %vm4990_vm5 = vcmp.ge.f32.partialorder %v8523_v4, 0.0  ;;  %v8535_v50 = vsel %vm4991_vm3, 1.0, %v8870_v18  ;;  %vm5134_vm3 = vcmask 523264  }
 0xbed   :  { %v8539_v29 = vsel %vm4990_vm5, 1.0, %v8870_v18 }
 0xbee   :  { %v6301_v51 = vpop.f32.mrb[50].mxu0 }
 0xbef   :  { %v4600_v30 = vpop.f32.mrb[51].mxu0  ;;  %v8527_v42 = vadd.f32 %v6301_v51, %v8517_v44 }
 0xbf0   :  { %v8531_v52 = vadd.f32 %v8517_v44, %v4600_v30 }
 0xbf1   :  { %vm4993_vm6 = vcmp.ge.f32.partialorder %v8527_v42, 0.0 }
 0xbf2   :  { %vm4992_vm7 = vcmp.ge.f32.partialorder %v8531_v52, 0.0  ;;  %v8548_v15 = vsel %vm4993_vm6, 1.0, %v8870_v18 }
 0xbf3   :  { %v8553_v24 = vsel %vm4992_vm7, 1.0, %v8870_v18 }
 0xbf6   :  { %v6304_v21 = vpop.f32.mrb[52].mxu0 }
 0xbf7   :  { %v4610_v14 = vpop.f32.mrb[53].mxu0  ;;  %v8560_v6 = vadd.f32 %v6304_v21, %v8517_v44 }
 0xbf8   :  { %v8563_v58 = vadd.f32 %v8517_v44, %v4610_v14 }
 0xbf9   :  { %vm4995_vm8 = vcmp.ge.f32.partialorder %v8560_v6, 0.0 }
 0xbfa   :  { %vm4994_vm9 = vcmp.ge.f32.partialorder %v8563_v58, 0.0  ;;  %v8575_v17 = vsel %vm4995_vm8, 1.0, %v8870_v18 }
 0xbfb   :  { %v8579_v54 = vsel %vm4994_vm9, 1.0, %v8870_v18 }
 0xbfe   :  { %v6307_v53 = vpop.f32.mrb[54].mxu0 }
 0xbff   :  { %v4620_v16 = vpop.f32.mrb[55].mxu0  ;;  %v8567_v10 = vadd.f32 %v6307_v53, %v8517_v44 }
 0xc00   :  { %v8571_v49 = vadd.f32 %v8517_v44, %v4620_v16 }
 0xc01   :  { %vm4997_vm10 = vcmp.ge.f32.partialorder %v8567_v10, 0.0 }
 0xc02   :  { %vm4996_vm11 = vcmp.ge.f32.partialorder %v8571_v49, 0.0  ;;  %v8588_v37 = vsel %vm4997_vm10, 1.0, %v8870_v18 }
 0xc03   :  { %v8593_v47 = vsel %vm4996_vm11, 1.0, %v8870_v18 }
 0xc06   :  { %v8498_v36 = vpop.f32.mrb[56].mxu0 }
 0xc07   :  { %v8500_v0 = vpop.f32.mrb[57].mxu0  ;;  %v8601_v33 = vadd.f32 %v8498_v36, %v8517_v44 }
 0xc08   :  { %v8605_v40 = vadd.f32 %v8517_v44, %v8500_v0 }
 0xc09   :  { %vm4999_vm12 = vcmp.ge.f32.partialorder %v8601_v33, 0.0 }
 0xc0a   :  { %vm4998_vm13 = vcmp.ge.f32.partialorder %v8605_v40, 0.0  ;;  %v8619_v28 = vsel %vm4999_vm12, 1.0, %v8870_v18 }
 0xc0b   :  { %v8623_v30 = vsel %vm4998_vm13, 1.0, %v8870_v18 }
 0xc0e   :  { %v8502_v8 = vpop.f32.mrb[58].mxu0 }
 0xc0f   :  { %v8504_v9 = vpop.f32.mrb[59].mxu0  ;;  %v8610_v12 = vadd.f32 %v8502_v8, %v8517_v44 }
 0xc10   :  { %v8615_v39 = vadd.f32 %v8517_v44, %v8504_v9 }
 0xc11   :  { %vm5001_vm14 = vcmp.ge.f32.partialorder %v8610_v12, 0.0 }
 0xc12   :  { %vm5000_vm15 = vcmp.ge.f32.partialorder %v8615_v39, 0.0  ;;  %v8640_v9 = vsel %vm5001_vm14, 1.0, %v8870_v18 }
 0xc1a   :  { %v8506_v45 = vpop.f32.mrb[60].mxu0 }
 0xc1b   :  { %v8508_v1 = vpop.f32.mrb[61].mxu0  ;;  %v8628_v21 = vadd.f32 %v8506_v45, %v8517_v44 }
 0xc1c   :  { %v8634_v53 = vadd.f32 %v8517_v44, %v8508_v1 }
 0xc1d   :  { %vm5003_vm0 = vcmp.ge.f32.partialorder %v8628_v21, 0.0 }
 0xc1e   :  { %v8510_v2 = vpop.f32.mrb[62].mxu0  ;;  %vm5002_vm1 = vcmp.ge.f32.partialorder %v8634_v53, 0.0 }
 0xc1f   :  { %v8512_v48 = vpop.f32.mrb[63].mxu0  ;;  %v8650_v1 = vadd.f32 %v8510_v2, %v8517_v44 }
 0xc21   :  { %vm5005_vm2 = vcmp.ge.f32.partialorder %v8650_v1, 0.0 }
 0xc44   :  { %v6324_v55 = vpop.f32.mrb[48].mxu1 }
 0xc45   :  { %v6394_v19 = vadd.f32 %v6324_v55, %v8517_v44  ;;  %v4895_v27 = vpop.f32.mrb[49].mxu1  ;;  %v8645_v55 = vsel %vm5000_vm15, 1.0, %v8870_v18 }
 0xc46   :  { %v6395_v3 = vadd.f32 %v8517_v44, %v4895_v27  ;;  %v8656_v27 = vadd.f32 %v8517_v44, %v8512_v48 }
 0xc47   :  { %v5055_v31 = vmul.f32 %v6394_v19, %v8535_v50 }
 0xc48   :  { %v5054_v23 = vmul.f32 %v6395_v3, %v8539_v29  ;;  %v6327_v56 = vpop.f32.mrb[50].mxu1  ;;  %vm5004_vm4 = vcmp.ge.f32.partialorder %v8656_v27, 0.0 }
 0xc49   :  { %v6396_v43 = vadd.f32 %v6327_v56, %v8517_v44  ;;  %5088 = vrot.lane.b32.xlu1 %v5055_v31, %s6591_s6  ;;  %v4905_v20 = vpop.f32.mrb[51].mxu1 }
 0xc4a   :  { %v6397_v32 = vadd.f32 %v8517_v44, %v4905_v20  ;;  %5086 = vrot.lane.b32.xlu0 %v5054_v23, %s6591_s6  ;;  %v8667_v20 = vsel %vm5002_vm1, 1.0, %v8870_v18 }
 0xc4b   :  { %v5057_v11 = vmul.f32 %v6396_v43, %v8548_v15  ;;  %v8662_v43 = vsel %vm5003_vm0, 1.0, %v8870_v18 }
 0xc4c   :  { %v5056_v5 = vmul.f32 %v6397_v32, %v8553_v24 }
 0xc4d   :  { %5092 = vrot.lane.b32.xlu1 %v5057_v11, %s6591_s6 }
 0xc4e   :  { %5090 = vrot.lane.b32.xlu0 %v5056_v5, %s6591_s6 }
 0xc54   :  { %v6330_v25 = vpop.f32.mrb[52].mxu1 }
 0xc55   :  { %v6398_v63 = vadd.f32 %v6330_v25, %v8517_v44  ;;  %v4915_v62 = vpop.f32.mrb[53].mxu1 }
 0xc56   :  { %v6399_v26 = vadd.f32 %v8517_v44, %v4915_v62 }
 0xc57   :  { %v5059_v61 = vmul.f32 %v6398_v63, %v8575_v17  ;;  %v8676_v63 = vsel %vm5005_vm2, 1.0, %v8870_v18 }
 0xc58   :  { %v5058_v41 = vmul.f32 %v6399_v26, %v8579_v54  ;;  %v6333_v60 = vpop.f32.mrb[54].mxu1  ;;  %v8681_v26 = vsel %vm5004_vm4, 1.0, %v8870_v18 }
 0xc59   :  { %v6400_v22 = vadd.f32 %v6333_v60, %v8517_v44  ;;  %5096 = vrot.lane.b32.xlu1 %v5059_v61, %s6591_s6  ;;  %v4925_v57 = vpop.f32.mrb[55].mxu1  ;;  %v5039_v60 = vmul.f32 %v8520_v46, %v8535_v50  ;;  %v5040_v46 = vmul.f32 %v8531_v52, %v8553_v24  ;;  %v5042_v52 = vmul.f32 %v8563_v58, %v8579_v54 }
 0xc5a   :  { %v6401_v13 = vadd.f32 %v8517_v44, %v4925_v57  ;;  %5094 = vrot.lane.b32.xlu0 %v5058_v41, %s6591_s6 }
 0xc5b   :  { %v5061_v7 = vmul.f32 %v6400_v22, %v8588_v37 }
 0xc5c   :  { %v5060_v34 = vmul.f32 %v6401_v13, %v8593_v47 }
 0xc5d   :  { %5100 = vrot.lane.b32.xlu1 %v5061_v7, %s6591_s6  ;;  %v5041_v7 = vmul.f32 %v8527_v42, %v8548_v15  ;;  %v5043_v42 = vmul.f32 %v8560_v6, %v8575_v17  ;;  %v5044_v6 = vmul.f32 %v8571_v49, %v8593_v47  ;;  %v5046_v49 = vmul.f32 %v8605_v40, %v8623_v30 }
 0xc5e   :  { %5098 = vrot.lane.b32.xlu0 %v5060_v34, %s6591_s6 }
 0xc64   :  { %v6336_v38 = vpop.f32.mrb[56].mxu1 }
 0xc65   :  { %v6402_v35 = vadd.f32 %v6336_v38, %v8517_v44  ;;  %v4935_v59 = vpop.f32.mrb[57].mxu1 }
 0xc66   :  { %v6403_v51 = vadd.f32 %v8517_v44, %v4935_v59  ;;  %v5045_v59 = vmul.f32 %v8567_v10, %v8588_v37  ;;  %v5047_v10 = vmul.f32 %v8601_v33, %v8619_v28  ;;  %v5048_v33 = vmul.f32 %v8615_v39, %v8645_v55 }
 0xc67   :  { %v5063_v14 = vmul.f32 %v6402_v35, %v8619_v28  ;;  %v5050_v39 = vmul.f32 %v8634_v53, %v8667_v20  ;;  %v5052_v53 = vmul.f32 %v8656_v27, %v8681_v26 }
 0xc68   :  { %v5062_v16 = vmul.f32 %v6403_v51, %v8623_v30  ;;  %v6339_v36 = vpop.f32.mrb[58].mxu1 }
 0xc69   :  { %v6404_v0 = vadd.f32 %v6339_v36, %v8517_v44  ;;  %5104 = vrot.lane.b32.xlu1 %v5063_v14, %s6591_s6  ;;  %v4945_v8 = vpop.f32.mrb[59].mxu1  ;;  %v5049_v36 = vmul.f32 %v8610_v12, %v8640_v9  ;;  %v5051_v12 = vmul.f32 %v8628_v21, %v8662_v43  ;;  %v5053_v21 = vmul.f32 %v8650_v1, %v8676_v63 }
 0xc6a   :  { %v6405_v45 = vadd.f32 %v8517_v44, %v4945_v8  ;;  %5102 = vrot.lane.b32.xlu0 %v5062_v16, %s6591_s6 }
 0xc6b   :  { %v5065_v19 = vmul.f32 %v6404_v0, %v8640_v9 }
 0xc6c   :  { %v5064_v3 = vmul.f32 %v6405_v45, %v8645_v55  ;;  %v6342_v31 = vpop.f32.mrb[60].mxu1 }
 0xc6d   :  { %v6406_v23 = vadd.f32 %v6342_v31, %v8517_v44  ;;  %5108 = vrot.lane.b32.xlu1 %v5065_v19, %s6591_s6  ;;  %v4955_v56 = vpop.f32.mrb[61].mxu1 }
 0xc6e   :  { %v6407_v2 = vadd.f32 %v8517_v44, %v4955_v56  ;;  %5106 = vrot.lane.b32.xlu0 %v5064_v3, %s6591_s6 }
 0xc6f   :  { %v5067_v48 = vmul.f32 %v6406_v23, %v8662_v43 }
 0xc70   :  { %v5066_v32 = vmul.f32 %v6407_v2, %v8667_v20  ;;  %v6345_v11 = vpop.f32.mrb[62].mxu1 }
 0xc71   :  { %v6408_v5 = vadd.f32 %v6345_v11, %v8517_v44  ;;  %5112 = vrot.lane.b32.xlu1 %v5067_v48, %s6591_s6  ;;  %v4965_v25 = vpop.f32.mrb[63].mxu1 }
 0xc72   :  { %v6409_v62 = vadd.f32 %v8517_v44, %v4965_v25  ;;  %5110 = vrot.lane.b32.xlu0 %v5066_v32, %s6591_s6  ;;  %v5038_v44 = vmul.f32 %v8523_v4, %v8539_v29 }
 0xc73   :  { %v5069_v61 = vmul.f32 %v6408_v5, %v8676_v63 }
 0xc74   :  { %v5068_v41 = vmul.f32 %v6409_v62, %v8681_v26 }
 0xc75   :  { %5116 = vrot.lane.b32.xlu1 %v5069_v61, %s6591_s6 }
 0xc76   :  { %5114 = vrot.lane.b32.xlu0 %v5068_v41, %s6591_s6 }
 0xcbb   :  { %v5089_v22 = vpop.permute.xlu1 %5088 }
 0xcbc   :  { %v5136_v57 = vsel %vm5134_vm3, %v5039_v60, %v5089_v22  ;;  %v5087_v18 = vpop.permute.xlu0 %5086 }
 0xcbd   :  { %5152 = vst [vmem:[%s8790_s7 + $0x8] sm:$0xff] %v5136_v57  ;;  %v5135_v13 = vsel %vm5134_vm3, %v5038_v44, %v5087_v18 }
 0xcbe   :  { %5151 = vst [vmem:[%s8790_s7] sm:$0xff] %v5135_v13 }
 0xcbf   :  { %v5093_v4 = vpop.permute.xlu1 %5092 }
 0xcc0   :  { %v5138_v50 = vsel %vm5134_vm3, %v5041_v7, %v5093_v4  ;;  %v5091_v29 = vpop.permute.xlu0 %5090 }
 0xcc1   :  { %5154 = vst [vmem:[%s8790_s7 + $0x18] sm:$0xff] %v5138_v50  ;;  %v5137_v34 = vsel %vm5134_vm3, %v5040_v46, %v5091_v29 }
 0xcc2   :  { %5153 = vst [vmem:[%s8790_s7 + $0x10] sm:$0xff] %v5137_v34 }
 0xccb   :  { %v5097_v15 = vpop.permute.xlu1 %5096 }
 0xccc   :  { %v5140_v24 = vsel %vm5134_vm3, %v5043_v42, %v5097_v15  ;;  %v5095_v38 = vpop.permute.xlu0 %5094 }
 0xccd   :  { %5156 = vst [vmem:[%s8790_s7 + $0x28] sm:$0xff] %v5140_v24  ;;  %v5139_v35 = vsel %vm5134_vm3, %v5042_v52, %v5095_v38 }
 0xcce   :  { %5155 = vst [vmem:[%s8790_s7 + $0x20] sm:$0xff] %v5139_v35 }
 0xccf   :  { %v5101_v58 = vpop.permute.xlu1 %5100 }
 0xcd0   :  { %v5142_v17 = vsel %vm5134_vm3, %v5045_v59, %v5101_v58  ;;  %v5099_v54 = vpop.permute.xlu0 %5098 }
 0xcd1   :  { %5158 = vst [vmem:[%s8790_s7 + $0x38] sm:$0xff] %v5142_v17  ;;  %v5141_v51 = vsel %vm5134_vm3, %v5044_v6, %v5099_v54 }
 0xcd2   :  { %5157 = vst [vmem:[%s8790_s7 + $0x30] sm:$0xff] %v5141_v51 }
 0xcdb   :  { %v5105_v37 = vpop.permute.xlu1 %5104 }
 0xcdc   :  { %v5144_v47 = vsel %vm5134_vm3, %v5047_v10, %v5105_v37  ;;  %v5103_v14 = vpop.permute.xlu0 %5102 }
 0xcdd   :  { %5160 = vst [vmem:[%s8790_s7 + $0x48] sm:$0xff] %v5144_v47  ;;  %v5143_v16 = vsel %vm5134_vm3, %v5046_v49, %v5103_v14 }
 0xcde   :  { %5159 = vst [vmem:[%s8790_s7 + $0x40] sm:$0xff] %v5143_v16 }
 0xcdf   :  { %v5109_v40 = vpop.permute.xlu1 %5108 }
 0xce0   :  { %v5146_v28 = vsel %vm5134_vm3, %v5049_v36, %v5109_v40  ;;  %v5107_v30 = vpop.permute.xlu0 %5106 }
 0xce1   :  { %5162 = vst [vmem:[%s8790_s7 + $0x58] sm:$0xff] %v5146_v28  ;;  %v5145_v0 = vsel %vm5134_vm3, %v5048_v33, %v5107_v30 }
 0xce2   :  { %5161 = vst [vmem:[%s8790_s7 + $0x50] sm:$0xff] %v5145_v0 }
 0xce3   :  { %v5113_v8 = vpop.permute.xlu1 %5112 }
 0xce4   :  { %v5148_v9 = vsel %vm5134_vm3, %v5051_v12, %v5113_v8  ;;  %v5111_v45 = vpop.permute.xlu0 %5110 }
 0xce5   :  { %5164 = vst [vmem:[%s8790_s7 + $0x68] sm:$0xff] %v5148_v9  ;;  %v5147_v55 = vsel %vm5134_vm3, %v5050_v39, %v5111_v45 }
 0xce6   :  { %5163 = vst [vmem:[%s8790_s7 + $0x60] sm:$0xff] %v5147_v55 }
 0xce7   :  { %v5117_v19 = vpop.permute.xlu1 %5116 }
 0xce8   :  { %v5150_v3 = vsel %vm5134_vm3, %v5053_v21, %v5117_v19  ;;  %v5115_v31 = vpop.permute.xlu0 %5114 }
 0xce9   :  { %5166 = vst [vmem:[%s8790_s7 + $0x78] sm:$0xff] %v5150_v3  ;;  %v5149_v23 = vsel %vm5134_vm3, %v5052_v53, %v5115_v31 }
 0xcea   :  { %5165 = vst [vmem:[%s8790_s7 + $0x70] sm:$0xff] %v5149_v23 }
 0xceb   :  { %5171 = vsyncmov [#allocation4] }
 0xcee   :  { %s5172_s16 = vpop.sfrf %5171 }
 0xcef   :  { %p5445_p0 = scmp.ne.s32.totalorder %s5172_s16, 0 }
 0xcf1   :  { %5176 = shalt.err (%p5445_p0)  }

</bundles_post_ra>
